<compile_context>
chip_gen: v6e
topology: v6e:2x2x1
jax: 0.10.0
libtpu: 0.0.40
codegen_flags: <defaults>
</compile_context>

<pallas_src>
import functools

import jax
import jax.numpy as jnp
from jax.experimental import pallas as pl
from jax.experimental.pallas import tpu as pltpu


def _mlp_tile(x, w1_ref, b1_ref, w2_ref, b2_ref, w3_ref, b3_ref,
              wh1_ref, bh1_ref, wh2_ref, bh2_ref):
    """Fused encoder (3x Linear+ReLU) + mlp head (Linear+ReLU+Linear).

    x is a bf16 (tile_m, in_dim) tile; returns f32 (tile_m, feat_pad).
    """
    bf16 = jnp.bfloat16
    f32 = jnp.float32
    h = jnp.maximum(
        jnp.dot(x, w1_ref[...], preferred_element_type=f32) + b1_ref[...], 0.0)
    h = jnp.maximum(
        jnp.dot(h.astype(bf16), w2_ref[...], preferred_element_type=f32)
        + b2_ref[...], 0.0)
    h = jnp.maximum(
        jnp.dot(h.astype(bf16), w3_ref[...], preferred_element_type=f32)
        + b3_ref[...], 0.0)
    h = jnp.maximum(
        jnp.dot(h.astype(bf16), wh1_ref[...], preferred_element_type=f32)
        + bh1_ref[...], 0.0)
    y = (jnp.dot(h.astype(bf16), wh2_ref[...], preferred_element_type=f32)
         + bh2_ref[...])
    return y


def _sumsq_kernel(batch, tile_m, num_tiles,
                  x_ref,
                  w1_ref, b1_ref, w2_ref, b2_ref, w3_ref, b3_ref,
                  wh1_ref, bh1_ref, wh2_ref, bh2_ref,
                  ss_ref):
    """Pass 1: per-tile partial column sum-of-squares of the projection."""
    i = pl.program_id(0)
    y = _mlp_tile(x_ref[...], w1_ref, b1_ref, w2_ref, b2_ref, w3_ref, b3_ref,
                  wh1_ref, bh1_ref, wh2_ref, bh2_ref)

    if batch % tile_m != 0:
        # Only the final tile contains padded rows (nonzero due to biases);
        # gate the iota/compare/select so full tiles skip it at runtime.
        @pl.when(i == num_tiles - 1)
        def _():
            rows = jax.lax.broadcasted_iota(jnp.int32, y.shape, 0) + i * tile_m
            ym = jnp.where(rows < batch, y, 0.0)
            ss_ref[...] = jnp.sum(ym * ym, axis=0, keepdims=True)[None]

        @pl.when(i < num_tiles - 1)
        def _():
            ss_ref[...] = jnp.sum(y * y, axis=0, keepdims=True)[None]
    else:
        ss_ref[...] = jnp.sum(y * y, axis=0, keepdims=True)[None]


def _project_normalize_kernel(x_ref,
                              w1_ref, b1_ref, w2_ref, b2_ref, w3_ref, b3_ref,
                              wh1_ref, bh1_ref, wh2_ref, bh2_ref,
                              inv_ref, out_ref):
    """Pass 2: recompute the MLP tile and apply the dim=0 normalization."""
    y = _mlp_tile(x_ref[...], w1_ref, b1_ref, w2_ref, b2_ref, w3_ref, b3_ref,
                  wh1_ref, bh1_ref, wh2_ref, bh2_ref)
    out_ref[...] = y * inv_ref[...]


@functools.partial(jax.jit, static_argnames=("tile_m",))
def clcpnet_forward(x, params, *, tile_m=512):
    """x: [B, in_dim] float32; params: dict of [in, out] weights + (1, out) biases."""
    w1, b1 = params["w1"], params["b1"]
    w2, b2 = params["w2"], params["b2"]
    w3, b3 = params["w3"], params["b3"]
    wh1, bh1 = params["wh1"], params["bh1"]
    wh2, bh2 = params["wh2"], params["bh2"]

    B, in_dim = x.shape
    h1 = w1.shape[1]
    h2 = w2.shape[1]
    out_dim = w3.shape[1]
    feat_dim = wh2.shape[1]

    # --- lane-dense output: pad projection to a multiple of 128 lanes -------
    feat_pad = ((feat_dim + 127) // 128) * 128
    wh2_p = jnp.pad(wh2, ((0, 0), (0, feat_pad - feat_dim)))
    bh2_p = jnp.pad(bh2, ((0, 0), (0, feat_pad - feat_dim)))

    # --- batch tiling (multiple of 16 for bf16 sublane packing) -------------
    tile_m = ((int(tile_m) + 15) // 16) * 16
    tile_m = max(16, min(tile_m, ((B + 15) // 16) * 16))
    B_pad = ((B + tile_m - 1) // tile_m) * tile_m
    num_tiles = B_pad // tile_m

    # --- bf16 MXU operands (biases stay f32) ---------------------------------
    bf16 = jnp.bfloat16
    xb = jnp.pad(x, ((0, B_pad - B), (0, 0))).astype(bf16)
    w1b, w2b, w3b, wh1b, wh2b = (w.astype(bf16) for w in (w1, w2, w3, wh1, wh2_p))

    def inv_spec(a):
        # Grid-invariant full-array block (block == full dims, so the (8,128)
        # constraint does not apply); stays resident in VMEM across tiles.
        # NOTE(synk): pipeline_mode=pl.Buffered(1) would trim the redundant
        # second buffer on these invariant blocks; skipped — negligible here.
        return pl.BlockSpec(a.shape, lambda i: (0, 0))

    weight_args = (w1b, b1, w2b, b2, w3b, b3, wh1b, bh1, wh2b, bh2_p)
    weight_specs = [inv_spec(a) for a in weight_args]
    x_spec = pl.BlockSpec((tile_m, in_dim), lambda i: (i, 0))

    mlp_flops = 2 * B_pad * (in_dim * h1 + h1 * h2 + h2 * out_dim
                             + out_dim * out_dim + out_dim * feat_dim)
    param_bytes = sum(int(a.size) * a.dtype.itemsize for a in weight_args)
    x_bytes = int(xb.size) * 2

    # ---- pass 1: per-tile partial column sum-of-squares ("parallel") -------
    partials = pl.pallas_call(
        functools.partial(_sumsq_kernel, B, tile_m, num_tiles),
        out_shape=jax.ShapeDtypeStruct((num_tiles, 1, feat_pad), jnp.float32),
        grid=(num_tiles,),
        in_specs=[x_spec] + weight_specs,
        out_specs=pl.BlockSpec((1, 1, feat_pad), lambda i: (i, 0, 0)),
        compiler_params=pltpu.CompilerParams(
            dimension_semantics=("parallel",)),
        cost_estimate=pl.CostEstimate(
            flops=mlp_flops + 2 * B_pad * feat_pad,
            transcendentals=0,
            bytes_accessed=x_bytes + param_bytes + num_tiles * feat_pad * 4),
    )(xb, *weight_args)

    # Tiny global reduction + reciprocal norm (computed once, outside the grid).
    sumsq = jnp.sum(partials, axis=(0, 1), keepdims=False)[None, :]   # (1, feat_pad)
    inv = 1.0 / jnp.maximum(jnp.sqrt(sumsq), 1e-12)                   # F.normalize eps

    # ---- pass 2: recompute MLP, normalize, store ("parallel") --------------
    out_full = pl.pallas_call(
        _project_normalize_kernel,
        out_shape=jax.ShapeDtypeStruct((B_pad, feat_pad), jnp.float32),
        grid=(num_tiles,),
        in_specs=[x_spec] + weight_specs + [inv_spec(inv)],
        out_specs=pl.BlockSpec((tile_m, feat_pad), lambda i: (i, 0)),
        compiler_params=pltpu.CompilerParams(
            dimension_semantics=("parallel",)),
        cost_estimate=pl.CostEstimate(
            flops=mlp_flops + B_pad * feat_pad,
            transcendentals=0,
            bytes_accessed=(x_bytes + param_bytes + feat_pad * 4
                            + B_pad * feat_pad * 4)),
    )(xb, *weight_args, inv)

    return out_full[:B, :feat_dim]


def init_params(key, in_dim, h1, h2, out_dim, feat_dim):
    """Deterministic synthetic parameters (stored as [in, out] for x @ W + b)."""
    keys = jax.random.split(key, 10)

    def linear(kw, kb, fan_in, fan_out):
        bound = 1.0 / jnp.sqrt(fan_in)
        w = jax.random.uniform(kw, (fan_in, fan_out), jnp.float32, -bound, bound)
        b = jax.random.uniform(kb, (1, fan_out), jnp.float32, -bound, bound)
        return w, b

    w1, b1 = linear(keys[0], keys[1], in_dim, h1)
    w2, b2 = linear(keys[2], keys[3], h1, h2)
    w3, b3 = linear(keys[4], keys[5], h2, out_dim)
    wh1, bh1 = linear(keys[6], keys[7], out_dim, out_dim)
    wh2, bh2 = linear(keys[8], keys[9], out_dim, feat_dim)
    return dict(w1=w1, b1=b1, w2=w2, b2=b2, w3=w3, b3=b3,
                wh1=wh1, bh1=bh1, wh2=wh2, bh2=bh2)


def reference_forward(x, p):
    """Pure-JAX reference mirroring the kernel numerics (bf16 dot operands,
    f32 accumulation / bias / ReLU / normalize)."""
    bf16 = jnp.bfloat16
    f32 = jnp.float32

    def lin(h, w, b):
        return jnp.dot(h.astype(bf16), w.astype(bf16),
                       preferred_element_type=f32) + b

    h = jnp.maximum(lin(x, p["w1"], p["b1"]), 0.0)
    h = jnp.maximum(lin(h, p["w2"], p["b2"]), 0.0)
    h = jnp.maximum(lin(h, p["w3"], p["b3"]), 0.0)
    h = jnp.maximum(lin(h, p["wh1"], p["bh1"]), 0.0)
    y = lin(h, p["wh2"], p["bh2"])
    norm = jnp.sqrt(jnp.sum(y * y, axis=0, keepdims=True))
    return y * (1.0 / jnp.maximum(norm, 1e-12))


if __name__ == "__main__":
    # Small synthetic "opt": model_in_dim=16, n_hidden_1=32, n_hidden_2=32,
    # model_out_dim=32, feat_dim=64.  B=500 (not a tile multiple) exercises
    # the batch-padding/masking path.
    B, in_dim, h1, h2, out_dim, feat_dim = 500, 16, 32, 32, 32, 64

    key = jax.random.PRNGKey(0)
    kx, kp = jax.random.split(key)
    x = jax.random.normal(kx, (B, in_dim), jnp.float32)
    params = init_params(kp, in_dim, h1, h2, out_dim, feat_dim)

    ref = reference_forward(x, params)

    # Default tile (single 512-row tile; padded-row masking on that tile).
    out = jax.block_until_ready(clcpnet_forward(x, params))
    assert out.shape == (B, feat_dim)
    err = float(jnp.max(jnp.abs(out - ref)))
    assert jnp.allclose(out, ref, atol=2e-4, rtol=2e-3), f"mismatch, max abs err={err}"

    # Small tile (4 grid steps; exercises multi-tile partial sums + last-tile mask).
    out2 = jax.block_until_ready(clcpnet_forward(x, params, tile_m=128))
    err2 = float(jnp.max(jnp.abs(out2 - ref)))
    assert jnp.allclose(out2, ref, atol=2e-4, rtol=2e-3), f"mismatch, max abs err={err2}"

    print("KERNEL_OK")
</pallas_src>

<mosaic_0001>
module attributes {stable_mosaic.version = 11 : i64} {
  func.func @_sumsq_kernel(%arg0: i32, %arg1: memref<512x16xbf16, #tpu.memory_space<vmem>>, %arg2: memref<16x32xbf16, #tpu.memory_space<vmem>>, %arg3: memref<1x32xf32, #tpu.memory_space<vmem>>, %arg4: memref<32x32xbf16, #tpu.memory_space<vmem>>, %arg5: memref<1x32xf32, #tpu.memory_space<vmem>>, %arg6: memref<32x32xbf16, #tpu.memory_space<vmem>>, %arg7: memref<1x32xf32, #tpu.memory_space<vmem>>, %arg8: memref<32x32xbf16, #tpu.memory_space<vmem>>, %arg9: memref<1x32xf32, #tpu.memory_space<vmem>>, %arg10: memref<32x128xbf16, #tpu.memory_space<vmem>>, %arg11: memref<1x128xf32, #tpu.memory_space<vmem>>, %arg12: memref<1x1x128xf32, #tpu.memory_space<vmem>>) attributes {dimension_semantics = [#tpu.dimension_semantics<parallel>], iteration_bounds = array<i64: 1>, scalar_prefetch = 0 : i64, scratch_operands = 0 : i64, tpu.core_type = #tpu.core_type<tc>, window_params = [{transform_indices = @transform_0, window_bounds = array<i64: 512, 16>}, {pipeline_mode = #tpu.pipeline_mode<synchronous>, transform_indices = @transform_1, window_bounds = array<i64: 16, 32>}, {pipeline_mode = #tpu.pipeline_mode<synchronous>, transform_indices = @transform_2, window_bounds = array<i64: 1, 32>}, {pipeline_mode = #tpu.pipeline_mode<synchronous>, transform_indices = @transform_3, window_bounds = array<i64: 32, 32>}, {pipeline_mode = #tpu.pipeline_mode<synchronous>, transform_indices = @transform_4, window_bounds = array<i64: 1, 32>}, {pipeline_mode = #tpu.pipeline_mode<synchronous>, transform_indices = @transform_5, window_bounds = array<i64: 32, 32>}, {pipeline_mode = #tpu.pipeline_mode<synchronous>, transform_indices = @transform_6, window_bounds = array<i64: 1, 32>}, {pipeline_mode = #tpu.pipeline_mode<synchronous>, transform_indices = @transform_7, window_bounds = array<i64: 32, 32>}, {pipeline_mode = #tpu.pipeline_mode<synchronous>, transform_indices = @transform_8, window_bounds = array<i64: 1, 32>}, {pipeline_mode = #tpu.pipeline_mode<synchronous>, transform_indices = @transform_9, window_bounds = array<i64: 32, 128>}, {pipeline_mode = #tpu.pipeline_mode<synchronous>, transform_indices = @transform_10, window_bounds = array<i64: 1, 128>}, {transform_indices = @transform_11, window_bounds = array<i64: 1, 1, 128>}]} {
    %c0 = arith.constant 0 : index
    %c0_0 = arith.constant 0 : index
    %0 = vector.load %arg1[%c0, %c0_0] : memref<512x16xbf16, #tpu.memory_space<vmem>>, vector<512x16xbf16>
    %c0_1 = arith.constant 0 : index
    %c0_2 = arith.constant 0 : index
    %1 = vector.load %arg2[%c0_1, %c0_2] : memref<16x32xbf16, #tpu.memory_space<vmem>>, vector<16x32xbf16>
    %cst = arith.constant dense<0.000000e+00> : vector<512x32xf32>
    %2 = tpu.matmul %0, %1, %cst {dimension_numbers = #tpu.dot_dimension_numbers<[1], [0], [0], [1], [0, 0, 1, 1], [], []>} : vector<512x16xbf16>, vector<16x32xbf16>, vector<512x32xf32> -> vector<512x32xf32>
    %c0_3 = arith.constant 0 : index
    %c0_4 = arith.constant 0 : index
    %3 = vector.load %arg3[%c0_3, %c0_4] : memref<1x32xf32, #tpu.memory_space<vmem>>, vector<1x32xf32>
    %4 = vector.broadcast %3 : vector<1x32xf32> to vector<512x32xf32>
    %5 = arith.addf %2, %4 : vector<512x32xf32>
    %cst_5 = arith.constant 0.000000e+00 : f32
    %6 = vector.broadcast %cst_5 : f32 to vector<512x32xf32>
    %7 = arith.maximumf %5, %6 : vector<512x32xf32>
    %8 = arith.truncf %7 : vector<512x32xf32> to vector<512x32xbf16>
    %c0_6 = arith.constant 0 : index
    %c0_7 = arith.constant 0 : index
    %9 = vector.load %arg4[%c0_6, %c0_7] : memref<32x32xbf16, #tpu.memory_space<vmem>>, vector<32x32xbf16>
    %cst_8 = arith.constant dense<0.000000e+00> : vector<512x32xf32>
    %10 = tpu.matmul %8, %9, %cst_8 {dimension_numbers = #tpu.dot_dimension_numbers<[1], [0], [0], [1], [0, 0, 1, 1], [], []>} : vector<512x32xbf16>, vector<32x32xbf16>, vector<512x32xf32> -> vector<512x32xf32>
    %c0_9 = arith.constant 0 : index
    %c0_10 = arith.constant 0 : index
    %11 = vector.load %arg5[%c0_9, %c0_10] : memref<1x32xf32, #tpu.memory_space<vmem>>, vector<1x32xf32>
    %12 = vector.broadcast %11 : vector<1x32xf32> to vector<512x32xf32>
    %13 = arith.addf %10, %12 : vector<512x32xf32>
    %cst_11 = arith.constant 0.000000e+00 : f32
    %14 = vector.broadcast %cst_11 : f32 to vector<512x32xf32>
    %15 = arith.maximumf %13, %14 : vector<512x32xf32>
    %16 = arith.truncf %15 : vector<512x32xf32> to vector<512x32xbf16>
    %c0_12 = arith.constant 0 : index
    %c0_13 = arith.constant 0 : index
    %17 = vector.load %arg6[%c0_12, %c0_13] : memref<32x32xbf16, #tpu.memory_space<vmem>>, vector<32x32xbf16>
    %cst_14 = arith.constant dense<0.000000e+00> : vector<512x32xf32>
    %18 = tpu.matmul %16, %17, %cst_14 {dimension_numbers = #tpu.dot_dimension_numbers<[1], [0], [0], [1], [0, 0, 1, 1], [], []>} : vector<512x32xbf16>, vector<32x32xbf16>, vector<512x32xf32> -> vector<512x32xf32>
    %c0_15 = arith.constant 0 : index
    %c0_16 = arith.constant 0 : index
    %19 = vector.load %arg7[%c0_15, %c0_16] : memref<1x32xf32, #tpu.memory_space<vmem>>, vector<1x32xf32>
    %20 = vector.broadcast %19 : vector<1x32xf32> to vector<512x32xf32>
    %21 = arith.addf %18, %20 : vector<512x32xf32>
    %cst_17 = arith.constant 0.000000e+00 : f32
    %22 = vector.broadcast %cst_17 : f32 to vector<512x32xf32>
    %23 = arith.maximumf %21, %22 : vector<512x32xf32>
    %24 = arith.truncf %23 : vector<512x32xf32> to vector<512x32xbf16>
    %c0_18 = arith.constant 0 : index
    %c0_19 = arith.constant 0 : index
    %25 = vector.load %arg8[%c0_18, %c0_19] : memref<32x32xbf16, #tpu.memory_space<vmem>>, vector<32x32xbf16>
    %cst_20 = arith.constant dense<0.000000e+00> : vector<512x32xf32>
    %26 = tpu.matmul %24, %25, %cst_20 {dimension_numbers = #tpu.dot_dimension_numbers<[1], [0], [0], [1], [0, 0, 1, 1], [], []>} : vector<512x32xbf16>, vector<32x32xbf16>, vector<512x32xf32> -> vector<512x32xf32>
    %c0_21 = arith.constant 0 : index
    %c0_22 = arith.constant 0 : index
    %27 = vector.load %arg9[%c0_21, %c0_22] : memref<1x32xf32, #tpu.memory_space<vmem>>, vector<1x32xf32>
    %28 = vector.broadcast %27 : vector<1x32xf32> to vector<512x32xf32>
    %29 = arith.addf %26, %28 : vector<512x32xf32>
    %cst_23 = arith.constant 0.000000e+00 : f32
    %30 = vector.broadcast %cst_23 : f32 to vector<512x32xf32>
    %31 = arith.maximumf %29, %30 : vector<512x32xf32>
    %32 = arith.truncf %31 : vector<512x32xf32> to vector<512x32xbf16>
    %c0_24 = arith.constant 0 : index
    %c0_25 = arith.constant 0 : index
    %33 = vector.load %arg10[%c0_24, %c0_25] : memref<32x128xbf16, #tpu.memory_space<vmem>>, vector<32x128xbf16>
    %cst_26 = arith.constant dense<0.000000e+00> : vector<512x128xf32>
    %34 = tpu.matmul %32, %33, %cst_26 {dimension_numbers = #tpu.dot_dimension_numbers<[1], [0], [0], [1], [0, 0, 1, 1], [], []>} : vector<512x32xbf16>, vector<32x128xbf16>, vector<512x128xf32> -> vector<512x128xf32>
    %c0_27 = arith.constant 0 : index
    %c0_28 = arith.constant 0 : index
    %35 = vector.load %arg11[%c0_27, %c0_28] : memref<1x128xf32, #tpu.memory_space<vmem>>, vector<1x128xf32>
    %36 = vector.broadcast %35 : vector<1x128xf32> to vector<512x128xf32>
    %37 = arith.addf %34, %36 : vector<512x128xf32>
    %c0_i32 = arith.constant 0 : i32
    %38 = arith.cmpi eq, %arg0, %c0_i32 : i32
    %39 = arith.extui %38 : i1 to i32
    %c0_i32_29 = arith.constant 0 : i32
    %40 = arith.cmpi ne, %39, %c0_i32_29 : i32
    scf.if %40 {
      %44 = tpu.iota {dimensions = array<i32: 0>} : vector<512x128xi32>
      %c512_i32 = arith.constant 512 : i32
      %45 = arith.muli %arg0, %c512_i32 : i32
      %46 = vector.broadcast %45 : i32 to vector<512x128xi32>
      %47 = arith.addi %44, %46 : vector<512x128xi32>
      %c500_i32 = arith.constant 500 : i32
      %48 = vector.broadcast %c500_i32 : i32 to vector<512x128xi32>
      %49 = arith.cmpi slt, %47, %48 : vector<512x128xi32>
      %cst_32 = arith.constant 0.000000e+00 : f32
      %50 = vector.broadcast %cst_32 : f32 to vector<512x128xf32>
      %51 = arith.select %49, %37, %50 : vector<512x128xi1>, vector<512x128xf32>
      %52 = arith.mulf %51, %51 : vector<512x128xf32>
      %cst_33 = arith.constant dense<0.000000e+00> : vector<128xf32>
      %53 = vector.multi_reduction <add>, %52, %cst_33 [0] : vector<512x128xf32> to vector<128xf32>
      %54 = vector.shape_cast %53 : vector<128xf32> to vector<1x128xf32>
      %55 = vector.shape_cast %54 : vector<1x128xf32> to vector<1x1x128xf32>
      %c0_34 = arith.constant 0 : index
      %c0_35 = arith.constant 0 : index
      %c0_36 = arith.constant 0 : index
      %56 = vector.load %arg12[%c0_34, %c0_35, %c0_36] : memref<1x1x128xf32, #tpu.memory_space<vmem>>, vector<1x1x128xf32>
      tpu.vector_store %arg12[%c0_34, %c0_35, %c0_36], %55 {strides = array<i32>} : memref<1x1x128xf32, #tpu.memory_space<vmem>>, vector<1x1x128xf32>,
    } else {
    }
    %c0_i32_30 = arith.constant 0 : i32
    %41 = arith.cmpi slt, %arg0, %c0_i32_30 : i32
    %42 = arith.extui %41 : i1 to i32
    %c0_i32_31 = arith.constant 0 : i32
    %43 = arith.cmpi ne, %42, %c0_i32_31 : i32
    scf.if %43 {
      %44 = arith.mulf %37, %37 : vector<512x128xf32>
      %cst_32 = arith.constant dense<0.000000e+00> : vector<128xf32>
      %45 = vector.multi_reduction <add>, %44, %cst_32 [0] : vector<512x128xf32> to vector<128xf32>
      %46 = vector.shape_cast %45 : vector<128xf32> to vector<1x128xf32>
      %47 = vector.shape_cast %46 : vector<1x128xf32> to vector<1x1x128xf32>
      %c0_33 = arith.constant 0 : index
      %c0_34 = arith.constant 0 : index
      %c0_35 = arith.constant 0 : index
      %48 = vector.load %arg12[%c0_33, %c0_34, %c0_35] : memref<1x1x128xf32, #tpu.memory_space<vmem>>, vector<1x1x128xf32>
      tpu.vector_store %arg12[%c0_33, %c0_34, %c0_35], %47 {strides = array<i32>} : memref<1x1x128xf32, #tpu.memory_space<vmem>>, vector<1x1x128xf32>,
    } else {
    }
    return
  }
  func.func @transform_0(%arg0: i32) -> (i32, i32) {
    %c0_i32 = arith.constant 0 : i32
    %c0_i32_0 = arith.constant 0 : i32
    return %arg0, %c0_i32 : i32, i32
  }
  func.func @transform_1(%arg0: i32) -> (i32, i32) {
    %c0_i32 = arith.constant 0 : i32
    %c0_i32_0 = arith.constant 0 : i32
    %c0_i32_1 = arith.constant 0 : i32
    return %c0_i32, %c0_i32_0 : i32, i32
  }
  func.func @transform_2(%arg0: i32) -> (i32, i32) {
    %c0_i32 = arith.constant 0 : i32
    %c0_i32_0 = arith.constant 0 : i32
    %c0_i32_1 = arith.constant 0 : i32
    return %c0_i32, %c0_i32_0 : i32, i32
  }
  func.func @transform_3(%arg0: i32) -> (i32, i32) {
    %c0_i32 = arith.constant 0 : i32
    %c0_i32_0 = arith.constant 0 : i32
    %c0_i32_1 = arith.constant 0 : i32
    return %c0_i32, %c0_i32_0 : i32, i32
  }
  func.func @transform_4(%arg0: i32) -> (i32, i32) {
    %c0_i32 = arith.constant 0 : i32
    %c0_i32_0 = arith.constant 0 : i32
    %c0_i32_1 = arith.constant 0 : i32
    return %c0_i32, %c0_i32_0 : i32, i32
  }
  func.func @transform_5(%arg0: i32) -> (i32, i32) {
    %c0_i32 = arith.constant 0 : i32
    %c0_i32_0 = arith.constant 0 : i32
    %c0_i32_1 = arith.constant 0 : i32
    return %c0_i32, %c0_i32_0 : i32, i32
  }
  func.func @transform_6(%arg0: i32) -> (i32, i32) {
    %c0_i32 = arith.constant 0 : i32
    %c0_i32_0 = arith.constant 0 : i32
    %c0_i32_1 = arith.constant 0 : i32
    return %c0_i32, %c0_i32_0 : i32, i32
  }
  func.func @transform_7(%arg0: i32) -> (i32, i32) {
    %c0_i32 = arith.constant 0 : i32
    %c0_i32_0 = arith.constant 0 : i32
    %c0_i32_1 = arith.constant 0 : i32
    return %c0_i32, %c0_i32_0 : i32, i32
  }
  func.func @transform_8(%arg0: i32) -> (i32, i32) {
    %c0_i32 = arith.constant 0 : i32
    %c0_i32_0 = arith.constant 0 : i32
    %c0_i32_1 = arith.constant 0 : i32
    return %c0_i32, %c0_i32_0 : i32, i32
  }
  func.func @transform_9(%arg0: i32) -> (i32, i32) {
    %c0_i32 = arith.constant 0 : i32
    %c0_i32_0 = arith.constant 0 : i32
    %c0_i32_1 = arith.constant 0 : i32
    return %c0_i32, %c0_i32_0 : i32, i32
  }
  func.func @transform_10(%arg0: i32) -> (i32, i32) {
    %c0_i32 = arith.constant 0 : i32
    %c0_i32_0 = arith.constant 0 : i32
    %c0_i32_1 = arith.constant 0 : i32
    return %c0_i32, %c0_i32_0 : i32, i32
  }
  func.func @transform_11(%arg0: i32) -> (i32, i32, i32) {
    %c0_i32 = arith.constant 0 : i32
    %c0_i32_0 = arith.constant 0 : i32
    %c0_i32_1 = arith.constant 0 : i32
    return %arg0, %c0_i32, %c0_i32_0 : i32, i32, i32
  }
}

module attributes {stable_mosaic.version = 11 : i64} {
  func.func @_project_normalize_kernel(%arg0: i32, %arg1: memref<512x16xbf16, #tpu.memory_space<vmem>>, %arg2: memref<16x32xbf16, #tpu.memory_space<vmem>>, %arg3: memref<1x32xf32, #tpu.memory_space<vmem>>, %arg4: memref<32x32xbf16, #tpu.memory_space<vmem>>, %arg5: memref<1x32xf32, #tpu.memory_space<vmem>>, %arg6: memref<32x32xbf16, #tpu.memory_space<vmem>>, %arg7: memref<1x32xf32, #tpu.memory_space<vmem>>, %arg8: memref<32x32xbf16, #tpu.memory_space<vmem>>, %arg9: memref<1x32xf32, #tpu.memory_space<vmem>>, %arg10: memref<32x128xbf16, #tpu.memory_space<vmem>>, %arg11: memref<1x128xf32, #tpu.memory_space<vmem>>, %arg12: memref<1x128xf32, #tpu.memory_space<vmem>>, %arg13: memref<512x128xf32, #tpu.memory_space<vmem>>) attributes {dimension_semantics = [#tpu.dimension_semantics<parallel>], iteration_bounds = array<i64: 1>, scalar_prefetch = 0 : i64, scratch_operands = 0 : i64, tpu.core_type = #tpu.core_type<tc>, window_params = [{transform_indices = @transform_0, window_bounds = array<i64: 512, 16>}, {pipeline_mode = #tpu.pipeline_mode<synchronous>, transform_indices = @transform_1, window_bounds = array<i64: 16, 32>}, {pipeline_mode = #tpu.pipeline_mode<synchronous>, transform_indices = @transform_2, window_bounds = array<i64: 1, 32>}, {pipeline_mode = #tpu.pipeline_mode<synchronous>, transform_indices = @transform_3, window_bounds = array<i64: 32, 32>}, {pipeline_mode = #tpu.pipeline_mode<synchronous>, transform_indices = @transform_4, window_bounds = array<i64: 1, 32>}, {pipeline_mode = #tpu.pipeline_mode<synchronous>, transform_indices = @transform_5, window_bounds = array<i64: 32, 32>}, {pipeline_mode = #tpu.pipeline_mode<synchronous>, transform_indices = @transform_6, window_bounds = array<i64: 1, 32>}, {pipeline_mode = #tpu.pipeline_mode<synchronous>, transform_indices = @transform_7, window_bounds = array<i64: 32, 32>}, {pipeline_mode = #tpu.pipeline_mode<synchronous>, transform_indices = @transform_8, window_bounds = array<i64: 1, 32>}, {pipeline_mode = #tpu.pipeline_mode<synchronous>, transform_indices = @transform_9, window_bounds = array<i64: 32, 128>}, {pipeline_mode = #tpu.pipeline_mode<synchronous>, transform_indices = @transform_10, window_bounds = array<i64: 1, 128>}, {pipeline_mode = #tpu.pipeline_mode<synchronous>, transform_indices = @transform_11, window_bounds = array<i64: 1, 128>}, {transform_indices = @transform_12, window_bounds = array<i64: 512, 128>}]} {
    %c0 = arith.constant 0 : index
    %c0_0 = arith.constant 0 : index
    %0 = vector.load %arg1[%c0, %c0_0] : memref<512x16xbf16, #tpu.memory_space<vmem>>, vector<512x16xbf16>
    %c0_1 = arith.constant 0 : index
    %c0_2 = arith.constant 0 : index
    %1 = vector.load %arg2[%c0_1, %c0_2] : memref<16x32xbf16, #tpu.memory_space<vmem>>, vector<16x32xbf16>
    %cst = arith.constant dense<0.000000e+00> : vector<512x32xf32>
    %2 = tpu.matmul %0, %1, %cst {dimension_numbers = #tpu.dot_dimension_numbers<[1], [0], [0], [1], [0, 0, 1, 1], [], []>} : vector<512x16xbf16>, vector<16x32xbf16>, vector<512x32xf32> -> vector<512x32xf32>
    %c0_3 = arith.constant 0 : index
    %c0_4 = arith.constant 0 : index
    %3 = vector.load %arg3[%c0_3, %c0_4] : memref<1x32xf32, #tpu.memory_space<vmem>>, vector<1x32xf32>
    %4 = vector.broadcast %3 : vector<1x32xf32> to vector<512x32xf32>
    %5 = arith.addf %2, %4 : vector<512x32xf32>
    %cst_5 = arith.constant 0.000000e+00 : f32
    %6 = vector.broadcast %cst_5 : f32 to vector<512x32xf32>
    %7 = arith.maximumf %5, %6 : vector<512x32xf32>
    %8 = arith.truncf %7 : vector<512x32xf32> to vector<512x32xbf16>
    %c0_6 = arith.constant 0 : index
    %c0_7 = arith.constant 0 : index
    %9 = vector.load %arg4[%c0_6, %c0_7] : memref<32x32xbf16, #tpu.memory_space<vmem>>, vector<32x32xbf16>
    %cst_8 = arith.constant dense<0.000000e+00> : vector<512x32xf32>
    %10 = tpu.matmul %8, %9, %cst_8 {dimension_numbers = #tpu.dot_dimension_numbers<[1], [0], [0], [1], [0, 0, 1, 1], [], []>} : vector<512x32xbf16>, vector<32x32xbf16>, vector<512x32xf32> -> vector<512x32xf32>
    %c0_9 = arith.constant 0 : index
    %c0_10 = arith.constant 0 : index
    %11 = vector.load %arg5[%c0_9, %c0_10] : memref<1x32xf32, #tpu.memory_space<vmem>>, vector<1x32xf32>
    %12 = vector.broadcast %11 : vector<1x32xf32> to vector<512x32xf32>
    %13 = arith.addf %10, %12 : vector<512x32xf32>
    %cst_11 = arith.constant 0.000000e+00 : f32
    %14 = vector.broadcast %cst_11 : f32 to vector<512x32xf32>
    %15 = arith.maximumf %13, %14 : vector<512x32xf32>
    %16 = arith.truncf %15 : vector<512x32xf32> to vector<512x32xbf16>
    %c0_12 = arith.constant 0 : index
    %c0_13 = arith.constant 0 : index
    %17 = vector.load %arg6[%c0_12, %c0_13] : memref<32x32xbf16, #tpu.memory_space<vmem>>, vector<32x32xbf16>
    %cst_14 = arith.constant dense<0.000000e+00> : vector<512x32xf32>
    %18 = tpu.matmul %16, %17, %cst_14 {dimension_numbers = #tpu.dot_dimension_numbers<[1], [0], [0], [1], [0, 0, 1, 1], [], []>} : vector<512x32xbf16>, vector<32x32xbf16>, vector<512x32xf32> -> vector<512x32xf32>
    %c0_15 = arith.constant 0 : index
    %c0_16 = arith.constant 0 : index
    %19 = vector.load %arg7[%c0_15, %c0_16] : memref<1x32xf32, #tpu.memory_space<vmem>>, vector<1x32xf32>
    %20 = vector.broadcast %19 : vector<1x32xf32> to vector<512x32xf32>
    %21 = arith.addf %18, %20 : vector<512x32xf32>
    %cst_17 = arith.constant 0.000000e+00 : f32
    %22 = vector.broadcast %cst_17 : f32 to vector<512x32xf32>
    %23 = arith.maximumf %21, %22 : vector<512x32xf32>
    %24 = arith.truncf %23 : vector<512x32xf32> to vector<512x32xbf16>
    %c0_18 = arith.constant 0 : index
    %c0_19 = arith.constant 0 : index
    %25 = vector.load %arg8[%c0_18, %c0_19] : memref<32x32xbf16, #tpu.memory_space<vmem>>, vector<32x32xbf16>
    %cst_20 = arith.constant dense<0.000000e+00> : vector<512x32xf32>
    %26 = tpu.matmul %24, %25, %cst_20 {dimension_numbers = #tpu.dot_dimension_numbers<[1], [0], [0], [1], [0, 0, 1, 1], [], []>} : vector<512x32xbf16>, vector<32x32xbf16>, vector<512x32xf32> -> vector<512x32xf32>
    %c0_21 = arith.constant 0 : index
    %c0_22 = arith.constant 0 : index
    %27 = vector.load %arg9[%c0_21, %c0_22] : memref<1x32xf32, #tpu.memory_space<vmem>>, vector<1x32xf32>
    %28 = vector.broadcast %27 : vector<1x32xf32> to vector<512x32xf32>
    %29 = arith.addf %26, %28 : vector<512x32xf32>
    %cst_23 = arith.constant 0.000000e+00 : f32
    %30 = vector.broadcast %cst_23 : f32 to vector<512x32xf32>
    %31 = arith.maximumf %29, %30 : vector<512x32xf32>
    %32 = arith.truncf %31 : vector<512x32xf32> to vector<512x32xbf16>
    %c0_24 = arith.constant 0 : index
    %c0_25 = arith.constant 0 : index
    %33 = vector.load %arg10[%c0_24, %c0_25] : memref<32x128xbf16, #tpu.memory_space<vmem>>, vector<32x128xbf16>
    %cst_26 = arith.constant dense<0.000000e+00> : vector<512x128xf32>
    %34 = tpu.matmul %32, %33, %cst_26 {dimension_numbers = #tpu.dot_dimension_numbers<[1], [0], [0], [1], [0, 0, 1, 1], [], []>} : vector<512x32xbf16>, vector<32x128xbf16>, vector<512x128xf32> -> vector<512x128xf32>
    %c0_27 = arith.constant 0 : index
    %c0_28 = arith.constant 0 : index
    %35 = vector.load %arg11[%c0_27, %c0_28] : memref<1x128xf32, #tpu.memory_space<vmem>>, vector<1x128xf32>
    %36 = vector.broadcast %35 : vector<1x128xf32> to vector<512x128xf32>
    %37 = arith.addf %34, %36 : vector<512x128xf32>
    %c0_29 = arith.constant 0 : index
    %c0_30 = arith.constant 0 : index
    %38 = vector.load %arg12[%c0_29, %c0_30] : memref<1x128xf32, #tpu.memory_space<vmem>>, vector<1x128xf32>
    %39 = vector.broadcast %38 : vector<1x128xf32> to vector<512x128xf32>
    %40 = arith.mulf %37, %39 : vector<512x128xf32>
    %c0_31 = arith.constant 0 : index
    %c0_32 = arith.constant 0 : index
    %41 = vector.load %arg13[%c0_31, %c0_32] : memref<512x128xf32, #tpu.memory_space<vmem>>, vector<512x128xf32>
    tpu.vector_store %arg13[%c0_31, %c0_32], %40 {strides = array<i32>} : memref<512x128xf32, #tpu.memory_space<vmem>>, vector<512x128xf32>,
    return
  }
  func.func @transform_0(%arg0: i32) -> (i32, i32) {
    %c0_i32 = arith.constant 0 : i32
    %c0_i32_0 = arith.constant 0 : i32
    return %arg0, %c0_i32 : i32, i32
  }
  func.func @transform_1(%arg0: i32) -> (i32, i32) {
    %c0_i32 = arith.constant 0 : i32
    %c0_i32_0 = arith.constant 0 : i32
    %c0_i32_1 = arith.constant 0 : i32
    return %c0_i32, %c0_i32_0 : i32, i32
  }
  func.func @transform_2(%arg0: i32) -> (i32, i32) {
    %c0_i32 = arith.constant 0 : i32
    %c0_i32_0 = arith.constant 0 : i32
    %c0_i32_1 = arith.constant 0 : i32
    return %c0_i32, %c0_i32_0 : i32, i32
  }
  func.func @transform_3(%arg0: i32) -> (i32, i32) {
    %c0_i32 = arith.constant 0 : i32
    %c0_i32_0 = arith.constant 0 : i32
    %c0_i32_1 = arith.constant 0 : i32
    return %c0_i32, %c0_i32_0 : i32, i32
  }
  func.func @transform_4(%arg0: i32) -> (i32, i32) {
    %c0_i32 = arith.constant 0 : i32
    %c0_i32_0 = arith.constant 0 : i32
    %c0_i32_1 = arith.constant 0 : i32
    return %c0_i32, %c0_i32_0 : i32, i32
  }
  func.func @transform_5(%arg0: i32) -> (i32, i32) {
    %c0_i32 = arith.constant 0 : i32
    %c0_i32_0 = arith.constant 0 : i32
    %c0_i32_1 = arith.constant 0 : i32
    return %c0_i32, %c0_i32_0 : i32, i32
  }
  func.func @transform_6(%arg0: i32) -> (i32, i32) {
    %c0_i32 = arith.constant 0 : i32
    %c0_i32_0 = arith.constant 0 : i32
    %c0_i32_1 = arith.constant 0 : i32
    return %c0_i32, %c0_i32_0 : i32, i32
  }
  func.func @transform_7(%arg0: i32) -> (i32, i32) {
    %c0_i32 = arith.constant 0 : i32
    %c0_i32_0 = arith.constant 0 : i32
    %c0_i32_1 = arith.constant 0 : i32
    return %c0_i32, %c0_i32_0 : i32, i32
  }
  func.func @transform_8(%arg0: i32) -> (i32, i32) {
    %c0_i32 = arith.constant 0 : i32
    %c0_i32_0 = arith.constant 0 : i32
    %c0_i32_1 = arith.constant 0 : i32
    return %c0_i32, %c0_i32_0 : i32, i32
  }
  func.func @transform_9(%arg0: i32) -> (i32, i32) {
    %c0_i32 = arith.constant 0 : i32
    %c0_i32_0 = arith.constant 0 : i32
    %c0_i32_1 = arith.constant 0 : i32
    return %c0_i32, %c0_i32_0 : i32, i32
  }
  func.func @transform_10(%arg0: i32) -> (i32, i32) {
    %c0_i32 = arith.constant 0 : i32
    %c0_i32_0 = arith.constant 0 : i32
    %c0_i32_1 = arith.constant 0 : i32
    return %c0_i32, %c0_i32_0 : i32, i32
  }
  func.func @transform_11(%arg0: i32) -> (i32, i32) {
    %c0_i32 = arith.constant 0 : i32
    %c0_i32_0 = arith.constant 0 : i32
    %c0_i32_1 = arith.constant 0 : i32
    return %c0_i32, %c0_i32_0 : i32, i32
  }
  func.func @transform_12(%arg0: i32) -> (i32, i32) {
    %c0_i32 = arith.constant 0 : i32
    %c0_i32_0 = arith.constant 0 : i32
    return %arg0, %c0_i32 : i32, i32
  }
}

</mosaic_0001>

<bundles_post_ra>
// kernel: clcpnet_forward.3
= control target key start
LH: loop header
LB: loop body
LE: loop exit
PB: predicated region body
PF: predicated region fallthrough
CT: control target
= control target key end

     0   :  { %vm281_vm0 = vcmask 130048   ;;  %vm786_vm1 = vcmask 261120   ;;  %s4594_s1 = inlined_call_operand.vmem [shape: bf16[16,32], index: 1, kind: input, shape index: {}]   ;;  %s4595_s0 = inlined_call_operand.vmem [shape: bf16[512,16], index: 0, kind: input, shape index: {}]   ;;  %s4596_s3 = inlined_call_operand.vmem [shape: bf16[32,32], index: 3, kind: input, shape index: {}]   ;;  %s4597_s2 = inlined_call_operand.vmem [shape: f32[1,32], index: 2, kind: input, shape index: {}]   ;;  %s4598_s5 = inlined_call_operand.vmem [shape: bf16[32,32], index: 5, kind: input, shape index: {}]   ;;  %s4599_s7 = inlined_call_operand.vmem [shape: bf16[32,32], index: 7, kind: input, shape index: {}]   ;;  %s4600_s4 = inlined_call_operand.vmem [shape: f32[1,32], index: 4, kind: input, shape index: {}]   ;;  %s4601_s9 = inlined_call_operand.vmem [shape: bf16[32,128], index: 9, kind: input, shape index: {}]   ;;  %s4602_s6 = inlined_call_operand.vmem [shape: f32[1,32], index: 6, kind: input, shape index: {}]   ;;  %s4603_s8 = inlined_call_operand.vmem [shape: f32[1,32], index: 8, kind: input, shape index: {}]   ;;  %s4604_s10 = inlined_call_operand.vmem [shape: f32[1,128], index: 10, kind: input, shape index: {}]   ;;  %s4605_s11 = inlined_call_operand.vmem [shape: f32[1,128], index: 11, kind: input, shape index: {}]   ;;  %s4606_s12 = inlined_call_operand.vmem [shape: f32[512,128], index: 12, kind: output, shape index: {}]  }
   0x1   :  { %v3539_v0 = vld [vmem:[%s4594_s1] sm:$0xff]   ;;  %v3541_v2 = vld [vmem:[%s4595_s0 + $0x8] sm:$0xff]   ;;  %v3542_v3 = vld [vmem:[%s4595_s0 + $0x10] sm:$0xff]  }
   0x2   :  { %v3540_v1 = vld [vmem:[%s4595_s0] sm:$0xff]   ;;  %3199 = vmatprep.subr.bf16.mxu0 %v3539_v0  ;;  %3537 = vmatprep.subr.bf16.mxu1 %v3539_v0  ;;  %v3543_v4 = vld [vmem:[%s4595_s0 + $0x18] sm:$0xff]   ;;  %v3545_v6 = vld [vmem:[%s4595_s0 + $0x28] sm:$0xff]  }
   0x3   :  { %3200 = vmatpush3.bf16.msra.mxu0 %v3539_v0  ;;  %3201 = vmatprep.mubr.msk.bf16.mxu0 %vm281_vm0, %v3540_v1  ;;  %v3544_v5 = vld [vmem:[%s4595_s0 + $0x20] sm:$0xff]   ;;  %v3546_v7 = vld [vmem:[%s4595_s0 + $0x30] sm:$0xff]   ;;  %v3557_v9 = vld [vmem:[%s4595_s0 + $0x88] sm:$0xff]  }
   0x4   :  { %3538 = vmatpush3.bf16.msra.mxu1 %v3539_v0  ;;  %v3556_v8 = vld [vmem:[%s4595_s0 + $0x80] sm:$0xff]   ;;  %v3558_v10 = vld [vmem:[%s4595_s0 + $0x90] sm:$0xff]   ;;  %v3559_v11 = vld [vmem:[%s4595_s0 + $0x98] sm:$0xff]  }
   0x5   :  { %3233 = vmatprep.mubr.msk.bf16.mxu1 %vm281_vm0, %v3556_v8  ;;  %v3560_v12 = vld [vmem:[%s4595_s0 + $0xa0] sm:$0xff]   ;;  %v3547_v13 = vld [vmem:[%s4595_s0 + $0x38] sm:$0xff]   ;;  %v3561_v15 = vld [vmem:[%s4595_s0 + $0xa8] sm:$0xff]  }
   0x6   :  { %3202 = vmatmul.mubr.msk.bf16.vlgmr.msra.gmra.mxu0 %vm281_vm0, %v3541_v2  ;;  %v3548_v14 = vld [vmem:[%s4595_s0 + $0x40] sm:$0xff]   ;;  %v3549_v16 = vld [vmem:[%s4595_s0 + $0x48] sm:$0xff]   ;;  %v3562_v17 = vld [vmem:[%s4595_s0 + $0xb0] sm:$0xff]  }
   0x7   :  { %3205 = vmatprep.mubr.msk.bf16.mxu0 %vm281_vm0, %v3542_v3  ;;  %3234 = vmatmul.mubr.msk.bf16.vlgmr.msra.gmra.mxu1 %vm281_vm0, %v3557_v9  ;;  %v3572_v18 = vld [vmem:[%s4596_s3 + $0x8] sm:$0xff]   ;;  %v3573_v19 = vld [vmem:[%s4596_s3] sm:$0xff]   ;;  %v3550_v20 = vld [vmem:[%s4595_s0 + $0x50] sm:$0xff]  }
   0x8   :  { %3237 = vmatprep.mubr.msk.bf16.mxu1 %vm281_vm0, %v3558_v10  ;;  %3265 = vmatprep.subr.bf16.mxu1 %v3572_v18  ;;  %v3563_v21 = vld [vmem:[%s4595_s0 + $0xb8] sm:$0xff]   ;;  %v3564_v22 = vld [vmem:[%s4595_s0 + $0xc0] sm:$0xff]   ;;  %v3565_v25 = vld [vmem:[%s4595_s0 + $0xc8] sm:$0xff]  }
   0x9   :  { %3266 = vmatpush3.bf16.msra.mxu1 %v3572_v18  ;;  %v3551_v23 = vld [vmem:[%s4595_s0 + $0x58] sm:$0xff]   ;;  %v3552_v24 = vld [vmem:[%s4595_s0 + $0x60] sm:$0xff]   ;;  %v3566_v26 = vld [vmem:[%s4595_s0 + $0xd0] sm:$0xff]  }
   0xa   :  { %3267 = vmatprep.subr.bf16.mxu1 %v3573_v19  ;;  %v3553_v27 = vld [vmem:[%s4595_s0 + $0x68] sm:$0xff]   ;;  %v3554_v28 = vld [vmem:[%s4595_s0 + $0x70] sm:$0xff]   ;;  %v3567_v29 = vld [vmem:[%s4595_s0 + $0xd8] sm:$0xff]  }
   0xb   :  { %v3568_v30 = vld [vmem:[%s4595_s0 + $0xe0] sm:$0xff]   ;;  %v3555_v31 = vld [vmem:[%s4595_s0 + $0x78] sm:$0xff]   ;;  %v3569_v32 = vld [vmem:[%s4595_s0 + $0xe8] sm:$0xff]  }
   0xc   :  { %v3570_v33 = vld [vmem:[%s4595_s0 + $0xf0] sm:$0xff]   ;;  %v3571_v34 = vld [vmem:[%s4595_s0 + $0xf8] sm:$0xff]   ;;  %v3785_v37 = vld [vmem:[%s4597_s2] ss:$0 sm:$0xff] }
   0xd   :  { %3268 = vmatpush3.bf16.msra.mxu1 %v3573_v19  ;;  %v3574_v44 = vld [vmem:[%s4598_s5 + $0x8] sm:$0xff]   ;;  %v3575_v47 = vld [vmem:[%s4598_s5] sm:$0xff]  }
   0xe   :  { %3206 = vmatmul.mubr.msk.bf16.gmra.mxu0 %vm281_vm0, %v3543_v4  ;;  %3333 = vmatprep.subr.bf16.mxu0 %v3574_v44 }
   0xf   :  { %3209 = vmatprep.mubr.msk.bf16.mxu0 %vm281_vm0, %v3544_v5  ;;  %3238 = vmatmul.mubr.msk.bf16.gmra.mxu1 %vm281_vm0, %v3559_v11 }
  0x10   :  { %3241 = vmatprep.mubr.msk.bf16.mxu1 %vm281_vm0, %v3560_v12  ;;  %3334 = vmatpush3.bf16.msra.mxu0 %v3574_v44 }
  0x11   :  { %3335 = vmatprep.subr.bf16.mxu0 %v3575_v47 }
  0x14   :  { %3336 = vmatpush3.bf16.msra.mxu0 %v3575_v47 }
  0x16   :  { %3210 = vmatmul.mubr.msk.bf16.gmra.mxu0 %vm281_vm0, %v3545_v6 }
  0x17   :  { %3213 = vmatprep.mubr.msk.bf16.mxu0 %vm281_vm0, %v3546_v7  ;;  %3242 = vmatmul.mubr.msk.bf16.gmra.mxu1 %vm281_vm0, %v3561_v15 }
  0x18   :  { %3245 = vmatprep.mubr.msk.bf16.mxu1 %vm281_vm0, %v3562_v17 }
  0x1e   :  { %3214 = vmatmul.mubr.msk.bf16.gmra.mxu0 %vm281_vm0, %v3547_v13 }
  0x1f   :  { %3217 = vmatprep.mubr.msk.bf16.mxu0 %vm281_vm0, %v3548_v14  ;;  %3246 = vmatmul.mubr.msk.bf16.gmra.mxu1 %vm281_vm0, %v3563_v21 }
  0x20   :  { %3249 = vmatprep.mubr.msk.bf16.mxu1 %vm281_vm0, %v3564_v22 }
  0x26   :  { %3218 = vmatmul.mubr.msk.bf16.gmra.mxu0 %vm281_vm0, %v3549_v16 }
  0x27   :  { %3221 = vmatprep.mubr.msk.bf16.mxu0 %vm281_vm0, %v3550_v20  ;;  %3250 = vmatmul.mubr.msk.bf16.gmra.mxu1 %vm281_vm0, %v3565_v25 }
  0x28   :  { %3253 = vmatprep.mubr.msk.bf16.mxu1 %vm281_vm0, %v3566_v26 }
  0x2e   :  { %3222 = vmatmul.mubr.msk.bf16.gmra.mxu0 %vm281_vm0, %v3551_v23 }
  0x2f   :  { %3225 = vmatprep.mubr.msk.bf16.mxu0 %vm281_vm0, %v3552_v24  ;;  %3254 = vmatmul.mubr.msk.bf16.gmra.mxu1 %vm281_vm0, %v3567_v29 }
  0x30   :  { %3257 = vmatprep.mubr.msk.bf16.mxu1 %vm281_vm0, %v3568_v30 }
  0x36   :  { %3226 = vmatmul.mubr.msk.bf16.gmra.mxu0 %vm281_vm0, %v3553_v27 }
  0x37   :  { %3229 = vmatprep.mubr.msk.bf16.mxu0 %vm281_vm0, %v3554_v28  ;;  %3258 = vmatmul.mubr.msk.bf16.gmra.mxu1 %vm281_vm0, %v3569_v32 }
  0x38   :  { %3261 = vmatprep.mubr.msk.bf16.mxu1 %vm281_vm0, %v3570_v33 }
  0x3e   :  { %3230 = vmatmul.mubr.msk.bf16.gmra.mxu0 %vm281_vm0, %v3555_v31 }
  0x3f   :  { %3262 = vmatmul.mubr.msk.bf16.gmra.mxu1 %vm281_vm0, %v3571_v34 }
  0xc6   :  { %v3203_v35 = vpop.f32.mrf.mxu0 }
  0xc7   :  { %v421_v41 = vadd.f32 %v3203_v35, %v3785_v37  ;;  %v3802_v59 = vpop.f32.mrf.mxu1 }
  0xc8   :  { %v412_v36 = vpop.f32.mrf.mxu0 }
  0xc9   :  { %v413_v39 = vadd.f32 %v3785_v37, %v412_v36  ;;  %v669_v50 = vmax.f32 %v421_v41, 0.0  ;;  %v3805_v63 = vpop.f32.mrf.mxu1 }
  0xca   :  { %v3204_v38 = vpop.f32.mrf.mxu0 }
  0xcb   :  { %v424_v40 = vadd.f32 %v3204_v38, %v3785_v37  ;;  %v667_v48 = vmax.f32 %v413_v39, 0.0  ;;  %v3807_v4 = vpop.f32.mrf.mxu1 }
  0xcc   :  { %v415_v42 = vpop.f32.mrf.mxu0 }
  0xcd   :  { %v416_v43 = vadd.f32 %v3785_v37, %v415_v42  ;;  %v670_v45 = vmax.f32 %v424_v40, 0.0  ;;  %v3809_v8 = vpop.f32.mrf.mxu1 }
  0xce   :  { %v3207_v46 = vpop.f32.mrf.mxu0 }
  0xcf   :  { %v668_v49 = vmax.f32 %v416_v43, 0.0  ;;  %v732_v53 = vpack.c.bf16 %v670_v45, %v669_v50  ;;  %v437_v57 = vadd.f32 %v3207_v46, %v3785_v37  ;;  %v3816_v13 = vpop.f32.mrf.mxu1 }
  0xd0   :  { %v428_v51 = vpop.f32.mrf.mxu0 }
  0xd1   :  { %v731_v52 = vpack.c.bf16 %v668_v49, %v667_v48  ;;  %v429_v55 = vadd.f32 %v3785_v37, %v428_v51  ;;  %v673_v2 = vmax.f32 %v437_v57, 0.0  ;;  %v3819_v17 = vpop.f32.mrf.mxu1 }
  0xd2   :  { %v3208_v54 = vpop.f32.mrf.mxu0 }
  0xd3   :  { %v440_v56 = vadd.f32 %v3208_v54, %v3785_v37  ;;  %3269 = vmatprep.mubr.msk.bf16.mxu1 %vm786_vm1, %v731_v52  ;;  %v671_v0 = vmax.f32 %v429_v55, 0.0  ;;  %v3821_v22 = vpop.f32.mrf.mxu1 }
  0xd4   :  { %v431_v58 = vpop.f32.mrf.mxu0  ;;  %3270 = vmatmul.mubr.msk.bf16.vlgmr.msra.gmra.mxu1 %vm786_vm1, %v732_v53 }
  0xd5   :  { %v432_v60 = vadd.f32 %v3785_v37, %v431_v58  ;;  %v674_v61 = vmax.f32 %v440_v56, 0.0  ;;  %v3823_v26 = vpop.f32.mrf.mxu1 }
  0xd6   :  { %v3211_v62 = vpop.f32.mrf.mxu0 }
  0xd7   :  { %v672_v1 = vmax.f32 %v432_v60, 0.0  ;;  %v734_v6 = vpack.c.bf16 %v674_v61, %v673_v2  ;;  %v453_v11 = vadd.f32 %v3211_v62, %v3785_v37  ;;  %v3830_v31 = vpop.f32.mrf.mxu1 }
  0xd8   :  { %v444_v3 = vpop.f32.mrf.mxu0 }
  0xd9   :  { %v733_v5 = vpack.c.bf16 %v672_v1, %v671_v0  ;;  %v445_v9 = vadd.f32 %v3785_v37, %v444_v3  ;;  %v677_v20 = vmax.f32 %v453_v11, 0.0  ;;  %v3833_v35 = vpop.f32.mrf.mxu1 }
  0xda   :  { %v3212_v7 = vpop.f32.mrf.mxu0 }
  0xdb   :  { %v456_v10 = vadd.f32 %v3212_v7, %v3785_v37  ;;  %3273 = vmatprep.mubr.msk.bf16.mxu1 %vm786_vm1, %v733_v5  ;;  %v675_v18 = vmax.f32 %v445_v9, 0.0  ;;  %v3835_v41 = vpop.f32.mrf.mxu1 }
  0xdc   :  { %v447_v12 = vpop.f32.mrf.mxu0  ;;  %3274 = vmatmul.mubr.msk.bf16.gmra.mxu1 %vm786_vm1, %v734_v6 }
  0xdd   :  { %v448_v14 = vadd.f32 %v3785_v37, %v447_v12  ;;  %v678_v15 = vmax.f32 %v456_v10, 0.0  ;;  %v3837_v45 = vpop.f32.mrf.mxu1 }
  0xde   :  { %v3215_v16 = vpop.f32.mrf.mxu0 }
  0xdf   :  { %v676_v19 = vmax.f32 %v448_v14, 0.0  ;;  %v736_v24 = vpack.c.bf16 %v678_v15, %v677_v20  ;;  %v469_v29 = vadd.f32 %v3215_v16, %v3785_v37  ;;  %v3844_v50 = vpop.f32.mrf.mxu1 }
  0xe0   :  { %v460_v21 = vpop.f32.mrf.mxu0 }
  0xe1   :  { %v735_v23 = vpack.c.bf16 %v676_v19, %v675_v18  ;;  %v461_v27 = vadd.f32 %v3785_v37, %v460_v21  ;;  %v681_v39 = vmax.f32 %v469_v29, 0.0  ;;  %v3847_v54 = vpop.f32.mrf.mxu1 }
  0xe2   :  { %v3216_v25 = vpop.f32.mrf.mxu0 }
  0xe3   :  { %v472_v28 = vadd.f32 %v3216_v25, %v3785_v37  ;;  %3277 = vmatprep.mubr.msk.bf16.mxu1 %vm786_vm1, %v735_v23  ;;  %v679_v36 = vmax.f32 %v461_v27, 0.0  ;;  %v3849_v0 = vpop.f32.mrf.mxu1 }
  0xe4   :  { %v463_v30 = vpop.f32.mrf.mxu0  ;;  %3278 = vmatmul.mubr.msk.bf16.gmra.mxu1 %vm786_vm1, %v736_v24 }
  0xe5   :  { %v464_v32 = vadd.f32 %v3785_v37, %v463_v30  ;;  %v682_v33 = vmax.f32 %v472_v28, 0.0  ;;  %v3857_v10 = vpop.f32.mrf.mxu1 }
  0xe6   :  { %v3219_v34 = vpop.f32.mrf.mxu0 }
  0xe7   :  { %v680_v38 = vmax.f32 %v464_v32, 0.0  ;;  %v738_v43 = vpack.c.bf16 %v682_v33, %v681_v39  ;;  %v485_v48 = vadd.f32 %v3219_v34, %v3785_v37  ;;  %v3859_v20 = vpop.f32.mrf.mxu1  ;;  %v541_v39 = vadd.f32 %v3785_v37, %v3805_v63 }
  0xe8   :  { %v476_v40 = vpop.f32.mrf.mxu0 }
  0xe9   :  { %v737_v42 = vpack.c.bf16 %v680_v38, %v679_v36  ;;  %v477_v46 = vadd.f32 %v3785_v37, %v476_v40  ;;  %v685_v57 = vmax.f32 %v485_v48, 0.0  ;;  %v3867_v30 = vpop.f32.mrf.mxu1  ;;  %v544_v40 = vadd.f32 %v3785_v37, %v3809_v8 }
  0xea   :  { %v3220_v44 = vpop.f32.mrf.mxu0 }
  0xeb   :  { %v488_v47 = vadd.f32 %v3220_v44, %v3785_v37  ;;  %3281 = vmatprep.mubr.msk.bf16.mxu1 %vm786_vm1, %v737_v42  ;;  %v683_v55 = vmax.f32 %v477_v46, 0.0  ;;  %v3873_v44 = vpop.f32.mrf.mxu1 }
  0xec   :  { %v479_v49 = vpop.f32.mrf.mxu0  ;;  %3282 = vmatmul.mubr.msk.bf16.gmra.mxu1 %vm786_vm1, %v738_v43 }
  0xed   :  { %v480_v51 = vadd.f32 %v3785_v37, %v479_v49  ;;  %v686_v52 = vmax.f32 %v488_v47, 0.0 }
  0xee   :  { %v3223_v53 = vpop.f32.mrf.mxu0 }
  0xef   :  { %v684_v56 = vmax.f32 %v480_v51, 0.0  ;;  %v740_v61 = vpack.c.bf16 %v686_v52, %v685_v57  ;;  %v501_v3 = vadd.f32 %v3223_v53, %v3785_v37  ;;  %v699_v51 = vmax.f32 %v541_v39, 0.0  ;;  %v607_v53 = vpop.f32.mrf.mxu1 }
  0xf0   :  { %v492_v58 = vpop.f32.mrf.mxu0  ;;  %v700_v52 = vmax.f32 %v544_v40, 0.0  ;;  %v600_v39 = vadd.f32 %v3849_v0, %v3785_v37  ;;  %v616_v0 = vadd.f32 %v3873_v44, %v3785_v37 }
  0xf1   :  { %v739_v60 = vpack.c.bf16 %v684_v56, %v683_v55  ;;  %v493_v1 = vadd.f32 %v3785_v37, %v492_v58  ;;  %v689_v14 = vmax.f32 %v501_v3, 0.0  ;;  %v552_v3 = vadd.f32 %v3807_v4, %v3785_v37 }
  0xf2   :  { %v3224_v62 = vpop.f32.mrf.mxu0  ;;  %v576_v4 = vadd.f32 %v3785_v37, %v3837_v45  ;;  %v589_v45 = vadd.f32 %v3785_v37, %v3847_v54 }
  0xf3   :  { %v504_v2 = vadd.f32 %v3224_v62, %v3785_v37  ;;  %3285 = vmatprep.mubr.msk.bf16.mxu1 %vm786_vm1, %v739_v60  ;;  %v687_v11 = vmax.f32 %v493_v1, 0.0  ;;  %v747_v60 = vpack.c.bf16 %v700_v52, %v699_v51  ;;  %v560_v62 = vadd.f32 %v3785_v37, %v3823_v26 }
  0xf4   :  { %v495_v5 = vpop.f32.mrf.mxu0  ;;  %3286 = vmatmul.mubr.msk.bf16.gmra.mxu1 %vm786_vm1, %v740_v61  ;;  %v557_v61 = vadd.f32 %v3785_v37, %v3819_v17  ;;  %v549_v1 = vadd.f32 %v3802_v59, %v3785_v37  ;;  %v573_v59 = vadd.f32 %v3785_v37, %v3833_v35 }
  0xf5   :  { %v496_v6 = vadd.f32 %v3785_v37, %v495_v5  ;;  %v690_v7 = vmax.f32 %v504_v2, 0.0  ;;  %v3889_v5 = vpop.f32.mrf.mxu1  ;;  %v704_v17 = vmax.f32 %v560_v62, 0.0 }
  0xf6   :  { %v3227_v9 = vpop.f32.mrf.mxu0 }
  0xf7   :  { %v688_v12 = vmax.f32 %v496_v6, 0.0  ;;  %v742_v18 = vpack.c.bf16 %v690_v7, %v689_v14  ;;  %v517_v24 = vadd.f32 %v3227_v9, %v3785_v37  ;;  %v703_v6 = vmax.f32 %v557_v61, 0.0  ;;  %v620_v26 = vpop.f32.mrf.mxu1 }
  0xf8   :  { %v508_v15 = vpop.f32.mrf.mxu0  ;;  %v701_v7 = vmax.f32 %v549_v1, 0.0  ;;  %v702_v9 = vmax.f32 %v552_v3, 0.0  ;;  %v565_v14 = vadd.f32 %v3816_v13, %v3785_v37  ;;  %v592_v13 = vadd.f32 %v3785_v37, %v3857_v10 }
  0xf9   :  { %v741_v16 = vpack.c.bf16 %v688_v12, %v687_v11  ;;  %v509_v21 = vadd.f32 %v3785_v37, %v508_v15  ;;  %v693_v34 = vmax.f32 %v517_v24, 0.0  ;;  %v749_v11 = vpack.c.bf16 %v704_v17, %v703_v6 }
  0xfa   :  { %v3228_v19 = vpop.f32.mrf.mxu0  ;;  %v748_v12 = vpack.c.bf16 %v702_v9, %v701_v7  ;;  %v568_v15 = vadd.f32 %v3821_v22, %v3785_v37  ;;  %v581_v22 = vadd.f32 %v3830_v31, %v3785_v37  ;;  %v605_v10 = vadd.f32 %v3785_v37, %v3867_v30 }
  0xfb   :  { %v520_v23 = vadd.f32 %v3228_v19, %v3785_v37  ;;  %3289 = vmatprep.mubr.msk.bf16.mxu1 %vm786_vm1, %v741_v16  ;;  %v691_v32 = vmax.f32 %v509_v21, 0.0  ;;  %v3256_v16 = vpop.f32.mrf.mxu1  ;;  %v708_v19 = vmax.f32 %v576_v4, 0.0  ;;  %v705_v21 = vmax.f32 %v565_v14, 0.0 }
  0xfc   :  { %v511_v25 = vpop.f32.mrf.mxu0  ;;  %3290 = vmatmul.mubr.msk.bf16.gmra.mxu1 %vm786_vm1, %v742_v18  ;;  %v707_v18 = vmax.f32 %v573_v59, 0.0  ;;  %v632_v44 = vadd.f32 %v3256_v16, %v3785_v37 }
  0xfd   :  { %v512_v27 = vadd.f32 %v3785_v37, %v511_v25  ;;  %v694_v28 = vmax.f32 %v520_v23, 0.0  ;;  %v706_v23 = vmax.f32 %v568_v15, 0.0  ;;  %v623_v35 = vpop.f32.mrf.mxu1 }
  0xfe   :  { %v3231_v29 = vpop.f32.mrf.mxu0  ;;  %v751_v24 = vpack.c.bf16 %v708_v19, %v707_v18  ;;  %v624_v51 = vadd.f32 %v3785_v37, %v623_v35  ;;  %v722_v17 = vmax.f32 %v632_v44, 0.0 }
  0xff   :  { %v692_v33 = vmax.f32 %v512_v27, 0.0  ;;  %v744_v42 = vpack.c.bf16 %v694_v28, %v693_v34  ;;  %v533_v48 = vadd.f32 %v3231_v29, %v3785_v37  ;;  %v750_v25 = vpack.c.bf16 %v706_v23, %v705_v21  ;;  %v3259_v28 = vpop.f32.mrf.mxu1 }
 0x100   :  { %v524_v36 = vpop.f32.mrf.mxu0  ;;  %v584_v27 = vadd.f32 %v3835_v41, %v3785_v37  ;;  %v711_v29 = vmax.f32 %v589_v45, 0.0  ;;  %v597_v41 = vadd.f32 %v3844_v50, %v3785_v37  ;;  %v613_v50 = vadd.f32 %v3859_v20, %v3785_v37 }
 0x101   :  { %v743_v38 = vpack.c.bf16 %v692_v33, %v691_v32  ;;  %v525_v46 = vadd.f32 %v3785_v37, %v524_v36  ;;  %v697_v57 = vmax.f32 %v533_v48, 0.0  ;;  %v712_v32 = vmax.f32 %v592_v13, 0.0  ;;  %v636_v54 = vpop.f32.mrf.mxu1  ;;  %v3576_v13 = vld [vmem:[%s4599_s7 + $0x8] sm:$0xff]  }
 0x102   :  { %v3232_v43 = vpop.f32.mrf.mxu0  ;;  %v709_v33 = vmax.f32 %v581_v22, 0.0  ;;  %v710_v34 = vmax.f32 %v584_v27, 0.0  ;;  %v629_v20 = vadd.f32 %v3889_v5, %v3785_v37  ;;  %v645_v5 = vadd.f32 %v3259_v28, %v3785_v37  ;;  %3401 = vmatprep.subr.bf16.mxu1 %v3576_v13 }
 0x103   :  { %v536_v47 = vadd.f32 %v3232_v43, %v3785_v37  ;;  %3293 = vmatprep.mubr.msk.bf16.mxu1 %vm786_vm1, %v743_v38  ;;  %v695_v55 = vmax.f32 %v525_v46, 0.0  ;;  %v753_v36 = vpack.c.bf16 %v712_v32, %v711_v29  ;;  %v608_v38 = vadd.f32 %v3785_v37, %v607_v53  ;;  %v3260_v40 = vpop.f32.mrf.mxu1  ;;  %3402 = vmatpush3.bf16.msra.mxu1 %v3576_v13 }
 0x104   :  { %v527_v49 = vpop.f32.mrf.mxu0  ;;  %3294 = vmatmul.mubr.msk.bf16.gmra.mxu1 %vm786_vm1, %v744_v42  ;;  %v752_v31 = vpack.c.bf16 %v710_v34, %v709_v33  ;;  %v715_v42 = vmax.f32 %v605_v10, 0.0  ;;  %v713_v46 = vmax.f32 %v597_v41, 0.0  ;;  %v720_v53 = vmax.f32 %v624_v51, 0.0  ;;  %v3577_v34 = vld [vmem:[%s4599_s7] sm:$0xff]  }
 0x105   :  { %v528_v63 = vadd.f32 %v3785_v37, %v527_v49  ;;  %v698_v8 = vmax.f32 %v536_v47, 0.0  ;;  %v716_v43 = vmax.f32 %v608_v38, 0.0  ;;  %v714_v47 = vmax.f32 %v600_v39, 0.0  ;;  %v639_v48 = vpop.f32.mrf.mxu1  ;;  %3403 = vmatprep.subr.bf16.mxu1 %v3577_v34 }
 0x106   :  { %v621_v49 = vadd.f32 %v3785_v37, %v620_v26  ;;  %v640_v61 = vadd.f32 %v3785_v37, %v639_v48  ;;  %v721_v6 = vmax.f32 %v629_v20, 0.0  ;;  %v648_v4 = vadd.f32 %v3260_v40, %v3785_v37 }
 0x107   :  { %v696_v56 = vmax.f32 %v528_v63, 0.0  ;;  %v746_v2 = vpack.c.bf16 %v698_v8, %v697_v57  ;;  %v755_v30 = vpack.c.bf16 %v716_v43, %v715_v42  ;;  %v754_v63 = vpack.c.bf16 %v714_v47, %v713_v46  ;;  %v3263_v52 = vpop.f32.mrf.mxu1  ;;  %3404 = vmatpush3.bf16.msra.mxu1 %v3577_v34 }
 0x108   :  { %v719_v8 = vmax.f32 %v621_v49, 0.0  ;;  %v724_v3 = vmax.f32 %v640_v61, 0.0  ;;  %v758_v59 = vpack.c.bf16 %v722_v17, %v721_v6  ;;  %v725_v15 = vmax.f32 %v645_v5, 0.0 }
 0x109   :  { %v745_v58 = vpack.c.bf16 %v696_v56, %v695_v55  ;;  %v717_v55 = vmax.f32 %v613_v50, 0.0  ;;  %v718_v56 = vmax.f32 %v616_v0, 0.0  ;;  %v652_v57 = vpop.f32.mrf.mxu1  ;;  %v726_v16 = vmax.f32 %v648_v4, 0.0 }
 0x10a   :  { %v653_v26 = vadd.f32 %v3785_v37, %v652_v57  ;;  %v661_v21 = vadd.f32 %v3263_v52, %v3785_v37 }
 0x10b   :  { %3297 = vmatprep.mubr.msk.bf16.mxu1 %vm786_vm1, %v745_v58  ;;  %v757_v58 = vpack.c.bf16 %v720_v53, %v719_v8  ;;  %v756_v62 = vpack.c.bf16 %v718_v56, %v717_v55  ;;  %v3264_v1 = vpop.f32.mrf.mxu1  ;;  %v760_v19 = vpack.c.bf16 %v726_v16, %v725_v15 }
 0x10c   :  { %3298 = vmatmul.mubr.msk.bf16.gmra.mxu1 %vm786_vm1, %v746_v2  ;;  %v664_v23 = vadd.f32 %v3264_v1, %v3785_v37  ;;  %v729_v35 = vmax.f32 %v661_v21, 0.0 }
 0x10d   :  { %3301 = vmatprep.mubr.msk.bf16.mxu1 %vm786_vm1, %v747_v60  ;;  %v637_v60 = vadd.f32 %v3785_v37, %v636_v54  ;;  %v655_v7 = vpop.f32.mrf.mxu1 }
 0x10f   :  { %v723_v2 = vmax.f32 %v637_v60, 0.0 }
 0x111   :  { %v759_v9 = vpack.c.bf16 %v724_v3, %v723_v2 }
 0x114   :  { %3302 = vmatmul.mubr.msk.bf16.gmra.mxu1 %vm786_vm1, %v748_v12  ;;  %v727_v12 = vmax.f32 %v653_v26, 0.0 }
 0x115   :  { %3305 = vmatprep.mubr.msk.bf16.mxu1 %vm786_vm1, %v749_v11  ;;  %v656_v11 = vadd.f32 %v3785_v37, %v655_v7  ;;  %v3955_v37 = vld [vmem:[%s4600_s4] ss:$0 sm:$0xff] }
 0x117   :  { %v728_v14 = vmax.f32 %v656_v11, 0.0 }
 0x119   :  { %v761_v18 = vpack.c.bf16 %v728_v14, %v727_v12 }
 0x11c   :  { %3306 = vmatmul.mubr.msk.bf16.gmra.mxu1 %vm786_vm1, %v750_v25 }
 0x11d   :  { %3309 = vmatprep.mubr.msk.bf16.mxu1 %vm786_vm1, %v751_v24  ;;  %v730_v24 = vmax.f32 %v664_v23, 0.0 }
 0x11f   :  { %v762_v45 = vpack.c.bf16 %v730_v24, %v729_v35 }
 0x124   :  { %3310 = vmatmul.mubr.msk.bf16.gmra.mxu1 %vm786_vm1, %v752_v31 }
 0x125   :  { %3313 = vmatprep.mubr.msk.bf16.mxu1 %vm786_vm1, %v753_v36 }
 0x12c   :  { %3314 = vmatmul.mubr.msk.bf16.gmra.mxu1 %vm786_vm1, %v754_v63 }
 0x12d   :  { %3317 = vmatprep.mubr.msk.bf16.mxu1 %vm786_vm1, %v755_v30 }
 0x134   :  { %3318 = vmatmul.mubr.msk.bf16.gmra.mxu1 %vm786_vm1, %v756_v62 }
 0x135   :  { %3321 = vmatprep.mubr.msk.bf16.mxu1 %vm786_vm1, %v757_v58 }
 0x13c   :  { %3322 = vmatmul.mubr.msk.bf16.gmra.mxu1 %vm786_vm1, %v758_v59 }
 0x13d   :  { %3325 = vmatprep.mubr.msk.bf16.mxu1 %vm786_vm1, %v759_v9 }
 0x144   :  { %3326 = vmatmul.mubr.msk.bf16.gmra.mxu1 %vm786_vm1, %v760_v19 }
 0x145   :  { %3329 = vmatprep.mubr.msk.bf16.mxu1 %vm786_vm1, %v761_v18 }
 0x14c   :  { %3330 = vmatmul.mubr.msk.bf16.gmra.mxu1 %vm786_vm1, %v762_v45 }
 0x194   :  { %v3271_v25 = vpop.f32.mrf.mxu1 }
 0x195   :  { %v926_v32 = vadd.f32 %v3271_v25, %v3955_v37 }
 0x196   :  { %v917_v22 = vpop.f32.mrf.mxu1 }
 0x197   :  { %v918_v28 = vadd.f32 %v3955_v37, %v917_v22  ;;  %v1174_v41 = vmax.f32 %v926_v32, 0.0 }
 0x198   :  { %v3272_v27 = vpop.f32.mrf.mxu1 }
 0x199   :  { %v929_v29 = vadd.f32 %v3272_v27, %v3955_v37  ;;  %v1172_v38 = vmax.f32 %v918_v28, 0.0 }
 0x19a   :  { %v920_v33 = vpop.f32.mrf.mxu1 }
 0x19b   :  { %v921_v54 = vadd.f32 %v3955_v37, %v920_v33  ;;  %v1175_v36 = vmax.f32 %v929_v29, 0.0 }
 0x19c   :  { %v3275_v10 = vpop.f32.mrf.mxu1 }
 0x19d   :  { %v1173_v31 = vmax.f32 %v921_v54, 0.0  ;;  %v1237_v42 = vpack.c.bf16 %v1175_v36, %v1174_v41  ;;  %v942_v48 = vadd.f32 %v3275_v10, %v3955_v37 }
 0x19e   :  { %v933_v39 = vpop.f32.mrf.mxu1 }
 0x19f   :  { %v1236_v40 = vpack.c.bf16 %v1173_v31, %v1172_v38  ;;  %v934_v46 = vadd.f32 %v3955_v37, %v933_v39  ;;  %v1178_v52 = vmax.f32 %v942_v48, 0.0 }
 0x1a0   :  { %v3276_v43 = vpop.f32.mrf.mxu1 }
 0x1a1   :  { %v945_v47 = vadd.f32 %v3276_v43, %v3955_v37  ;;  %3337 = vmatprep.mubr.msk.bf16.mxu0 %vm786_vm1, %v1236_v40  ;;  %v1176_v50 = vmax.f32 %v934_v46, 0.0 }
 0x1a2   :  { %v936_v30 = vpop.f32.mrf.mxu1  ;;  %3338 = vmatmul.mubr.msk.bf16.vlgmr.msra.gmra.mxu0 %vm786_vm1, %v1237_v42 }
 0x1a3   :  { %v937_v49 = vadd.f32 %v3955_v37, %v936_v30  ;;  %v1179_v51 = vmax.f32 %v945_v47, 0.0 }
 0x1a4   :  { %v3279_v63 = vpop.f32.mrf.mxu1 }
 0x1a5   :  { %v1177_v0 = vmax.f32 %v937_v49, 0.0  ;;  %v1239_v55 = vpack.c.bf16 %v1179_v51, %v1178_v52  ;;  %v958_v60 = vadd.f32 %v3279_v63, %v3955_v37 }
 0x1a6   :  { %v949_v8 = vpop.f32.mrf.mxu1 }
 0x1a7   :  { %v1238_v53 = vpack.c.bf16 %v1177_v0, %v1176_v50  ;;  %v950_v57 = vadd.f32 %v3955_v37, %v949_v8  ;;  %v1182_v3 = vmax.f32 %v958_v60, 0.0 }
 0x1a8   :  { %v3280_v56 = vpop.f32.mrf.mxu1 }
 0x1a9   :  { %v961_v58 = vadd.f32 %v3280_v56, %v3955_v37  ;;  %3341 = vmatprep.mubr.msk.bf16.mxu0 %vm786_vm1, %v1238_v53  ;;  %v1180_v1 = vmax.f32 %v950_v57, 0.0 }
 0x1aa   :  { %v952_v61 = vpop.f32.mrf.mxu1  ;;  %3342 = vmatmul.mubr.msk.bf16.gmra.mxu0 %vm786_vm1, %v1239_v55 }
 0x1ab   :  { %v953_v62 = vadd.f32 %v3955_v37, %v952_v61  ;;  %v1183_v20 = vmax.f32 %v961_v58, 0.0 }
 0x1ac   :  { %v3283_v44 = vpop.f32.mrf.mxu1 }
 0x1ad   :  { %v1181_v2 = vmax.f32 %v953_v62, 0.0  ;;  %v1241_v7 = vpack.c.bf16 %v1183_v20, %v1182_v3  ;;  %v974_v59 = vadd.f32 %v3283_v44, %v3955_v37 }
 0x1ae   :  { %v965_v6 = vpop.f32.mrf.mxu1 }
 0x1af   :  { %v1240_v17 = vpack.c.bf16 %v1181_v2, %v1180_v1  ;;  %v966_v26 = vadd.f32 %v3955_v37, %v965_v6  ;;  %v1186_v18 = vmax.f32 %v974_v59, 0.0 }
 0x1b0   :  { %v3284_v9 = vpop.f32.mrf.mxu1 }
 0x1b1   :  { %v977_v11 = vadd.f32 %v3284_v9, %v3955_v37  ;;  %3345 = vmatprep.mubr.msk.bf16.mxu0 %vm786_vm1, %v1240_v17  ;;  %v1184_v15 = vmax.f32 %v966_v26, 0.0 }
 0x1b2   :  { %v968_v5 = vpop.f32.mrf.mxu1  ;;  %3346 = vmatmul.mubr.msk.bf16.gmra.mxu0 %vm786_vm1, %v1241_v7 }
 0x1b3   :  { %v969_v4 = vadd.f32 %v3955_v37, %v968_v5  ;;  %v1187_v12 = vmax.f32 %v977_v11, 0.0 }
 0x1b4   :  { %v3287_v14 = vpop.f32.mrf.mxu1 }
 0x1b5   :  { %v1185_v16 = vmax.f32 %v969_v4, 0.0  ;;  %v1243_v23 = vpack.c.bf16 %v1187_v12, %v1186_v18  ;;  %v990_v13 = vadd.f32 %v3287_v14, %v3955_v37 }
 0x1b6   :  { %v981_v19 = vpop.f32.mrf.mxu1 }
 0x1b7   :  { %v1242_v21 = vpack.c.bf16 %v1185_v16, %v1184_v15  ;;  %v982_v24 = vadd.f32 %v3955_v37, %v981_v19  ;;  %v1190_v33 = vmax.f32 %v990_v13, 0.0 }
 0x1b8   :  { %v3288_v35 = vpop.f32.mrf.mxu1 }
 0x1b9   :  { %v993_v45 = vadd.f32 %v3288_v35, %v3955_v37  ;;  %3349 = vmatprep.mubr.msk.bf16.mxu0 %vm786_vm1, %v1242_v21  ;;  %v1188_v29 = vmax.f32 %v982_v24, 0.0 }
 0x1ba   :  { %v984_v25 = vpop.f32.mrf.mxu1  ;;  %3350 = vmatmul.mubr.msk.bf16.gmra.mxu0 %vm786_vm1, %v1243_v23 }
 0x1bb   :  { %v985_v22 = vadd.f32 %v3955_v37, %v984_v25  ;;  %v1191_v27 = vmax.f32 %v993_v45, 0.0 }
 0x1bc   :  { %v3291_v28 = vpop.f32.mrf.mxu1 }
 0x1bd   :  { %v1189_v32 = vmax.f32 %v985_v22, 0.0  ;;  %v1245_v36 = vpack.c.bf16 %v1191_v27, %v1190_v33  ;;  %v1006_v41 = vadd.f32 %v3291_v28, %v3955_v37 }
 0x1be   :  { %v997_v34 = vpop.f32.mrf.mxu1 }
 0x1bf   :  { %v1244_v54 = vpack.c.bf16 %v1189_v32, %v1188_v29  ;;  %v998_v38 = vadd.f32 %v3955_v37, %v997_v34  ;;  %v1194_v48 = vmax.f32 %v1006_v41, 0.0 }
 0x1c0   :  { %v3292_v10 = vpop.f32.mrf.mxu1 }
 0x1c1   :  { %v1009_v31 = vadd.f32 %v3292_v10, %v3955_v37  ;;  %3353 = vmatprep.mubr.msk.bf16.mxu0 %vm786_vm1, %v1244_v54  ;;  %v1192_v46 = vmax.f32 %v998_v38, 0.0 }
 0x1c2   :  { %v1000_v39 = vpop.f32.mrf.mxu1  ;;  %3354 = vmatmul.mubr.msk.bf16.gmra.mxu0 %vm786_vm1, %v1245_v36 }
 0x1c3   :  { %v1001_v40 = vadd.f32 %v3955_v37, %v1000_v39  ;;  %v1195_v42 = vmax.f32 %v1009_v31, 0.0 }
 0x1c4   :  { %v3295_v43 = vpop.f32.mrf.mxu1 }
 0x1c5   :  { %v1193_v47 = vmax.f32 %v1001_v40, 0.0  ;;  %v1247_v51 = vpack.c.bf16 %v1195_v42, %v1194_v48  ;;  %v1022_v52 = vadd.f32 %v3295_v43, %v3955_v37 }
 0x1c6   :  { %v1013_v30 = vpop.f32.mrf.mxu1 }
 0x1c7   :  { %v1246_v49 = vpack.c.bf16 %v1193_v47, %v1192_v46  ;;  %v1014_v50 = vadd.f32 %v3955_v37, %v1013_v30  ;;  %v1198_v60 = vmax.f32 %v1022_v52, 0.0 }
 0x1c8   :  { %v3296_v63 = vpop.f32.mrf.mxu1 }
 0x1c9   :  { %v1025_v0 = vadd.f32 %v3296_v63, %v3955_v37  ;;  %3357 = vmatprep.mubr.msk.bf16.mxu0 %vm786_vm1, %v1246_v49  ;;  %v1196_v57 = vmax.f32 %v1014_v50, 0.0 }
 0x1ca   :  { %v1016_v8 = vpop.f32.mrf.mxu1  ;;  %3358 = vmatmul.mubr.msk.bf16.gmra.mxu0 %vm786_vm1, %v1247_v51 }
 0x1cb   :  { %v1017_v53 = vadd.f32 %v3955_v37, %v1016_v8  ;;  %v1199_v55 = vmax.f32 %v1025_v0, 0.0 }
 0x1cc   :  { %v3299_v56 = vpop.f32.mrf.mxu1 }
 0x1cd   :  { %v1197_v58 = vmax.f32 %v1017_v53, 0.0  ;;  %v1249_v20 = vpack.c.bf16 %v1199_v55, %v1198_v60  ;;  %v1038_v3 = vadd.f32 %v3299_v56, %v3955_v37 }
 0x1ce   :  { %v1029_v61 = vpop.f32.mrf.mxu1 }
 0x1cf   :  { %v1248_v62 = vpack.c.bf16 %v1197_v58, %v1196_v57  ;;  %v1030_v1 = vadd.f32 %v3955_v37, %v1029_v61  ;;  %v1202_v59 = vmax.f32 %v1038_v3, 0.0 }
 0x1d0   :  { %v3300_v44 = vpop.f32.mrf.mxu1 }
 0x1d1   :  { %v1041_v2 = vadd.f32 %v3300_v44, %v3955_v37  ;;  %3361 = vmatprep.mubr.msk.bf16.mxu0 %vm786_vm1, %v1248_v62  ;;  %v1200_v26 = vmax.f32 %v1030_v1, 0.0 }
 0x1d2   :  { %v1032_v6 = vpop.f32.mrf.mxu1  ;;  %3362 = vmatmul.mubr.msk.bf16.gmra.mxu0 %vm786_vm1, %v1249_v20 }
 0x1d3   :  { %v1033_v17 = vadd.f32 %v3955_v37, %v1032_v6  ;;  %v1203_v7 = vmax.f32 %v1041_v2, 0.0 }
 0x1d4   :  { %v3303_v9 = vpop.f32.mrf.mxu1 }
 0x1d5   :  { %v1201_v11 = vmax.f32 %v1033_v17, 0.0  ;;  %v1251_v12 = vpack.c.bf16 %v1203_v7, %v1202_v59  ;;  %v1054_v18 = vadd.f32 %v3303_v9, %v3955_v37 }
 0x1d6   :  { %v1045_v5 = vpop.f32.mrf.mxu1 }
 0x1d7   :  { %v1250_v4 = vpack.c.bf16 %v1201_v11, %v1200_v26  ;;  %v1046_v15 = vadd.f32 %v3955_v37, %v1045_v5  ;;  %v1206_v13 = vmax.f32 %v1054_v18, 0.0 }
 0x1d8   :  { %v3304_v14 = vpop.f32.mrf.mxu1 }
 0x1d9   :  { %v1057_v16 = vadd.f32 %v3304_v14, %v3955_v37  ;;  %3365 = vmatprep.mubr.msk.bf16.mxu0 %vm786_vm1, %v1250_v4  ;;  %v1204_v24 = vmax.f32 %v1046_v15, 0.0 }
 0x1da   :  { %v1048_v19 = vpop.f32.mrf.mxu1  ;;  %3366 = vmatmul.mubr.msk.bf16.gmra.mxu0 %vm786_vm1, %v1251_v12 }
 0x1db   :  { %v1049_v21 = vadd.f32 %v3955_v37, %v1048_v19  ;;  %v1207_v23 = vmax.f32 %v1057_v16, 0.0 }
 0x1dc   :  { %v3307_v35 = vpop.f32.mrf.mxu1 }
 0x1dd   :  { %v1205_v45 = vmax.f32 %v1049_v21, 0.0  ;;  %v1253_v27 = vpack.c.bf16 %v1207_v23, %v1206_v13  ;;  %v1070_v33 = vadd.f32 %v3307_v35, %v3955_v37 }
 0x1de   :  { %v1061_v25 = vpop.f32.mrf.mxu1 }
 0x1df   :  { %v1252_v22 = vpack.c.bf16 %v1205_v45, %v1204_v24  ;;  %v1062_v29 = vadd.f32 %v3955_v37, %v1061_v25  ;;  %v1210_v41 = vmax.f32 %v1070_v33, 0.0 }
 0x1e0   :  { %v3308_v28 = vpop.f32.mrf.mxu1 }
 0x1e1   :  { %v1073_v32 = vadd.f32 %v3308_v28, %v3955_v37  ;;  %3369 = vmatprep.mubr.msk.bf16.mxu0 %vm786_vm1, %v1252_v22  ;;  %v1208_v38 = vmax.f32 %v1062_v29, 0.0 }
 0x1e2   :  { %v1064_v34 = vpop.f32.mrf.mxu1  ;;  %3370 = vmatmul.mubr.msk.bf16.gmra.mxu0 %vm786_vm1, %v1253_v27 }
 0x1e3   :  { %v1065_v54 = vadd.f32 %v3955_v37, %v1064_v34  ;;  %v1211_v36 = vmax.f32 %v1073_v32, 0.0 }
 0x1e4   :  { %v3311_v10 = vpop.f32.mrf.mxu1 }
 0x1e5   :  { %v1209_v31 = vmax.f32 %v1065_v54, 0.0  ;;  %v1255_v42 = vpack.c.bf16 %v1211_v36, %v1210_v41  ;;  %v1086_v48 = vadd.f32 %v3311_v10, %v3955_v37 }
 0x1e6   :  { %v1077_v39 = vpop.f32.mrf.mxu1 }
 0x1e7   :  { %v1254_v40 = vpack.c.bf16 %v1209_v31, %v1208_v38  ;;  %v1078_v46 = vadd.f32 %v3955_v37, %v1077_v39  ;;  %v1214_v52 = vmax.f32 %v1086_v48, 0.0 }
 0x1e8   :  { %v3312_v43 = vpop.f32.mrf.mxu1 }
 0x1e9   :  { %v1089_v47 = vadd.f32 %v3312_v43, %v3955_v37  ;;  %3373 = vmatprep.mubr.msk.bf16.mxu0 %vm786_vm1, %v1254_v40  ;;  %v1212_v50 = vmax.f32 %v1078_v46, 0.0 }
 0x1ea   :  { %v1080_v30 = vpop.f32.mrf.mxu1  ;;  %3374 = vmatmul.mubr.msk.bf16.gmra.mxu0 %vm786_vm1, %v1255_v42 }
 0x1eb   :  { %v1081_v49 = vadd.f32 %v3955_v37, %v1080_v30  ;;  %v1215_v51 = vmax.f32 %v1089_v47, 0.0 }
 0x1ec   :  { %v3315_v63 = vpop.f32.mrf.mxu1 }
 0x1ed   :  { %v1213_v0 = vmax.f32 %v1081_v49, 0.0  ;;  %v1257_v55 = vpack.c.bf16 %v1215_v51, %v1214_v52  ;;  %v1102_v60 = vadd.f32 %v3315_v63, %v3955_v37 }
 0x1ee   :  { %v1093_v8 = vpop.f32.mrf.mxu1 }
 0x1ef   :  { %v1256_v53 = vpack.c.bf16 %v1213_v0, %v1212_v50  ;;  %v1094_v57 = vadd.f32 %v3955_v37, %v1093_v8  ;;  %v1218_v3 = vmax.f32 %v1102_v60, 0.0 }
 0x1f0   :  { %v3316_v56 = vpop.f32.mrf.mxu1 }
 0x1f1   :  { %v1105_v58 = vadd.f32 %v3316_v56, %v3955_v37  ;;  %3377 = vmatprep.mubr.msk.bf16.mxu0 %vm786_vm1, %v1256_v53  ;;  %v1216_v1 = vmax.f32 %v1094_v57, 0.0 }
 0x1f2   :  { %v1096_v61 = vpop.f32.mrf.mxu1  ;;  %3378 = vmatmul.mubr.msk.bf16.gmra.mxu0 %vm786_vm1, %v1257_v55 }
 0x1f3   :  { %v1097_v62 = vadd.f32 %v3955_v37, %v1096_v61  ;;  %v1219_v20 = vmax.f32 %v1105_v58, 0.0 }
 0x1f4   :  { %v3319_v44 = vpop.f32.mrf.mxu1 }
 0x1f5   :  { %v1217_v2 = vmax.f32 %v1097_v62, 0.0  ;;  %v1259_v7 = vpack.c.bf16 %v1219_v20, %v1218_v3  ;;  %v1118_v59 = vadd.f32 %v3319_v44, %v3955_v37  ;;  %v3578_v62 = vld [vmem:[%s4601_s9 + $0x8] sm:$0xff]  }
 0x1f6   :  { %v1109_v6 = vpop.f32.mrf.mxu1  ;;  %3469 = vmatprep.subr.bf16.mxu0 %v3578_v62 }
 0x1f7   :  { %v1258_v17 = vpack.c.bf16 %v1217_v2, %v1216_v1  ;;  %v1110_v26 = vadd.f32 %v3955_v37, %v1109_v6  ;;  %v1222_v18 = vmax.f32 %v1118_v59, 0.0  ;;  %3470 = vmatpush3.bf16.msra.mxu0 %v3578_v62 }
 0x1f8   :  { %v3320_v9 = vpop.f32.mrf.mxu1 }
 0x1f9   :  { %v1121_v11 = vadd.f32 %v3320_v9, %v3955_v37  ;;  %3381 = vmatprep.mubr.msk.bf16.mxu0 %vm786_vm1, %v1258_v17  ;;  %v1220_v15 = vmax.f32 %v1110_v26, 0.0 }
 0x1fa   :  { %v1112_v5 = vpop.f32.mrf.mxu1  ;;  %3382 = vmatmul.mubr.msk.bf16.gmra.mxu0 %vm786_vm1, %v1259_v7  ;;  %v3579_v7 = vld [vmem:[%s4601_s9] sm:$0xff]  }
 0x1fb   :  { %v1113_v4 = vadd.f32 %v3955_v37, %v1112_v5  ;;  %v1223_v12 = vmax.f32 %v1121_v11, 0.0  ;;  %3471 = vmatprep.subr.bf16.mxu0 %v3579_v7 }
 0x1fc   :  { %v3323_v14 = vpop.f32.mrf.mxu1  ;;  %3472 = vmatpush3.bf16.msra.mxu0 %v3579_v7 }
 0x1fd   :  { %v1221_v16 = vmax.f32 %v1113_v4, 0.0  ;;  %v1261_v23 = vpack.c.bf16 %v1223_v12, %v1222_v18  ;;  %v1134_v13 = vadd.f32 %v3323_v14, %v3955_v37 }
 0x1fe   :  { %v1125_v19 = vpop.f32.mrf.mxu1 }
 0x1ff   :  { %v1260_v21 = vpack.c.bf16 %v1221_v16, %v1220_v15  ;;  %v1126_v24 = vadd.f32 %v3955_v37, %v1125_v19  ;;  %v1226_v33 = vmax.f32 %v1134_v13, 0.0 }
 0x200   :  { %v3324_v35 = vpop.f32.mrf.mxu1 }
 0x201   :  { %v1137_v45 = vadd.f32 %v3324_v35, %v3955_v37  ;;  %3385 = vmatprep.mubr.msk.bf16.mxu0 %vm786_vm1, %v1260_v21  ;;  %v1224_v29 = vmax.f32 %v1126_v24, 0.0 }
 0x202   :  { %v1128_v25 = vpop.f32.mrf.mxu1  ;;  %3386 = vmatmul.mubr.msk.bf16.gmra.mxu0 %vm786_vm1, %v1261_v23 }
 0x203   :  { %v1129_v22 = vadd.f32 %v3955_v37, %v1128_v25  ;;  %v1227_v27 = vmax.f32 %v1137_v45, 0.0 }
 0x204   :  { %v3327_v28 = vpop.f32.mrf.mxu1 }
 0x205   :  { %v1225_v32 = vmax.f32 %v1129_v22, 0.0  ;;  %v1263_v36 = vpack.c.bf16 %v1227_v27, %v1226_v33  ;;  %v1150_v41 = vadd.f32 %v3327_v28, %v3955_v37 }
 0x206   :  { %v1141_v34 = vpop.f32.mrf.mxu1 }
 0x207   :  { %v1262_v54 = vpack.c.bf16 %v1225_v32, %v1224_v29  ;;  %v1142_v38 = vadd.f32 %v3955_v37, %v1141_v34  ;;  %v1230_v48 = vmax.f32 %v1150_v41, 0.0 }
 0x208   :  { %v3328_v10 = vpop.f32.mrf.mxu1 }
 0x209   :  { %v1153_v31 = vadd.f32 %v3328_v10, %v3955_v37  ;;  %3389 = vmatprep.mubr.msk.bf16.mxu0 %vm786_vm1, %v1262_v54  ;;  %v1228_v46 = vmax.f32 %v1142_v38, 0.0 }
 0x20a   :  { %v1144_v39 = vpop.f32.mrf.mxu1  ;;  %3390 = vmatmul.mubr.msk.bf16.gmra.mxu0 %vm786_vm1, %v1263_v36 }
 0x20b   :  { %v1145_v40 = vadd.f32 %v3955_v37, %v1144_v39  ;;  %v1231_v42 = vmax.f32 %v1153_v31, 0.0 }
 0x20c   :  { %v3331_v43 = vpop.f32.mrf.mxu1 }
 0x20d   :  { %v1229_v47 = vmax.f32 %v1145_v40, 0.0  ;;  %v1265_v51 = vpack.c.bf16 %v1231_v42, %v1230_v48  ;;  %v1166_v52 = vadd.f32 %v3331_v43, %v3955_v37 }
 0x20e   :  { %v1157_v30 = vpop.f32.mrf.mxu1 }
 0x20f   :  { %v1264_v49 = vpack.c.bf16 %v1229_v47, %v1228_v46  ;;  %v1158_v50 = vadd.f32 %v3955_v37, %v1157_v30  ;;  %v1234_v58 = vmax.f32 %v1166_v52, 0.0 }
 0x210   :  { %v3332_v63 = vpop.f32.mrf.mxu1 }
 0x211   :  { %v1169_v0 = vadd.f32 %v3332_v63, %v3955_v37  ;;  %3393 = vmatprep.mubr.msk.bf16.mxu0 %vm786_vm1, %v1264_v49  ;;  %v1232_v56 = vmax.f32 %v1158_v50, 0.0 }
 0x212   :  { %v1160_v8 = vpop.f32.mrf.mxu1  ;;  %3394 = vmatmul.mubr.msk.bf16.gmra.mxu0 %vm786_vm1, %v1265_v51 }
 0x213   :  { %v1161_v53 = vadd.f32 %v3955_v37, %v1160_v8  ;;  %v1235_v55 = vmax.f32 %v1169_v0, 0.0  ;;  %v4062_v37 = vld [vmem:[%s4602_s6] ss:$0 sm:$0xff] }
 0x215   :  { %v1233_v57 = vmax.f32 %v1161_v53, 0.0  ;;  %v1267_v61 = vpack.c.bf16 %v1235_v55, %v1234_v58 }
 0x217   :  { %v1266_v60 = vpack.c.bf16 %v1233_v57, %v1232_v56 }
 0x219   :  { %3397 = vmatprep.mubr.msk.bf16.mxu0 %vm786_vm1, %v1266_v60 }
 0x21a   :  { %3398 = vmatmul.mubr.msk.bf16.gmra.mxu0 %vm786_vm1, %v1267_v61 }
 0x262   :  { %v3339_v20 = vpop.f32.mrf.mxu0 }
 0x263   :  { %v1430_v6 = vadd.f32 %v3339_v20, %v4062_v37 }
 0x264   :  { %v1421_v44 = vpop.f32.mrf.mxu0 }
 0x265   :  { %v1422_v2 = vadd.f32 %v4062_v37, %v1421_v44  ;;  %v1678_v4 = vmax.f32 %v1430_v6, 0.0 }
 0x266   :  { %v3340_v1 = vpop.f32.mrf.mxu0 }
 0x267   :  { %v1433_v3 = vadd.f32 %v3340_v1, %v4062_v37  ;;  %v1676_v59 = vmax.f32 %v1422_v2, 0.0 }
 0x268   :  { %v1424_v17 = vpop.f32.mrf.mxu0 }
 0x269   :  { %v1425_v9 = vadd.f32 %v4062_v37, %v1424_v17  ;;  %v1679_v26 = vmax.f32 %v1433_v3, 0.0 }
 0x26a   :  { %v3343_v11 = vpop.f32.mrf.mxu0 }
 0x26b   :  { %v1677_v5 = vmax.f32 %v1425_v9, 0.0  ;;  %v1741_v15 = vpack.c.bf16 %v1679_v26, %v1678_v4  ;;  %v1446_v21 = vadd.f32 %v3343_v11, %v4062_v37 }
 0x26c   :  { %v1437_v12 = vpop.f32.mrf.mxu0 }
 0x26d   :  { %v1740_v14 = vpack.c.bf16 %v1677_v5, %v1676_v59  ;;  %v1438_v18 = vadd.f32 %v4062_v37, %v1437_v12  ;;  %v1682_v22 = vmax.f32 %v1446_v21, 0.0 }
 0x26e   :  { %v3344_v16 = vpop.f32.mrf.mxu0 }
 0x26f   :  { %v1449_v19 = vadd.f32 %v3344_v16, %v4062_v37  ;;  %3405 = vmatprep.mubr.msk.bf16.mxu1 %vm786_vm1, %v1740_v14  ;;  %v1680_v13 = vmax.f32 %v1438_v18, 0.0 }
 0x270   :  { %v1440_v23 = vpop.f32.mrf.mxu0  ;;  %3406 = vmatmul.mubr.msk.bf16.vlgmr.msra.gmra.mxu1 %vm786_vm1, %v1741_v15 }
 0x271   :  { %v1441_v35 = vadd.f32 %v4062_v37, %v1440_v23  ;;  %v1683_v24 = vmax.f32 %v1449_v19, 0.0 }
 0x272   :  { %v3347_v45 = vpop.f32.mrf.mxu0 }
 0x273   :  { %v1681_v25 = vmax.f32 %v1441_v35, 0.0  ;;  %v1743_v29 = vpack.c.bf16 %v1683_v24, %v1682_v22  ;;  %v1462_v54 = vadd.f32 %v3347_v45, %v4062_v37 }
 0x274   :  { %v1453_v27 = vpop.f32.mrf.mxu0 }
 0x275   :  { %v1742_v28 = vpack.c.bf16 %v1681_v25, %v1680_v13  ;;  %v1454_v33 = vadd.f32 %v4062_v37, %v1453_v27  ;;  %v1686_v40 = vmax.f32 %v1462_v54, 0.0 }
 0x276   :  { %v3348_v32 = vpop.f32.mrf.mxu0 }
 0x277   :  { %v1465_v34 = vadd.f32 %v3348_v32, %v4062_v37  ;;  %3409 = vmatprep.mubr.msk.bf16.mxu1 %vm786_vm1, %v1742_v28  ;;  %v1684_v41 = vmax.f32 %v1454_v33, 0.0 }
 0x278   :  { %v1456_v36 = vpop.f32.mrf.mxu0  ;;  %3410 = vmatmul.mubr.msk.bf16.gmra.mxu1 %vm786_vm1, %v1743_v29 }
 0x279   :  { %v1457_v10 = vadd.f32 %v4062_v37, %v1456_v36  ;;  %v1687_v38 = vmax.f32 %v1465_v34, 0.0 }
 0x27a   :  { %v3351_v31 = vpop.f32.mrf.mxu0 }
 0x27b   :  { %v1685_v39 = vmax.f32 %v1457_v10, 0.0  ;;  %v1745_v46 = vpack.c.bf16 %v1687_v38, %v1686_v40  ;;  %v1478_v49 = vadd.f32 %v3351_v31, %v4062_v37 }
 0x27c   :  { %v1469_v42 = vpop.f32.mrf.mxu0 }
 0x27d   :  { %v1744_v43 = vpack.c.bf16 %v1685_v39, %v1684_v41  ;;  %v1470_v48 = vadd.f32 %v4062_v37, %v1469_v42  ;;  %v1690_v53 = vmax.f32 %v1478_v49, 0.0 }
 0x27e   :  { %v3352_v47 = vpop.f32.mrf.mxu0 }
 0x27f   :  { %v1481_v30 = vadd.f32 %v3352_v47, %v4062_v37  ;;  %3413 = vmatprep.mubr.msk.bf16.mxu1 %vm786_vm1, %v1744_v43  ;;  %v1688_v52 = vmax.f32 %v1470_v48, 0.0 }
 0x280   :  { %v1472_v51 = vpop.f32.mrf.mxu0  ;;  %3414 = vmatmul.mubr.msk.bf16.gmra.mxu1 %vm786_vm1, %v1745_v46 }
 0x281   :  { %v1473_v63 = vadd.f32 %v4062_v37, %v1472_v51  ;;  %v1691_v50 = vmax.f32 %v1481_v30, 0.0 }
 0x282   :  { %v3355_v0 = vpop.f32.mrf.mxu0 }
 0x283   :  { %v1689_v8 = vmax.f32 %v1473_v63, 0.0  ;;  %v1747_v57 = vpack.c.bf16 %v1691_v50, %v1690_v53  ;;  %v1494_v62 = vadd.f32 %v3355_v0, %v4062_v37 }
 0x284   :  { %v1485_v55 = vpop.f32.mrf.mxu0 }
 0x285   :  { %v1746_v56 = vpack.c.bf16 %v1689_v8, %v1688_v52  ;;  %v1486_v60 = vadd.f32 %v4062_v37, %v1485_v55  ;;  %v1694_v17 = vmax.f32 %v1494_v62, 0.0 }
 0x286   :  { %v3356_v58 = vpop.f32.mrf.mxu0 }
 0x287   :  { %v1497_v61 = vadd.f32 %v3356_v58, %v4062_v37  ;;  %3417 = vmatprep.mubr.msk.bf16.mxu1 %vm786_vm1, %v1746_v56  ;;  %v1692_v3 = vmax.f32 %v1486_v60, 0.0 }
 0x288   :  { %v1488_v20 = vpop.f32.mrf.mxu0  ;;  %3418 = vmatmul.mubr.msk.bf16.gmra.mxu1 %vm786_vm1, %v1747_v57 }
 0x289   :  { %v1489_v44 = vadd.f32 %v4062_v37, %v1488_v20  ;;  %v1695_v1 = vmax.f32 %v1497_v61, 0.0 }
 0x28a   :  { %v3359_v2 = vpop.f32.mrf.mxu0 }
 0x28b   :  { %v1693_v6 = vmax.f32 %v1489_v44, 0.0  ;;  %v1749_v26 = vpack.c.bf16 %v1695_v1, %v1694_v17  ;;  %v1510_v4 = vadd.f32 %v3359_v2, %v4062_v37 }
 0x28c   :  { %v1501_v7 = vpop.f32.mrf.mxu0 }
 0x28d   :  { %v1748_v9 = vpack.c.bf16 %v1693_v6, %v1692_v3  ;;  %v1502_v59 = vadd.f32 %v4062_v37, %v1501_v7  ;;  %v1698_v21 = vmax.f32 %v1510_v4, 0.0 }
 0x28e   :  { %v3360_v11 = vpop.f32.mrf.mxu0 }
 0x28f   :  { %v1513_v5 = vadd.f32 %v3360_v11, %v4062_v37  ;;  %3421 = vmatprep.mubr.msk.bf16.mxu1 %vm786_vm1, %v1748_v9  ;;  %v1696_v18 = vmax.f32 %v1502_v59, 0.0 }
 0x290   :  { %v1504_v12 = vpop.f32.mrf.mxu0  ;;  %3422 = vmatmul.mubr.msk.bf16.gmra.mxu1 %vm786_vm1, %v1749_v26 }
 0x291   :  { %v1505_v14 = vadd.f32 %v4062_v37, %v1504_v12  ;;  %v1699_v15 = vmax.f32 %v1513_v5, 0.0 }
 0x292   :  { %v3363_v16 = vpop.f32.mrf.mxu0 }
 0x293   :  { %v1697_v19 = vmax.f32 %v1505_v14, 0.0  ;;  %v1751_v24 = vpack.c.bf16 %v1699_v15, %v1698_v21  ;;  %v1526_v22 = vadd.f32 %v3363_v16, %v4062_v37 }
 0x294   :  { %v1517_v23 = vpop.f32.mrf.mxu0 }
 0x295   :  { %v1750_v35 = vpack.c.bf16 %v1697_v19, %v1696_v18  ;;  %v1518_v13 = vadd.f32 %v4062_v37, %v1517_v23  ;;  %v1702_v54 = vmax.f32 %v1526_v22, 0.0 }
 0x296   :  { %v3364_v45 = vpop.f32.mrf.mxu0 }
 0x297   :  { %v1529_v25 = vadd.f32 %v3364_v45, %v4062_v37  ;;  %3425 = vmatprep.mubr.msk.bf16.mxu1 %vm786_vm1, %v1750_v35  ;;  %v1700_v33 = vmax.f32 %v1518_v13, 0.0 }
 0x298   :  { %v1520_v27 = vpop.f32.mrf.mxu0  ;;  %3426 = vmatmul.mubr.msk.bf16.gmra.mxu1 %vm786_vm1, %v1751_v24 }
 0x299   :  { %v1521_v28 = vadd.f32 %v4062_v37, %v1520_v27  ;;  %v1703_v29 = vmax.f32 %v1529_v25, 0.0 }
 0x29a   :  { %v3367_v32 = vpop.f32.mrf.mxu0 }
 0x29b   :  { %v1701_v34 = vmax.f32 %v1521_v28, 0.0  ;;  %v1753_v38 = vpack.c.bf16 %v1703_v29, %v1702_v54  ;;  %v1542_v40 = vadd.f32 %v3367_v32, %v4062_v37 }
 0x29c   :  { %v1533_v36 = vpop.f32.mrf.mxu0 }
 0x29d   :  { %v1752_v10 = vpack.c.bf16 %v1701_v34, %v1700_v33  ;;  %v1534_v41 = vadd.f32 %v4062_v37, %v1533_v36  ;;  %v1706_v49 = vmax.f32 %v1542_v40, 0.0 }
 0x29e   :  { %v3368_v31 = vpop.f32.mrf.mxu0 }
 0x29f   :  { %v1545_v39 = vadd.f32 %v3368_v31, %v4062_v37  ;;  %3429 = vmatprep.mubr.msk.bf16.mxu1 %vm786_vm1, %v1752_v10  ;;  %v1704_v48 = vmax.f32 %v1534_v41, 0.0 }
 0x2a0   :  { %v1536_v42 = vpop.f32.mrf.mxu0  ;;  %3430 = vmatmul.mubr.msk.bf16.gmra.mxu1 %vm786_vm1, %v1753_v38 }
 0x2a1   :  { %v1537_v43 = vadd.f32 %v4062_v37, %v1536_v42  ;;  %v1707_v46 = vmax.f32 %v1545_v39, 0.0 }
 0x2a2   :  { %v3371_v47 = vpop.f32.mrf.mxu0 }
 0x2a3   :  { %v1705_v30 = vmax.f32 %v1537_v43, 0.0  ;;  %v1755_v50 = vpack.c.bf16 %v1707_v46, %v1706_v49  ;;  %v1558_v53 = vadd.f32 %v3371_v47, %v4062_v37 }
 0x2a4   :  { %v1549_v51 = vpop.f32.mrf.mxu0 }
 0x2a5   :  { %v1754_v63 = vpack.c.bf16 %v1705_v30, %v1704_v48  ;;  %v1550_v52 = vadd.f32 %v4062_v37, %v1549_v51  ;;  %v1710_v62 = vmax.f32 %v1558_v53, 0.0 }
 0x2a6   :  { %v3372_v0 = vpop.f32.mrf.mxu0 }
 0x2a7   :  { %v1561_v8 = vadd.f32 %v3372_v0, %v4062_v37  ;;  %3433 = vmatprep.mubr.msk.bf16.mxu1 %vm786_vm1, %v1754_v63  ;;  %v1708_v60 = vmax.f32 %v1550_v52, 0.0 }
 0x2a8   :  { %v1552_v55 = vpop.f32.mrf.mxu0  ;;  %3434 = vmatmul.mubr.msk.bf16.gmra.mxu1 %vm786_vm1, %v1755_v50 }
 0x2a9   :  { %v1553_v56 = vadd.f32 %v4062_v37, %v1552_v55  ;;  %v1711_v57 = vmax.f32 %v1561_v8, 0.0 }
 0x2aa   :  { %v3375_v58 = vpop.f32.mrf.mxu0 }
 0x2ab   :  { %v1709_v61 = vmax.f32 %v1553_v56, 0.0  ;;  %v1757_v1 = vpack.c.bf16 %v1711_v57, %v1710_v62  ;;  %v1574_v17 = vadd.f32 %v3375_v58, %v4062_v37 }
 0x2ac   :  { %v1565_v20 = vpop.f32.mrf.mxu0 }
 0x2ad   :  { %v1756_v44 = vpack.c.bf16 %v1709_v61, %v1708_v60  ;;  %v1566_v3 = vadd.f32 %v4062_v37, %v1565_v20  ;;  %v1714_v4 = vmax.f32 %v1574_v17, 0.0 }
 0x2ae   :  { %v3376_v2 = vpop.f32.mrf.mxu0 }
 0x2af   :  { %v1577_v6 = vadd.f32 %v3376_v2, %v4062_v37  ;;  %3437 = vmatprep.mubr.msk.bf16.mxu1 %vm786_vm1, %v1756_v44  ;;  %v1712_v59 = vmax.f32 %v1566_v3, 0.0 }
 0x2b0   :  { %v1568_v7 = vpop.f32.mrf.mxu0  ;;  %3438 = vmatmul.mubr.msk.bf16.gmra.mxu1 %vm786_vm1, %v1757_v1 }
 0x2b1   :  { %v1569_v9 = vadd.f32 %v4062_v37, %v1568_v7  ;;  %v1715_v26 = vmax.f32 %v1577_v6, 0.0 }
 0x2b2   :  { %v3379_v11 = vpop.f32.mrf.mxu0 }
 0x2b3   :  { %v1713_v5 = vmax.f32 %v1569_v9, 0.0  ;;  %v1759_v15 = vpack.c.bf16 %v1715_v26, %v1714_v4  ;;  %v1590_v21 = vadd.f32 %v3379_v11, %v4062_v37 }
 0x2b4   :  { %v1581_v12 = vpop.f32.mrf.mxu0 }
 0x2b5   :  { %v1758_v14 = vpack.c.bf16 %v1713_v5, %v1712_v59  ;;  %v1582_v18 = vadd.f32 %v4062_v37, %v1581_v12  ;;  %v1718_v22 = vmax.f32 %v1590_v21, 0.0 }
 0x2b6   :  { %v3380_v16 = vpop.f32.mrf.mxu0 }
 0x2b7   :  { %v1593_v19 = vadd.f32 %v3380_v16, %v4062_v37  ;;  %3441 = vmatprep.mubr.msk.bf16.mxu1 %vm786_vm1, %v1758_v14  ;;  %v1716_v13 = vmax.f32 %v1582_v18, 0.0 }
 0x2b8   :  { %v1584_v23 = vpop.f32.mrf.mxu0  ;;  %3442 = vmatmul.mubr.msk.bf16.gmra.mxu1 %vm786_vm1, %v1759_v15 }
 0x2b9   :  { %v1585_v35 = vadd.f32 %v4062_v37, %v1584_v23  ;;  %v1719_v24 = vmax.f32 %v1593_v19, 0.0 }
 0x2ba   :  { %v3383_v45 = vpop.f32.mrf.mxu0 }
 0x2bb   :  { %v1717_v25 = vmax.f32 %v1585_v35, 0.0  ;;  %v1761_v29 = vpack.c.bf16 %v1719_v24, %v1718_v22  ;;  %v1606_v54 = vadd.f32 %v3383_v45, %v4062_v37 }
 0x2bc   :  { %v1597_v27 = vpop.f32.mrf.mxu0 }
 0x2bd   :  { %v1760_v28 = vpack.c.bf16 %v1717_v25, %v1716_v13  ;;  %v1598_v33 = vadd.f32 %v4062_v37, %v1597_v27  ;;  %v1722_v40 = vmax.f32 %v1606_v54, 0.0 }
 0x2be   :  { %v3384_v32 = vpop.f32.mrf.mxu0 }
 0x2bf   :  { %v1609_v34 = vadd.f32 %v3384_v32, %v4062_v37  ;;  %3445 = vmatprep.mubr.msk.bf16.mxu1 %vm786_vm1, %v1760_v28  ;;  %v1720_v41 = vmax.f32 %v1598_v33, 0.0 }
 0x2c0   :  { %v1600_v36 = vpop.f32.mrf.mxu0  ;;  %3446 = vmatmul.mubr.msk.bf16.gmra.mxu1 %vm786_vm1, %v1761_v29 }
 0x2c1   :  { %v1601_v10 = vadd.f32 %v4062_v37, %v1600_v36  ;;  %v1723_v38 = vmax.f32 %v1609_v34, 0.0 }
 0x2c2   :  { %v3387_v31 = vpop.f32.mrf.mxu0 }
 0x2c3   :  { %v1721_v39 = vmax.f32 %v1601_v10, 0.0  ;;  %v1763_v46 = vpack.c.bf16 %v1723_v38, %v1722_v40  ;;  %v1622_v49 = vadd.f32 %v3387_v31, %v4062_v37  ;;  %v4166_v31 = vld [vmem:[%s4603_s8] ss:$0 sm:$0xff] }
 0x2c4   :  { %v1613_v42 = vpop.f32.mrf.mxu0 }
 0x2c5   :  { %v1762_v43 = vpack.c.bf16 %v1721_v39, %v1720_v41  ;;  %v1614_v48 = vadd.f32 %v4062_v37, %v1613_v42  ;;  %v1726_v53 = vmax.f32 %v1622_v49, 0.0 }
 0x2c6   :  { %v3388_v47 = vpop.f32.mrf.mxu0 }
 0x2c7   :  { %v1625_v30 = vadd.f32 %v3388_v47, %v4062_v37  ;;  %3449 = vmatprep.mubr.msk.bf16.mxu1 %vm786_vm1, %v1762_v43  ;;  %v1724_v52 = vmax.f32 %v1614_v48, 0.0 }
 0x2c8   :  { %v1616_v51 = vpop.f32.mrf.mxu0  ;;  %3450 = vmatmul.mubr.msk.bf16.gmra.mxu1 %vm786_vm1, %v1763_v46 }
 0x2c9   :  { %v1617_v63 = vadd.f32 %v4062_v37, %v1616_v51  ;;  %v1727_v50 = vmax.f32 %v1625_v30, 0.0 }
 0x2ca   :  { %v3391_v0 = vpop.f32.mrf.mxu0 }
 0x2cb   :  { %v1725_v8 = vmax.f32 %v1617_v63, 0.0  ;;  %v1765_v57 = vpack.c.bf16 %v1727_v50, %v1726_v53  ;;  %v1638_v62 = vadd.f32 %v3391_v0, %v4062_v37 }
 0x2cc   :  { %v1629_v55 = vpop.f32.mrf.mxu0 }
 0x2cd   :  { %v1764_v56 = vpack.c.bf16 %v1725_v8, %v1724_v52  ;;  %v1630_v60 = vadd.f32 %v4062_v37, %v1629_v55  ;;  %v1730_v17 = vmax.f32 %v1638_v62, 0.0 }
 0x2ce   :  { %v3392_v58 = vpop.f32.mrf.mxu0 }
 0x2cf   :  { %v1641_v61 = vadd.f32 %v3392_v58, %v4062_v37  ;;  %3453 = vmatprep.mubr.msk.bf16.mxu1 %vm786_vm1, %v1764_v56  ;;  %v1728_v3 = vmax.f32 %v1630_v60, 0.0 }
 0x2d0   :  { %v1632_v20 = vpop.f32.mrf.mxu0  ;;  %3454 = vmatmul.mubr.msk.bf16.gmra.mxu1 %vm786_vm1, %v1765_v57 }
 0x2d1   :  { %v1633_v44 = vadd.f32 %v4062_v37, %v1632_v20  ;;  %v1731_v1 = vmax.f32 %v1641_v61, 0.0 }
 0x2d2   :  { %v3395_v2 = vpop.f32.mrf.mxu0 }
 0x2d3   :  { %v1729_v6 = vmax.f32 %v1633_v44, 0.0  ;;  %v1767_v26 = vpack.c.bf16 %v1731_v1, %v1730_v17  ;;  %v1654_v4 = vadd.f32 %v3395_v2, %v4062_v37 }
 0x2d4   :  { %v1645_v7 = vpop.f32.mrf.mxu0 }
 0x2d5   :  { %v1766_v9 = vpack.c.bf16 %v1729_v6, %v1728_v3  ;;  %v1646_v59 = vadd.f32 %v4062_v37, %v1645_v7  ;;  %v1734_v21 = vmax.f32 %v1654_v4, 0.0 }
 0x2d6   :  { %v3396_v11 = vpop.f32.mrf.mxu0 }
 0x2d7   :  { %v1657_v5 = vadd.f32 %v3396_v11, %v4062_v37  ;;  %3457 = vmatprep.mubr.msk.bf16.mxu1 %vm786_vm1, %v1766_v9  ;;  %v1732_v18 = vmax.f32 %v1646_v59, 0.0 }
 0x2d8   :  { %v1648_v12 = vpop.f32.mrf.mxu0  ;;  %3458 = vmatmul.mubr.msk.bf16.gmra.mxu1 %vm786_vm1, %v1767_v26 }
 0x2d9   :  { %v1649_v14 = vadd.f32 %v4062_v37, %v1648_v12  ;;  %v1735_v15 = vmax.f32 %v1657_v5, 0.0 }
 0x2da   :  { %v3399_v16 = vpop.f32.mrf.mxu0 }
 0x2db   :  { %v1733_v19 = vmax.f32 %v1649_v14, 0.0  ;;  %v1769_v24 = vpack.c.bf16 %v1735_v15, %v1734_v21  ;;  %v1670_v22 = vadd.f32 %v3399_v16, %v4062_v37 }
 0x2dc   :  { %v1661_v23 = vpop.f32.mrf.mxu0 }
 0x2dd   :  { %v1768_v35 = vpack.c.bf16 %v1733_v19, %v1732_v18  ;;  %v1662_v13 = vadd.f32 %v4062_v37, %v1661_v23  ;;  %v1738_v34 = vmax.f32 %v1670_v22, 0.0 }
 0x2de   :  { %v3400_v45 = vpop.f32.mrf.mxu0 }
 0x2df   :  { %v1673_v25 = vadd.f32 %v3400_v45, %v4062_v37  ;;  %3461 = vmatprep.mubr.msk.bf16.mxu1 %vm786_vm1, %v1768_v35  ;;  %v1736_v32 = vmax.f32 %v1662_v13, 0.0 }
 0x2e0   :  { %v1664_v27 = vpop.f32.mrf.mxu0  ;;  %3462 = vmatmul.mubr.msk.bf16.gmra.mxu1 %vm786_vm1, %v1769_v24 }
 0x2e1   :  { %v1665_v28 = vadd.f32 %v4062_v37, %v1664_v27  ;;  %v1739_v29 = vmax.f32 %v1673_v25, 0.0 }
 0x2e3   :  { %v1737_v33 = vmax.f32 %v1665_v28, 0.0  ;;  %v1771_v36 = vpack.c.bf16 %v1739_v29, %v1738_v34 }
 0x2e5   :  { %v1770_v54 = vpack.c.bf16 %v1737_v33, %v1736_v32 }
 0x2e7   :  { %3465 = vmatprep.mubr.msk.bf16.mxu1 %vm786_vm1, %v1770_v54 }
 0x2e8   :  { %3466 = vmatmul.mubr.msk.bf16.gmra.mxu1 %vm786_vm1, %v1771_v36 }
 0x330   :  { %v3407_v10 = vpop.f32.mrf.mxu1 }
 0x331   :  { %v1934_v40 = vadd.f32 %v3407_v10, %v4166_v31 }
 0x332   :  { %v1925_v38 = vpop.f32.mrf.mxu1 }
 0x333   :  { %v1926_v37 = vadd.f32 %v4166_v31, %v1925_v38  ;;  %v2182_v49 = vmax.f32 %v1934_v40, 0.0 }
 0x334   :  { %v3408_v41 = vpop.f32.mrf.mxu1 }
 0x335   :  { %v1937_v39 = vadd.f32 %v3408_v41, %v4166_v31  ;;  %v2180_v48 = vmax.f32 %v1926_v37, 0.0 }
 0x336   :  { %v1928_v42 = vpop.f32.mrf.mxu1 }
 0x337   :  { %v1929_v43 = vadd.f32 %v4166_v31, %v1928_v42  ;;  %v2183_v46 = vmax.f32 %v1937_v39, 0.0 }
 0x338   :  { %v3411_v47 = vpop.f32.mrf.mxu1 }
 0x339   :  { %v2181_v30 = vmax.f32 %v1929_v43, 0.0  ;;  %v2245_v50 = vpack.c.bf16 %v2183_v46, %v2182_v49  ;;  %v1950_v53 = vadd.f32 %v3411_v47, %v4166_v31 }
 0x33a   :  { %v1941_v51 = vpop.f32.mrf.mxu1 }
 0x33b   :  { %v2244_v63 = vpack.c.bf16 %v2181_v30, %v2180_v48  ;;  %v1942_v52 = vadd.f32 %v4166_v31, %v1941_v51  ;;  %v2186_v62 = vmax.f32 %v1950_v53, 0.0 }
 0x33c   :  { %v3412_v0 = vpop.f32.mrf.mxu1 }
 0x33d   :  { %v1953_v8 = vadd.f32 %v3412_v0, %v4166_v31  ;;  %3473 = vmatprep.mubr.msk.bf16.mxu0 %vm786_vm1, %v2244_v63  ;;  %v2184_v60 = vmax.f32 %v1942_v52, 0.0 }
 0x33e   :  { %v1944_v55 = vpop.f32.mrf.mxu1  ;;  %3474 = vmatmul.mubr.msk.bf16.vlgmr.msra.gmra.mxu0 %vm786_vm1, %v2245_v50 }
 0x33f   :  { %v1945_v56 = vadd.f32 %v4166_v31, %v1944_v55  ;;  %v2187_v57 = vmax.f32 %v1953_v8, 0.0 }
 0x340   :  { %v3415_v58 = vpop.f32.mrf.mxu1 }
 0x341   :  { %v2185_v61 = vmax.f32 %v1945_v56, 0.0  ;;  %v2247_v1 = vpack.c.bf16 %v2187_v57, %v2186_v62  ;;  %v1966_v17 = vadd.f32 %v3415_v58, %v4166_v31 }
 0x342   :  { %v1957_v20 = vpop.f32.mrf.mxu1 }
 0x343   :  { %v2246_v44 = vpack.c.bf16 %v2185_v61, %v2184_v60  ;;  %v1958_v3 = vadd.f32 %v4166_v31, %v1957_v20  ;;  %v2190_v4 = vmax.f32 %v1966_v17, 0.0 }
 0x344   :  { %v3416_v2 = vpop.f32.mrf.mxu1 }
 0x345   :  { %v1969_v6 = vadd.f32 %v3416_v2, %v4166_v31  ;;  %3477 = vmatprep.mubr.msk.bf16.mxu0 %vm786_vm1, %v2246_v44  ;;  %v2188_v59 = vmax.f32 %v1958_v3, 0.0 }
 0x346   :  { %v1960_v7 = vpop.f32.mrf.mxu1  ;;  %3478 = vmatmul.mubr.msk.bf16.gmra.mxu0 %vm786_vm1, %v2247_v1 }
 0x347   :  { %v1961_v9 = vadd.f32 %v4166_v31, %v1960_v7  ;;  %v2191_v26 = vmax.f32 %v1969_v6, 0.0 }
 0x348   :  { %v3419_v11 = vpop.f32.mrf.mxu1 }
 0x349   :  { %v2189_v5 = vmax.f32 %v1961_v9, 0.0  ;;  %v2249_v15 = vpack.c.bf16 %v2191_v26, %v2190_v4  ;;  %v1982_v21 = vadd.f32 %v3419_v11, %v4166_v31 }
 0x34a   :  { %v1973_v12 = vpop.f32.mrf.mxu1 }
 0x34b   :  { %v2248_v14 = vpack.c.bf16 %v2189_v5, %v2188_v59  ;;  %v1974_v18 = vadd.f32 %v4166_v31, %v1973_v12  ;;  %v2194_v22 = vmax.f32 %v1982_v21, 0.0 }
 0x34c   :  { %v3420_v16 = vpop.f32.mrf.mxu1 }
 0x34d   :  { %v1985_v19 = vadd.f32 %v3420_v16, %v4166_v31  ;;  %3481 = vmatprep.mubr.msk.bf16.mxu0 %vm786_vm1, %v2248_v14  ;;  %v2192_v13 = vmax.f32 %v1974_v18, 0.0 }
 0x34e   :  { %v1976_v23 = vpop.f32.mrf.mxu1  ;;  %3482 = vmatmul.mubr.msk.bf16.gmra.mxu0 %vm786_vm1, %v2249_v15 }
 0x34f   :  { %v1977_v35 = vadd.f32 %v4166_v31, %v1976_v23  ;;  %v2195_v24 = vmax.f32 %v1985_v19, 0.0 }
 0x350   :  { %v3423_v45 = vpop.f32.mrf.mxu1 }
 0x351   :  { %v2193_v25 = vmax.f32 %v1977_v35, 0.0  ;;  %v2251_v29 = vpack.c.bf16 %v2195_v24, %v2194_v22  ;;  %v1998_v54 = vadd.f32 %v3423_v45, %v4166_v31 }
 0x352   :  { %v1989_v27 = vpop.f32.mrf.mxu1 }
 0x353   :  { %v2250_v28 = vpack.c.bf16 %v2193_v25, %v2192_v13  ;;  %v1990_v33 = vadd.f32 %v4166_v31, %v1989_v27  ;;  %v2198_v40 = vmax.f32 %v1998_v54, 0.0 }
 0x354   :  { %v3424_v32 = vpop.f32.mrf.mxu1 }
 0x355   :  { %v2001_v34 = vadd.f32 %v3424_v32, %v4166_v31  ;;  %3485 = vmatprep.mubr.msk.bf16.mxu0 %vm786_vm1, %v2250_v28  ;;  %v2196_v37 = vmax.f32 %v1990_v33, 0.0 }
 0x356   :  { %v1992_v36 = vpop.f32.mrf.mxu1  ;;  %3486 = vmatmul.mubr.msk.bf16.gmra.mxu0 %vm786_vm1, %v2251_v29 }
 0x357   :  { %v1993_v10 = vadd.f32 %v4166_v31, %v1992_v36  ;;  %v2199_v38 = vmax.f32 %v2001_v34, 0.0 }
 0x358   :  { %v3427_v41 = vpop.f32.mrf.mxu1 }
 0x359   :  { %v2197_v39 = vmax.f32 %v1993_v10, 0.0  ;;  %v2253_v46 = vpack.c.bf16 %v2199_v38, %v2198_v40  ;;  %v2014_v49 = vadd.f32 %v3427_v41, %v4166_v31 }
 0x35a   :  { %v2005_v42 = vpop.f32.mrf.mxu1 }
 0x35b   :  { %v2252_v43 = vpack.c.bf16 %v2197_v39, %v2196_v37  ;;  %v2006_v48 = vadd.f32 %v4166_v31, %v2005_v42  ;;  %v2202_v53 = vmax.f32 %v2014_v49, 0.0 }
 0x35c   :  { %v3428_v47 = vpop.f32.mrf.mxu1 }
 0x35d   :  { %v2017_v30 = vadd.f32 %v3428_v47, %v4166_v31  ;;  %3489 = vmatprep.mubr.msk.bf16.mxu0 %vm786_vm1, %v2252_v43  ;;  %v2200_v52 = vmax.f32 %v2006_v48, 0.0 }
 0x35e   :  { %v2008_v51 = vpop.f32.mrf.mxu1  ;;  %3490 = vmatmul.mubr.msk.bf16.gmra.mxu0 %vm786_vm1, %v2253_v46 }
 0x35f   :  { %v2009_v63 = vadd.f32 %v4166_v31, %v2008_v51  ;;  %v2203_v50 = vmax.f32 %v2017_v30, 0.0 }
 0x360   :  { %v3431_v0 = vpop.f32.mrf.mxu1 }
 0x361   :  { %v2201_v8 = vmax.f32 %v2009_v63, 0.0  ;;  %v2255_v57 = vpack.c.bf16 %v2203_v50, %v2202_v53  ;;  %v2030_v62 = vadd.f32 %v3431_v0, %v4166_v31 }
 0x362   :  { %v2021_v55 = vpop.f32.mrf.mxu1 }
 0x363   :  { %v2254_v56 = vpack.c.bf16 %v2201_v8, %v2200_v52  ;;  %v2022_v60 = vadd.f32 %v4166_v31, %v2021_v55  ;;  %v2206_v17 = vmax.f32 %v2030_v62, 0.0 }
 0x364   :  { %v3432_v58 = vpop.f32.mrf.mxu1 }
 0x365   :  { %v2033_v61 = vadd.f32 %v3432_v58, %v4166_v31  ;;  %3493 = vmatprep.mubr.msk.bf16.mxu0 %vm786_vm1, %v2254_v56  ;;  %v2204_v3 = vmax.f32 %v2022_v60, 0.0 }
 0x366   :  { %v2024_v20 = vpop.f32.mrf.mxu1  ;;  %3494 = vmatmul.mubr.msk.bf16.gmra.mxu0 %vm786_vm1, %v2255_v57 }
 0x367   :  { %v2025_v44 = vadd.f32 %v4166_v31, %v2024_v20  ;;  %v2207_v1 = vmax.f32 %v2033_v61, 0.0 }
 0x368   :  { %v3435_v2 = vpop.f32.mrf.mxu1 }
 0x369   :  { %v2205_v6 = vmax.f32 %v2025_v44, 0.0  ;;  %v2257_v26 = vpack.c.bf16 %v2207_v1, %v2206_v17  ;;  %v2046_v4 = vadd.f32 %v3435_v2, %v4166_v31 }
 0x36a   :  { %v2037_v7 = vpop.f32.mrf.mxu1 }
 0x36b   :  { %v2256_v9 = vpack.c.bf16 %v2205_v6, %v2204_v3  ;;  %v2038_v59 = vadd.f32 %v4166_v31, %v2037_v7  ;;  %v2210_v21 = vmax.f32 %v2046_v4, 0.0 }
 0x36c   :  { %v3436_v11 = vpop.f32.mrf.mxu1 }
 0x36d   :  { %v2049_v5 = vadd.f32 %v3436_v11, %v4166_v31  ;;  %3497 = vmatprep.mubr.msk.bf16.mxu0 %vm786_vm1, %v2256_v9  ;;  %v2208_v18 = vmax.f32 %v2038_v59, 0.0 }
 0x36e   :  { %v2040_v12 = vpop.f32.mrf.mxu1  ;;  %3498 = vmatmul.mubr.msk.bf16.gmra.mxu0 %vm786_vm1, %v2257_v26 }
 0x36f   :  { %v2041_v14 = vadd.f32 %v4166_v31, %v2040_v12  ;;  %v2211_v15 = vmax.f32 %v2049_v5, 0.0 }
 0x370   :  { %v3439_v16 = vpop.f32.mrf.mxu1 }
 0x371   :  { %v2209_v19 = vmax.f32 %v2041_v14, 0.0  ;;  %v2259_v24 = vpack.c.bf16 %v2211_v15, %v2210_v21  ;;  %v2062_v22 = vadd.f32 %v3439_v16, %v4166_v31 }
 0x372   :  { %v2053_v23 = vpop.f32.mrf.mxu1 }
 0x373   :  { %v2258_v35 = vpack.c.bf16 %v2209_v19, %v2208_v18  ;;  %v2054_v13 = vadd.f32 %v4166_v31, %v2053_v23  ;;  %v2214_v54 = vmax.f32 %v2062_v22, 0.0 }
 0x374   :  { %v3440_v45 = vpop.f32.mrf.mxu1 }
 0x375   :  { %v2065_v25 = vadd.f32 %v3440_v45, %v4166_v31  ;;  %3501 = vmatprep.mubr.msk.bf16.mxu0 %vm786_vm1, %v2258_v35  ;;  %v2212_v33 = vmax.f32 %v2054_v13, 0.0 }
 0x376   :  { %v2056_v27 = vpop.f32.mrf.mxu1  ;;  %3502 = vmatmul.mubr.msk.bf16.gmra.mxu0 %vm786_vm1, %v2259_v24 }
 0x377   :  { %v2057_v28 = vadd.f32 %v4166_v31, %v2056_v27  ;;  %v2215_v29 = vmax.f32 %v2065_v25, 0.0 }
 0x378   :  { %v3443_v32 = vpop.f32.mrf.mxu1 }
 0x379   :  { %v2213_v34 = vmax.f32 %v2057_v28, 0.0  ;;  %v2261_v38 = vpack.c.bf16 %v2215_v29, %v2214_v54  ;;  %v2078_v40 = vadd.f32 %v3443_v32, %v4166_v31 }
 0x37a   :  { %v2069_v36 = vpop.f32.mrf.mxu1 }
 0x37b   :  { %v2260_v10 = vpack.c.bf16 %v2213_v34, %v2212_v33  ;;  %v2070_v37 = vadd.f32 %v4166_v31, %v2069_v36  ;;  %v2218_v49 = vmax.f32 %v2078_v40, 0.0 }
 0x37c   :  { %v3444_v41 = vpop.f32.mrf.mxu1 }
 0x37d   :  { %v2081_v39 = vadd.f32 %v3444_v41, %v4166_v31  ;;  %3505 = vmatprep.mubr.msk.bf16.mxu0 %vm786_vm1, %v2260_v10  ;;  %v2216_v48 = vmax.f32 %v2070_v37, 0.0 }
 0x37e   :  { %v2072_v42 = vpop.f32.mrf.mxu1  ;;  %3506 = vmatmul.mubr.msk.bf16.gmra.mxu0 %vm786_vm1, %v2261_v38 }
 0x37f   :  { %v2073_v43 = vadd.f32 %v4166_v31, %v2072_v42  ;;  %v2219_v46 = vmax.f32 %v2081_v39, 0.0 }
 0x380   :  { %v3447_v47 = vpop.f32.mrf.mxu1 }
 0x381   :  { %v2217_v30 = vmax.f32 %v2073_v43, 0.0  ;;  %v2263_v50 = vpack.c.bf16 %v2219_v46, %v2218_v49  ;;  %v2094_v53 = vadd.f32 %v3447_v47, %v4166_v31 }
 0x382   :  { %v2085_v51 = vpop.f32.mrf.mxu1 }
 0x383   :  { %v2262_v63 = vpack.c.bf16 %v2217_v30, %v2216_v48  ;;  %v2086_v52 = vadd.f32 %v4166_v31, %v2085_v51  ;;  %v2222_v62 = vmax.f32 %v2094_v53, 0.0 }
 0x384   :  { %v3448_v0 = vpop.f32.mrf.mxu1 }
 0x385   :  { %v2097_v8 = vadd.f32 %v3448_v0, %v4166_v31  ;;  %3509 = vmatprep.mubr.msk.bf16.mxu0 %vm786_vm1, %v2262_v63  ;;  %v2220_v60 = vmax.f32 %v2086_v52, 0.0 }
 0x386   :  { %v2088_v55 = vpop.f32.mrf.mxu1  ;;  %3510 = vmatmul.mubr.msk.bf16.gmra.mxu0 %vm786_vm1, %v2263_v50 }
 0x387   :  { %v2089_v56 = vadd.f32 %v4166_v31, %v2088_v55  ;;  %v2223_v57 = vmax.f32 %v2097_v8, 0.0 }
 0x388   :  { %v3451_v58 = vpop.f32.mrf.mxu1 }
 0x389   :  { %v2221_v61 = vmax.f32 %v2089_v56, 0.0  ;;  %v2265_v1 = vpack.c.bf16 %v2223_v57, %v2222_v62  ;;  %v2110_v17 = vadd.f32 %v3451_v58, %v4166_v31 }
 0x38a   :  { %v2101_v20 = vpop.f32.mrf.mxu1 }
 0x38b   :  { %v2264_v44 = vpack.c.bf16 %v2221_v61, %v2220_v60  ;;  %v2102_v3 = vadd.f32 %v4166_v31, %v2101_v20  ;;  %v2226_v4 = vmax.f32 %v2110_v17, 0.0 }
 0x38c   :  { %v3452_v2 = vpop.f32.mrf.mxu1 }
 0x38d   :  { %v2113_v6 = vadd.f32 %v3452_v2, %v4166_v31  ;;  %3513 = vmatprep.mubr.msk.bf16.mxu0 %vm786_vm1, %v2264_v44  ;;  %v2224_v59 = vmax.f32 %v2102_v3, 0.0 }
 0x38e   :  { %v2104_v7 = vpop.f32.mrf.mxu1  ;;  %3514 = vmatmul.mubr.msk.bf16.gmra.mxu0 %vm786_vm1, %v2265_v1 }
 0x38f   :  { %v2105_v9 = vadd.f32 %v4166_v31, %v2104_v7  ;;  %v2227_v26 = vmax.f32 %v2113_v6, 0.0 }
 0x390   :  { %v3455_v11 = vpop.f32.mrf.mxu1 }
 0x391   :  { %v2225_v5 = vmax.f32 %v2105_v9, 0.0  ;;  %v2267_v15 = vpack.c.bf16 %v2227_v26, %v2226_v4  ;;  %v2126_v21 = vadd.f32 %v3455_v11, %v4166_v31  ;;  %v4267_v9 = vld [vmem:[%s4604_s10] ss:$0 sm:$0xff] }
 0x392   :  { %v2117_v12 = vpop.f32.mrf.mxu1 }
 0x393   :  { %v2266_v14 = vpack.c.bf16 %v2225_v5, %v2224_v59  ;;  %v2118_v18 = vadd.f32 %v4166_v31, %v2117_v12  ;;  %v2230_v22 = vmax.f32 %v2126_v21, 0.0 }
 0x394   :  { %v3456_v16 = vpop.f32.mrf.mxu1 }
 0x395   :  { %v2129_v19 = vadd.f32 %v3456_v16, %v4166_v31  ;;  %3517 = vmatprep.mubr.msk.bf16.mxu0 %vm786_vm1, %v2266_v14  ;;  %v2228_v13 = vmax.f32 %v2118_v18, 0.0 }
 0x396   :  { %v2120_v23 = vpop.f32.mrf.mxu1  ;;  %3518 = vmatmul.mubr.msk.bf16.gmra.mxu0 %vm786_vm1, %v2267_v15 }
 0x397   :  { %v2121_v35 = vadd.f32 %v4166_v31, %v2120_v23  ;;  %v2231_v24 = vmax.f32 %v2129_v19, 0.0 }
 0x398   :  { %v3459_v45 = vpop.f32.mrf.mxu1 }
 0x399   :  { %v2229_v25 = vmax.f32 %v2121_v35, 0.0  ;;  %v2269_v29 = vpack.c.bf16 %v2231_v24, %v2230_v22  ;;  %v2142_v54 = vadd.f32 %v3459_v45, %v4166_v31 }
 0x39a   :  { %v2133_v27 = vpop.f32.mrf.mxu1 }
 0x39b   :  { %v2268_v28 = vpack.c.bf16 %v2229_v25, %v2228_v13  ;;  %v2134_v33 = vadd.f32 %v4166_v31, %v2133_v27  ;;  %v2234_v40 = vmax.f32 %v2142_v54, 0.0 }
 0x39c   :  { %v3460_v32 = vpop.f32.mrf.mxu1 }
 0x39d   :  { %v2145_v34 = vadd.f32 %v3460_v32, %v4166_v31  ;;  %3521 = vmatprep.mubr.msk.bf16.mxu0 %vm786_vm1, %v2268_v28  ;;  %v2232_v37 = vmax.f32 %v2134_v33, 0.0 }
 0x39e   :  { %v2136_v36 = vpop.f32.mrf.mxu1  ;;  %3522 = vmatmul.mubr.msk.bf16.gmra.mxu0 %vm786_vm1, %v2269_v29 }
 0x39f   :  { %v2137_v10 = vadd.f32 %v4166_v31, %v2136_v36  ;;  %v2235_v38 = vmax.f32 %v2145_v34, 0.0 }
 0x3a0   :  { %v3463_v41 = vpop.f32.mrf.mxu1 }
 0x3a1   :  { %v2233_v39 = vmax.f32 %v2137_v10, 0.0  ;;  %v2271_v46 = vpack.c.bf16 %v2235_v38, %v2234_v40  ;;  %v2158_v49 = vadd.f32 %v3463_v41, %v4166_v31 }
 0x3a2   :  { %v2149_v42 = vpop.f32.mrf.mxu1 }
 0x3a3   :  { %v2270_v43 = vpack.c.bf16 %v2233_v39, %v2232_v37  ;;  %v2150_v48 = vadd.f32 %v4166_v31, %v2149_v42  ;;  %v2238_v53 = vmax.f32 %v2158_v49, 0.0 }
 0x3a4   :  { %v3464_v47 = vpop.f32.mrf.mxu1 }
 0x3a5   :  { %v2161_v30 = vadd.f32 %v3464_v47, %v4166_v31  ;;  %3525 = vmatprep.mubr.msk.bf16.mxu0 %vm786_vm1, %v2270_v43  ;;  %v2236_v52 = vmax.f32 %v2150_v48, 0.0 }
 0x3a6   :  { %v2152_v51 = vpop.f32.mrf.mxu1  ;;  %3526 = vmatmul.mubr.msk.bf16.gmra.mxu0 %vm786_vm1, %v2271_v46 }
 0x3a7   :  { %v2153_v63 = vadd.f32 %v4166_v31, %v2152_v51  ;;  %v2239_v50 = vmax.f32 %v2161_v30, 0.0 }
 0x3a8   :  { %v3467_v0 = vpop.f32.mrf.mxu1 }
 0x3a9   :  { %v2237_v8 = vmax.f32 %v2153_v63, 0.0  ;;  %v2273_v57 = vpack.c.bf16 %v2239_v50, %v2238_v53  ;;  %v2174_v62 = vadd.f32 %v3467_v0, %v4166_v31 }
 0x3aa   :  { %v2165_v55 = vpop.f32.mrf.mxu1 }
 0x3ab   :  { %v2272_v56 = vpack.c.bf16 %v2237_v8, %v2236_v52  ;;  %v2166_v60 = vadd.f32 %v4166_v31, %v2165_v55  ;;  %v2242_v6 = vmax.f32 %v2174_v62, 0.0 }
 0x3ac   :  { %v3468_v58 = vpop.f32.mrf.mxu1 }
 0x3ad   :  { %v2177_v61 = vadd.f32 %v3468_v58, %v4166_v31  ;;  %3529 = vmatprep.mubr.msk.bf16.mxu0 %vm786_vm1, %v2272_v56  ;;  %v2240_v2 = vmax.f32 %v2166_v60, 0.0 }
 0x3ae   :  { %v2168_v20 = vpop.f32.mrf.mxu1  ;;  %3530 = vmatmul.mubr.msk.bf16.gmra.mxu0 %vm786_vm1, %v2273_v57 }
 0x3af   :  { %v2169_v44 = vadd.f32 %v4166_v31, %v2168_v20  ;;  %v2243_v1 = vmax.f32 %v2177_v61, 0.0  ;;  %v4272_v31 = vld [vmem:[%s4605_s11] ss:$0 sm:$0xff] }
 0x3b1   :  { %v2241_v3 = vmax.f32 %v2169_v44, 0.0  ;;  %v2275_v7 = vpack.c.bf16 %v2243_v1, %v2242_v6 }
 0x3b3   :  { %v2274_v17 = vpack.c.bf16 %v2241_v3, %v2240_v2 }
 0x3b5   :  { %3533 = vmatprep.mubr.msk.bf16.mxu0 %vm786_vm1, %v2274_v17 }
 0x3b6   :  { %3534 = vmatmul.mubr.msk.bf16.gmra.mxu0 %vm786_vm1, %v2275_v7 }
 0x3fe   :  { %v3475_v26 = vpop.f32.mrf.mxu0 }
 0x3ff   :  { %v2438_v11 = vadd.f32 %v3475_v26, %v4267_v9 }
 0x400   :  { %v2429_v59 = vpop.f32.mrf.mxu0 }
 0x401   :  { %v2693_v5 = vmul.f32 %v4272_v31, %v2438_v11  ;;  %v2430_v4 = vadd.f32 %v4267_v9, %v2429_v59 }
 0x402   :  { %v3476_v12 = vpop.f32.mrf.mxu0 }
 0x403   :  { %2757 = vst [vmem:[%s4606_s12 + $0x10] sm:$0xff] %v2693_v5  ;;  %v2691_v14 = vmul.f32 %v4272_v31, %v2430_v4  ;;  %v2441_v15 = vadd.f32 %v3476_v12, %v4267_v9 }
 0x404   :  { %v2432_v16 = vpop.f32.mrf.mxu0 }
 0x405   :  { %2755 = vst [vmem:[%s4606_s12] sm:$0xff] %v2691_v14  ;;  %v2694_v18 = vmul.f32 %v4272_v31, %v2441_v15  ;;  %v2433_v19 = vadd.f32 %v4267_v9, %v2432_v16 }
 0x406   :  { %v3479_v21 = vpop.f32.mrf.mxu0 }
 0x407   :  { %2758 = vst [vmem:[%s4606_s12 + $0x18] sm:$0xff] %v2694_v18  ;;  %v2692_v23 = vmul.f32 %v4272_v31, %v2433_v19  ;;  %v2454_v35 = vadd.f32 %v3479_v21, %v4267_v9 }
 0x408   :  { %v2445_v24 = vpop.f32.mrf.mxu0 }
 0x409   :  { %2756 = vst [vmem:[%s4606_s12 + $0x8] sm:$0xff] %v2692_v23  ;;  %v2697_v45 = vmul.f32 %v4272_v31, %v2454_v35  ;;  %v2446_v13 = vadd.f32 %v4267_v9, %v2445_v24 }
 0x40a   :  { %v3480_v25 = vpop.f32.mrf.mxu0 }
 0x40b   :  { %2761 = vst [vmem:[%s4606_s12 + $0x30] sm:$0xff] %v2697_v45  ;;  %v2695_v22 = vmul.f32 %v4272_v31, %v2446_v13  ;;  %v2457_v27 = vadd.f32 %v3480_v25, %v4267_v9 }
 0x40c   :  { %v2448_v28 = vpop.f32.mrf.mxu0 }
 0x40d   :  { %2759 = vst [vmem:[%s4606_s12 + $0x20] sm:$0xff] %v2695_v22  ;;  %v2698_v29 = vmul.f32 %v4272_v31, %v2457_v27  ;;  %v2449_v32 = vadd.f32 %v4267_v9, %v2448_v28 }
 0x40e   :  { %v3483_v33 = vpop.f32.mrf.mxu0 }
 0x40f   :  { %2762 = vst [vmem:[%s4606_s12 + $0x38] sm:$0xff] %v2698_v29  ;;  %v2696_v34 = vmul.f32 %v4272_v31, %v2449_v32  ;;  %v2470_v54 = vadd.f32 %v3483_v33, %v4267_v9 }
 0x410   :  { %v2461_v36 = vpop.f32.mrf.mxu0 }
 0x411   :  { %2760 = vst [vmem:[%s4606_s12 + $0x28] sm:$0xff] %v2696_v34  ;;  %v2701_v10 = vmul.f32 %v4272_v31, %v2470_v54  ;;  %v2462_v38 = vadd.f32 %v4267_v9, %v2461_v36 }
 0x412   :  { %v3484_v41 = vpop.f32.mrf.mxu0 }
 0x413   :  { %2765 = vst [vmem:[%s4606_s12 + $0x50] sm:$0xff] %v2701_v10  ;;  %v2699_v37 = vmul.f32 %v4272_v31, %v2462_v38  ;;  %v2473_v39 = vadd.f32 %v3484_v41, %v4267_v9 }
 0x414   :  { %v2464_v40 = vpop.f32.mrf.mxu0 }
 0x415   :  { %2763 = vst [vmem:[%s4606_s12 + $0x40] sm:$0xff] %v2699_v37  ;;  %v2702_v42 = vmul.f32 %v4272_v31, %v2473_v39  ;;  %v2465_v43 = vadd.f32 %v4267_v9, %v2464_v40 }
 0x416   :  { %v3487_v46 = vpop.f32.mrf.mxu0 }
 0x417   :  { %2766 = vst [vmem:[%s4606_s12 + $0x58] sm:$0xff] %v2702_v42  ;;  %v2700_v47 = vmul.f32 %v4272_v31, %v2465_v43  ;;  %v2486_v48 = vadd.f32 %v3487_v46, %v4267_v9 }
 0x418   :  { %v2477_v30 = vpop.f32.mrf.mxu0 }
 0x419   :  { %2764 = vst [vmem:[%s4606_s12 + $0x48] sm:$0xff] %v2700_v47  ;;  %v2705_v49 = vmul.f32 %v4272_v31, %v2486_v48  ;;  %v2478_v51 = vadd.f32 %v4267_v9, %v2477_v30 }
 0x41a   :  { %v3488_v63 = vpop.f32.mrf.mxu0 }
 0x41b   :  { %2769 = vst [vmem:[%s4606_s12 + $0x70] sm:$0xff] %v2705_v49  ;;  %v2703_v50 = vmul.f32 %v4272_v31, %v2478_v51  ;;  %v2489_v0 = vadd.f32 %v3488_v63, %v4267_v9 }
 0x41c   :  { %v2480_v52 = vpop.f32.mrf.mxu0 }
 0x41d   :  { %2767 = vst [vmem:[%s4606_s12 + $0x60] sm:$0xff] %v2703_v50  ;;  %v2706_v8 = vmul.f32 %v4272_v31, %v2489_v0  ;;  %v2481_v53 = vadd.f32 %v4267_v9, %v2480_v52 }
 0x41e   :  { %v3491_v55 = vpop.f32.mrf.mxu0 }
 0x41f   :  { %2770 = vst [vmem:[%s4606_s12 + $0x78] sm:$0xff] %v2706_v8  ;;  %v2704_v56 = vmul.f32 %v4272_v31, %v2481_v53  ;;  %v2502_v57 = vadd.f32 %v3491_v55, %v4267_v9 }
 0x420   :  { %v2493_v58 = vpop.f32.mrf.mxu0 }
 0x421   :  { %2768 = vst [vmem:[%s4606_s12 + $0x68] sm:$0xff] %v2704_v56  ;;  %v2709_v60 = vmul.f32 %v4272_v31, %v2502_v57  ;;  %v2494_v61 = vadd.f32 %v4267_v9, %v2493_v58 }
 0x422   :  { %v3492_v62 = vpop.f32.mrf.mxu0 }
 0x423   :  { %2773 = vst [vmem:[%s4606_s12 + $0x90] sm:$0xff] %v2709_v60  ;;  %v2707_v20 = vmul.f32 %v4272_v31, %v2494_v61  ;;  %v2505_v44 = vadd.f32 %v3492_v62, %v4267_v9 }
 0x424   :  { %v2496_v1 = vpop.f32.mrf.mxu0 }
 0x425   :  { %2771 = vst [vmem:[%s4606_s12 + $0x80] sm:$0xff] %v2707_v20  ;;  %v2710_v2 = vmul.f32 %v4272_v31, %v2505_v44  ;;  %v2497_v3 = vadd.f32 %v4267_v9, %v2496_v1 }
 0x426   :  { %v3495_v6 = vpop.f32.mrf.mxu0 }
 0x427   :  { %2774 = vst [vmem:[%s4606_s12 + $0x98] sm:$0xff] %v2710_v2  ;;  %v2708_v17 = vmul.f32 %v4272_v31, %v2497_v3  ;;  %v2518_v7 = vadd.f32 %v3495_v6, %v4267_v9 }
 0x428   :  { %v2509_v26 = vpop.f32.mrf.mxu0 }
 0x429   :  { %2772 = vst [vmem:[%s4606_s12 + $0x88] sm:$0xff] %v2708_v17  ;;  %v2713_v11 = vmul.f32 %v4272_v31, %v2518_v7  ;;  %v2510_v59 = vadd.f32 %v4267_v9, %v2509_v26 }
 0x42a   :  { %v3496_v5 = vpop.f32.mrf.mxu0 }
 0x42b   :  { %2777 = vst [vmem:[%s4606_s12 + $0xb0] sm:$0xff] %v2713_v11  ;;  %v2711_v4 = vmul.f32 %v4272_v31, %v2510_v59  ;;  %v2521_v12 = vadd.f32 %v3496_v5, %v4267_v9 }
 0x42c   :  { %v2512_v14 = vpop.f32.mrf.mxu0 }
 0x42d   :  { %2775 = vst [vmem:[%s4606_s12 + $0xa0] sm:$0xff] %v2711_v4  ;;  %v2714_v15 = vmul.f32 %v4272_v31, %v2521_v12  ;;  %v2513_v16 = vadd.f32 %v4267_v9, %v2512_v14 }
 0x42e   :  { %v3499_v18 = vpop.f32.mrf.mxu0 }
 0x42f   :  { %2778 = vst [vmem:[%s4606_s12 + $0xb8] sm:$0xff] %v2714_v15  ;;  %v2712_v19 = vmul.f32 %v4272_v31, %v2513_v16  ;;  %v2534_v21 = vadd.f32 %v3499_v18, %v4267_v9 }
 0x430   :  { %v2525_v23 = vpop.f32.mrf.mxu0 }
 0x431   :  { %2776 = vst [vmem:[%s4606_s12 + $0xa8] sm:$0xff] %v2712_v19  ;;  %v2717_v35 = vmul.f32 %v4272_v31, %v2534_v21  ;;  %v2526_v24 = vadd.f32 %v4267_v9, %v2525_v23 }
 0x432   :  { %v3500_v45 = vpop.f32.mrf.mxu0 }
 0x433   :  { %2781 = vst [vmem:[%s4606_s12 + $0xd0] sm:$0xff] %v2717_v35  ;;  %v2715_v13 = vmul.f32 %v4272_v31, %v2526_v24  ;;  %v2537_v25 = vadd.f32 %v3500_v45, %v4267_v9 }
 0x434   :  { %v2528_v22 = vpop.f32.mrf.mxu0 }
 0x435   :  { %2779 = vst [vmem:[%s4606_s12 + $0xc0] sm:$0xff] %v2715_v13  ;;  %v2718_v27 = vmul.f32 %v4272_v31, %v2537_v25  ;;  %v2529_v28 = vadd.f32 %v4267_v9, %v2528_v22 }
 0x436   :  { %v3503_v29 = vpop.f32.mrf.mxu0 }
 0x437   :  { %2782 = vst [vmem:[%s4606_s12 + $0xd8] sm:$0xff] %v2718_v27  ;;  %v2716_v32 = vmul.f32 %v4272_v31, %v2529_v28  ;;  %v2550_v33 = vadd.f32 %v3503_v29, %v4267_v9 }
 0x438   :  { %v2541_v34 = vpop.f32.mrf.mxu0 }
 0x439   :  { %2780 = vst [vmem:[%s4606_s12 + $0xc8] sm:$0xff] %v2716_v32  ;;  %v2721_v54 = vmul.f32 %v4272_v31, %v2550_v33  ;;  %v2542_v36 = vadd.f32 %v4267_v9, %v2541_v34 }
 0x43a   :  { %v3504_v10 = vpop.f32.mrf.mxu0 }
 0x43b   :  { %2785 = vst [vmem:[%s4606_s12 + $0xf0] sm:$0xff] %v2721_v54  ;;  %v2719_v38 = vmul.f32 %v4272_v31, %v2542_v36  ;;  %v2553_v41 = vadd.f32 %v3504_v10, %v4267_v9 }
 0x43c   :  { %v2544_v37 = vpop.f32.mrf.mxu0 }
 0x43d   :  { %2783 = vst [vmem:[%s4606_s12 + $0xe0] sm:$0xff] %v2719_v38  ;;  %v2722_v39 = vmul.f32 %v4272_v31, %v2553_v41  ;;  %v2545_v40 = vadd.f32 %v4267_v9, %v2544_v37 }
 0x43e   :  { %v3507_v42 = vpop.f32.mrf.mxu0 }
 0x43f   :  { %2786 = vst [vmem:[%s4606_s12 + $0xf8] sm:$0xff] %v2722_v39  ;;  %v2720_v43 = vmul.f32 %v4272_v31, %v2545_v40  ;;  %v2566_v46 = vadd.f32 %v3507_v42, %v4267_v9 }
 0x440   :  { %v2557_v47 = vpop.f32.mrf.mxu0 }
 0x441   :  { %2784 = vst [vmem:[%s4606_s12 + $0xe8] sm:$0xff] %v2720_v43  ;;  %v2725_v48 = vmul.f32 %v4272_v31, %v2566_v46  ;;  %v2558_v30 = vadd.f32 %v4267_v9, %v2557_v47 }
 0x442   :  { %v3508_v49 = vpop.f32.mrf.mxu0 }
 0x443   :  { %2789 = vst [vmem:[%s4606_s12 + $0x110] sm:$0xff] %v2725_v48  ;;  %v2723_v51 = vmul.f32 %v4272_v31, %v2558_v30  ;;  %v2569_v63 = vadd.f32 %v3508_v49, %v4267_v9 }
 0x444   :  { %v2560_v50 = vpop.f32.mrf.mxu0 }
 0x445   :  { %2787 = vst [vmem:[%s4606_s12 + $0x100] sm:$0xff] %v2723_v51  ;;  %v2726_v0 = vmul.f32 %v4272_v31, %v2569_v63  ;;  %v2561_v52 = vadd.f32 %v4267_v9, %v2560_v50 }
 0x446   :  { %v3511_v8 = vpop.f32.mrf.mxu0 }
 0x447   :  { %2790 = vst [vmem:[%s4606_s12 + $0x118] sm:$0xff] %v2726_v0  ;;  %v2724_v53 = vmul.f32 %v4272_v31, %v2561_v52  ;;  %v2582_v55 = vadd.f32 %v3511_v8, %v4267_v9 }
 0x448   :  { %v2573_v56 = vpop.f32.mrf.mxu0 }
 0x449   :  { %2788 = vst [vmem:[%s4606_s12 + $0x108] sm:$0xff] %v2724_v53  ;;  %v2729_v57 = vmul.f32 %v4272_v31, %v2582_v55  ;;  %v2574_v58 = vadd.f32 %v4267_v9, %v2573_v56 }
 0x44a   :  { %v3512_v60 = vpop.f32.mrf.mxu0 }
 0x44b   :  { %2793 = vst [vmem:[%s4606_s12 + $0x130] sm:$0xff] %v2729_v57  ;;  %v2727_v61 = vmul.f32 %v4272_v31, %v2574_v58  ;;  %v2585_v62 = vadd.f32 %v3512_v60, %v4267_v9 }
 0x44c   :  { %v2576_v20 = vpop.f32.mrf.mxu0 }
 0x44d   :  { %2791 = vst [vmem:[%s4606_s12 + $0x120] sm:$0xff] %v2727_v61  ;;  %v2730_v44 = vmul.f32 %v4272_v31, %v2585_v62  ;;  %v2577_v1 = vadd.f32 %v4267_v9, %v2576_v20 }
 0x44e   :  { %v3515_v2 = vpop.f32.mrf.mxu0 }
 0x44f   :  { %2794 = vst [vmem:[%s4606_s12 + $0x138] sm:$0xff] %v2730_v44  ;;  %v2728_v3 = vmul.f32 %v4272_v31, %v2577_v1  ;;  %v2598_v6 = vadd.f32 %v3515_v2, %v4267_v9 }
 0x450   :  { %v2589_v17 = vpop.f32.mrf.mxu0 }
 0x451   :  { %2792 = vst [vmem:[%s4606_s12 + $0x128] sm:$0xff] %v2728_v3  ;;  %v2733_v7 = vmul.f32 %v4272_v31, %v2598_v6  ;;  %v2590_v26 = vadd.f32 %v4267_v9, %v2589_v17 }
 0x452   :  { %v3516_v11 = vpop.f32.mrf.mxu0 }
 0x453   :  { %2797 = vst [vmem:[%s4606_s12 + $0x150] sm:$0xff] %v2733_v7  ;;  %v2731_v59 = vmul.f32 %v4272_v31, %v2590_v26  ;;  %v2601_v5 = vadd.f32 %v3516_v11, %v4267_v9 }
 0x454   :  { %v2592_v4 = vpop.f32.mrf.mxu0 }
 0x455   :  { %2795 = vst [vmem:[%s4606_s12 + $0x140] sm:$0xff] %v2731_v59  ;;  %v2734_v12 = vmul.f32 %v4272_v31, %v2601_v5  ;;  %v2593_v14 = vadd.f32 %v4267_v9, %v2592_v4 }
 0x456   :  { %v3519_v15 = vpop.f32.mrf.mxu0 }
 0x457   :  { %2798 = vst [vmem:[%s4606_s12 + $0x158] sm:$0xff] %v2734_v12  ;;  %v2732_v16 = vmul.f32 %v4272_v31, %v2593_v14  ;;  %v2614_v18 = vadd.f32 %v3519_v15, %v4267_v9 }
 0x458   :  { %v2605_v19 = vpop.f32.mrf.mxu0 }
 0x459   :  { %2796 = vst [vmem:[%s4606_s12 + $0x148] sm:$0xff] %v2732_v16  ;;  %v2737_v21 = vmul.f32 %v4272_v31, %v2614_v18  ;;  %v2606_v23 = vadd.f32 %v4267_v9, %v2605_v19 }
 0x45a   :  { %v3520_v35 = vpop.f32.mrf.mxu0 }
 0x45b   :  { %2801 = vst [vmem:[%s4606_s12 + $0x170] sm:$0xff] %v2737_v21  ;;  %v2735_v24 = vmul.f32 %v4272_v31, %v2606_v23  ;;  %v2617_v45 = vadd.f32 %v3520_v35, %v4267_v9 }
 0x45c   :  { %v2608_v13 = vpop.f32.mrf.mxu0 }
 0x45d   :  { %2799 = vst [vmem:[%s4606_s12 + $0x160] sm:$0xff] %v2735_v24  ;;  %v2738_v25 = vmul.f32 %v4272_v31, %v2617_v45  ;;  %v2609_v22 = vadd.f32 %v4267_v9, %v2608_v13 }
 0x45e   :  { %v3523_v27 = vpop.f32.mrf.mxu0 }
 0x45f   :  { %2802 = vst [vmem:[%s4606_s12 + $0x178] sm:$0xff] %v2738_v25  ;;  %v2736_v28 = vmul.f32 %v4272_v31, %v2609_v22  ;;  %v2630_v29 = vadd.f32 %v3523_v27, %v4267_v9 }
 0x460   :  { %v2621_v32 = vpop.f32.mrf.mxu0 }
 0x461   :  { %2800 = vst [vmem:[%s4606_s12 + $0x168] sm:$0xff] %v2736_v28  ;;  %v2741_v33 = vmul.f32 %v4272_v31, %v2630_v29  ;;  %v2622_v34 = vadd.f32 %v4267_v9, %v2621_v32 }
 0x462   :  { %v3524_v54 = vpop.f32.mrf.mxu0 }
 0x463   :  { %2805 = vst [vmem:[%s4606_s12 + $0x190] sm:$0xff] %v2741_v33  ;;  %v2739_v36 = vmul.f32 %v4272_v31, %v2622_v34  ;;  %v2633_v10 = vadd.f32 %v3524_v54, %v4267_v9 }
 0x464   :  { %v2624_v38 = vpop.f32.mrf.mxu0 }
 0x465   :  { %2803 = vst [vmem:[%s4606_s12 + $0x180] sm:$0xff] %v2739_v36  ;;  %v2742_v41 = vmul.f32 %v4272_v31, %v2633_v10  ;;  %v2625_v37 = vadd.f32 %v4267_v9, %v2624_v38 }
 0x466   :  { %v3527_v39 = vpop.f32.mrf.mxu0 }
 0x467   :  { %2806 = vst [vmem:[%s4606_s12 + $0x198] sm:$0xff] %v2742_v41  ;;  %v2740_v40 = vmul.f32 %v4272_v31, %v2625_v37  ;;  %v2646_v42 = vadd.f32 %v3527_v39, %v4267_v9 }
 0x468   :  { %v2637_v43 = vpop.f32.mrf.mxu0 }
 0x469   :  { %2804 = vst [vmem:[%s4606_s12 + $0x188] sm:$0xff] %v2740_v40  ;;  %v2745_v46 = vmul.f32 %v4272_v31, %v2646_v42  ;;  %v2638_v47 = vadd.f32 %v4267_v9, %v2637_v43 }
 0x46a   :  { %v3528_v48 = vpop.f32.mrf.mxu0 }
 0x46b   :  { %2809 = vst [vmem:[%s4606_s12 + $0x1b0] sm:$0xff] %v2745_v46  ;;  %v2743_v30 = vmul.f32 %v4272_v31, %v2638_v47  ;;  %v2649_v49 = vadd.f32 %v3528_v48, %v4267_v9 }
 0x46c   :  { %v2640_v51 = vpop.f32.mrf.mxu0 }
 0x46d   :  { %2807 = vst [vmem:[%s4606_s12 + $0x1a0] sm:$0xff] %v2743_v30  ;;  %v2746_v63 = vmul.f32 %v4272_v31, %v2649_v49  ;;  %v2641_v50 = vadd.f32 %v4267_v9, %v2640_v51 }
 0x46e   :  { %v3531_v0 = vpop.f32.mrf.mxu0 }
 0x46f   :  { %2810 = vst [vmem:[%s4606_s12 + $0x1b8] sm:$0xff] %v2746_v63  ;;  %v2744_v52 = vmul.f32 %v4272_v31, %v2641_v50  ;;  %v2662_v8 = vadd.f32 %v3531_v0, %v4267_v9 }
 0x470   :  { %v2653_v53 = vpop.f32.mrf.mxu0 }
 0x471   :  { %2808 = vst [vmem:[%s4606_s12 + $0x1a8] sm:$0xff] %v2744_v52  ;;  %v2749_v55 = vmul.f32 %v4272_v31, %v2662_v8  ;;  %v2654_v56 = vadd.f32 %v4267_v9, %v2653_v53 }
 0x472   :  { %v3532_v57 = vpop.f32.mrf.mxu0 }
 0x473   :  { %2813 = vst [vmem:[%s4606_s12 + $0x1d0] sm:$0xff] %v2749_v55  ;;  %v2747_v58 = vmul.f32 %v4272_v31, %v2654_v56  ;;  %v2665_v60 = vadd.f32 %v3532_v57, %v4267_v9 }
 0x474   :  { %v2656_v61 = vpop.f32.mrf.mxu0 }
 0x475   :  { %2811 = vst [vmem:[%s4606_s12 + $0x1c0] sm:$0xff] %v2747_v58  ;;  %v2750_v62 = vmul.f32 %v4272_v31, %v2665_v60  ;;  %v2657_v20 = vadd.f32 %v4267_v9, %v2656_v61 }
 0x476   :  { %v3535_v44 = vpop.f32.mrf.mxu0 }
 0x477   :  { %2814 = vst [vmem:[%s4606_s12 + $0x1d8] sm:$0xff] %v2750_v62  ;;  %v2748_v1 = vmul.f32 %v4272_v31, %v2657_v20  ;;  %v2678_v2 = vadd.f32 %v3535_v44, %v4267_v9 }
 0x478   :  { %v2669_v3 = vpop.f32.mrf.mxu0 }
 0x479   :  { %2812 = vst [vmem:[%s4606_s12 + $0x1c8] sm:$0xff] %v2748_v1  ;;  %v2753_v6 = vmul.f32 %v4272_v31, %v2678_v2  ;;  %v2670_v17 = vadd.f32 %v4267_v9, %v2669_v3 }
 0x47a   :  { %v3536_v7 = vpop.f32.mrf.mxu0 }
 0x47b   :  { %2817 = vst [vmem:[%s4606_s12 + $0x1f0] sm:$0xff] %v2753_v6  ;;  %v2751_v26 = vmul.f32 %v4272_v31, %v2670_v17  ;;  %v2681_v11 = vadd.f32 %v3536_v7, %v4267_v9 }
 0x47c   :  { %v2672_v59 = vpop.f32.mrf.mxu0 }
 0x47d   :  { %2815 = vst [vmem:[%s4606_s12 + $0x1e0] sm:$0xff] %v2751_v26  ;;  %v2754_v5 = vmul.f32 %v4272_v31, %v2681_v11  ;;  %v2673_v4 = vadd.f32 %v4267_v9, %v2672_v59 }
 0x47f   :  { %2818 = vst [vmem:[%s4606_s12 + $0x1f8] sm:$0xff] %v2754_v5  ;;  %v2752_v12 = vmul.f32 %v4272_v31, %v2673_v4 }
 0x481   :  { %2816 = vst [vmem:[%s4606_s12 + $0x1e8] sm:$0xff] %v2752_v12 }

// kernel: clcpnet_forward.2
= control target key start
LH: loop header
LB: loop body
LE: loop exit
PB: predicated region body
PF: predicated region fallthrough
CT: control target
= control target key end

     0   :  { %vm278_vm0 = vcmask 130048   ;;  %vm783_vm1 = vcmask 261120   ;;  %s4726_s1 = inlined_call_operand.vmem [shape: bf16[16,32], index: 1, kind: input, shape index: {}]   ;;  %s4727_s0 = inlined_call_operand.vmem [shape: bf16[512,16], index: 0, kind: input, shape index: {}]   ;;  %s4728_s3 = inlined_call_operand.vmem [shape: bf16[32,32], index: 3, kind: input, shape index: {}]   ;;  %s4729_s2 = inlined_call_operand.vmem [shape: f32[1,32], index: 2, kind: input, shape index: {}]   ;;  %s4730_s5 = inlined_call_operand.vmem [shape: bf16[32,32], index: 5, kind: input, shape index: {}]   ;;  %s4731_s7 = inlined_call_operand.vmem [shape: bf16[32,32], index: 7, kind: input, shape index: {}]   ;;  %s4732_s4 = inlined_call_operand.vmem [shape: f32[1,32], index: 4, kind: input, shape index: {}]   ;;  %s4733_s9 = inlined_call_operand.vmem [shape: bf16[32,128], index: 9, kind: input, shape index: {}]   ;;  %s4734_s6 = inlined_call_operand.vmem [shape: f32[1,32], index: 6, kind: input, shape index: {}]   ;;  %s4735_s8 = inlined_call_operand.vmem [shape: f32[1,32], index: 8, kind: input, shape index: {}]   ;;  %s4736_s10 = inlined_call_operand.vmem [shape: f32[1,128], index: 10, kind: input, shape index: {}]   ;;  %s4737_s11 = inlined_call_operand.vmem [shape: f32[1,1,128], index: 11, kind: output, shape index: {}]  }
   0x1   :  { %v3935_v0 = vld [vmem:[%s4726_s1] sm:$0xff]   ;;  %v3937_v2 = vld [vmem:[%s4727_s0 + $0x8] sm:$0xff]   ;;  %v3938_v3 = vld [vmem:[%s4727_s0 + $0x10] sm:$0xff]  }
   0x2   :  { %v3936_v1 = vld [vmem:[%s4727_s0] sm:$0xff]   ;;  %3595 = vmatprep.subr.bf16.mxu0 %v3935_v0  ;;  %3933 = vmatprep.subr.bf16.mxu1 %v3935_v0  ;;  %v3939_v4 = vld [vmem:[%s4727_s0 + $0x18] sm:$0xff]   ;;  %v3941_v6 = vld [vmem:[%s4727_s0 + $0x28] sm:$0xff]  }
   0x3   :  { %3596 = vmatpush3.bf16.msra.mxu0 %v3935_v0  ;;  %3597 = vmatprep.mubr.msk.bf16.mxu0 %vm278_vm0, %v3936_v1  ;;  %v3940_v5 = vld [vmem:[%s4727_s0 + $0x20] sm:$0xff]   ;;  %v3942_v7 = vld [vmem:[%s4727_s0 + $0x30] sm:$0xff]   ;;  %v3953_v9 = vld [vmem:[%s4727_s0 + $0x88] sm:$0xff]  }
   0x4   :  { %3934 = vmatpush3.bf16.msra.mxu1 %v3935_v0  ;;  %v3952_v8 = vld [vmem:[%s4727_s0 + $0x80] sm:$0xff]   ;;  %v3954_v10 = vld [vmem:[%s4727_s0 + $0x90] sm:$0xff]   ;;  %v3955_v11 = vld [vmem:[%s4727_s0 + $0x98] sm:$0xff]  }
   0x5   :  { %3629 = vmatprep.mubr.msk.bf16.mxu1 %vm278_vm0, %v3952_v8  ;;  %v3956_v12 = vld [vmem:[%s4727_s0 + $0xa0] sm:$0xff]   ;;  %v3943_v13 = vld [vmem:[%s4727_s0 + $0x38] sm:$0xff]   ;;  %v3957_v15 = vld [vmem:[%s4727_s0 + $0xa8] sm:$0xff]  }
   0x6   :  { %3598 = vmatmul.mubr.msk.bf16.vlgmr.msra.gmra.mxu0 %vm278_vm0, %v3937_v2  ;;  %v3944_v14 = vld [vmem:[%s4727_s0 + $0x40] sm:$0xff]   ;;  %v3945_v16 = vld [vmem:[%s4727_s0 + $0x48] sm:$0xff]   ;;  %v3958_v17 = vld [vmem:[%s4727_s0 + $0xb0] sm:$0xff]  }
   0x7   :  { %3601 = vmatprep.mubr.msk.bf16.mxu0 %vm278_vm0, %v3938_v3  ;;  %3630 = vmatmul.mubr.msk.bf16.vlgmr.msra.gmra.mxu1 %vm278_vm0, %v3953_v9  ;;  %v3968_v18 = vld [vmem:[%s4728_s3 + $0x8] sm:$0xff]   ;;  %v3969_v19 = vld [vmem:[%s4728_s3] sm:$0xff]   ;;  %v3946_v20 = vld [vmem:[%s4727_s0 + $0x50] sm:$0xff]  }
   0x8   :  { %3633 = vmatprep.mubr.msk.bf16.mxu1 %vm278_vm0, %v3954_v10  ;;  %3661 = vmatprep.subr.bf16.mxu1 %v3968_v18  ;;  %v3959_v21 = vld [vmem:[%s4727_s0 + $0xb8] sm:$0xff]   ;;  %v3960_v22 = vld [vmem:[%s4727_s0 + $0xc0] sm:$0xff]   ;;  %v3961_v25 = vld [vmem:[%s4727_s0 + $0xc8] sm:$0xff]  }
   0x9   :  { %3662 = vmatpush3.bf16.msra.mxu1 %v3968_v18  ;;  %v3947_v23 = vld [vmem:[%s4727_s0 + $0x58] sm:$0xff]   ;;  %v3948_v24 = vld [vmem:[%s4727_s0 + $0x60] sm:$0xff]   ;;  %v3962_v26 = vld [vmem:[%s4727_s0 + $0xd0] sm:$0xff]  }
   0xa   :  { %3663 = vmatprep.subr.bf16.mxu1 %v3969_v19  ;;  %v3949_v27 = vld [vmem:[%s4727_s0 + $0x68] sm:$0xff]   ;;  %v3950_v28 = vld [vmem:[%s4727_s0 + $0x70] sm:$0xff]   ;;  %v3963_v29 = vld [vmem:[%s4727_s0 + $0xd8] sm:$0xff]  }
   0xb   :  { %v3964_v30 = vld [vmem:[%s4727_s0 + $0xe0] sm:$0xff]   ;;  %v3951_v31 = vld [vmem:[%s4727_s0 + $0x78] sm:$0xff]   ;;  %v3965_v32 = vld [vmem:[%s4727_s0 + $0xe8] sm:$0xff]  }
   0xc   :  { %v3966_v33 = vld [vmem:[%s4727_s0 + $0xf0] sm:$0xff]   ;;  %v3967_v34 = vld [vmem:[%s4727_s0 + $0xf8] sm:$0xff]   ;;  %v4176_v37 = vld [vmem:[%s4729_s2] ss:$0 sm:$0xff] }
   0xd   :  { %3664 = vmatpush3.bf16.msra.mxu1 %v3969_v19  ;;  %v3970_v44 = vld [vmem:[%s4730_s5 + $0x8] sm:$0xff]   ;;  %v3971_v47 = vld [vmem:[%s4730_s5] sm:$0xff]  }
   0xe   :  { %3602 = vmatmul.mubr.msk.bf16.gmra.mxu0 %vm278_vm0, %v3939_v4  ;;  %3729 = vmatprep.subr.bf16.mxu0 %v3970_v44 }
   0xf   :  { %3605 = vmatprep.mubr.msk.bf16.mxu0 %vm278_vm0, %v3940_v5  ;;  %3634 = vmatmul.mubr.msk.bf16.gmra.mxu1 %vm278_vm0, %v3955_v11 }
  0x10   :  { %3637 = vmatprep.mubr.msk.bf16.mxu1 %vm278_vm0, %v3956_v12  ;;  %3730 = vmatpush3.bf16.msra.mxu0 %v3970_v44 }
  0x11   :  { %3731 = vmatprep.subr.bf16.mxu0 %v3971_v47 }
  0x14   :  { %3732 = vmatpush3.bf16.msra.mxu0 %v3971_v47 }
  0x16   :  { %3606 = vmatmul.mubr.msk.bf16.gmra.mxu0 %vm278_vm0, %v3941_v6 }
  0x17   :  { %3609 = vmatprep.mubr.msk.bf16.mxu0 %vm278_vm0, %v3942_v7  ;;  %3638 = vmatmul.mubr.msk.bf16.gmra.mxu1 %vm278_vm0, %v3957_v15 }
  0x18   :  { %3641 = vmatprep.mubr.msk.bf16.mxu1 %vm278_vm0, %v3958_v17 }
  0x1e   :  { %3610 = vmatmul.mubr.msk.bf16.gmra.mxu0 %vm278_vm0, %v3943_v13 }
  0x1f   :  { %3613 = vmatprep.mubr.msk.bf16.mxu0 %vm278_vm0, %v3944_v14  ;;  %3642 = vmatmul.mubr.msk.bf16.gmra.mxu1 %vm278_vm0, %v3959_v21 }
  0x20   :  { %3645 = vmatprep.mubr.msk.bf16.mxu1 %vm278_vm0, %v3960_v22 }
  0x26   :  { %3614 = vmatmul.mubr.msk.bf16.gmra.mxu0 %vm278_vm0, %v3945_v16 }
  0x27   :  { %3617 = vmatprep.mubr.msk.bf16.mxu0 %vm278_vm0, %v3946_v20  ;;  %3646 = vmatmul.mubr.msk.bf16.gmra.mxu1 %vm278_vm0, %v3961_v25 }
  0x28   :  { %3649 = vmatprep.mubr.msk.bf16.mxu1 %vm278_vm0, %v3962_v26 }
  0x2e   :  { %3618 = vmatmul.mubr.msk.bf16.gmra.mxu0 %vm278_vm0, %v3947_v23 }
  0x2f   :  { %3621 = vmatprep.mubr.msk.bf16.mxu0 %vm278_vm0, %v3948_v24  ;;  %3650 = vmatmul.mubr.msk.bf16.gmra.mxu1 %vm278_vm0, %v3963_v29 }
  0x30   :  { %3653 = vmatprep.mubr.msk.bf16.mxu1 %vm278_vm0, %v3964_v30 }
  0x36   :  { %3622 = vmatmul.mubr.msk.bf16.gmra.mxu0 %vm278_vm0, %v3949_v27 }
  0x37   :  { %3625 = vmatprep.mubr.msk.bf16.mxu0 %vm278_vm0, %v3950_v28  ;;  %3654 = vmatmul.mubr.msk.bf16.gmra.mxu1 %vm278_vm0, %v3965_v32 }
  0x38   :  { %3657 = vmatprep.mubr.msk.bf16.mxu1 %vm278_vm0, %v3966_v33 }
  0x3e   :  { %3626 = vmatmul.mubr.msk.bf16.gmra.mxu0 %vm278_vm0, %v3951_v31 }
  0x3f   :  { %3658 = vmatmul.mubr.msk.bf16.gmra.mxu1 %vm278_vm0, %v3967_v34 }
  0xc6   :  { %v3599_v35 = vpop.f32.mrf.mxu0 }
  0xc7   :  { %v418_v41 = vadd.f32 %v3599_v35, %v4176_v37  ;;  %v4193_v59 = vpop.f32.mrf.mxu1 }
  0xc8   :  { %v409_v36 = vpop.f32.mrf.mxu0 }
  0xc9   :  { %v410_v39 = vadd.f32 %v4176_v37, %v409_v36  ;;  %v666_v50 = vmax.f32 %v418_v41, 0.0  ;;  %v4196_v63 = vpop.f32.mrf.mxu1 }
  0xca   :  { %v3600_v38 = vpop.f32.mrf.mxu0 }
  0xcb   :  { %v421_v40 = vadd.f32 %v3600_v38, %v4176_v37  ;;  %v664_v48 = vmax.f32 %v410_v39, 0.0  ;;  %v4198_v4 = vpop.f32.mrf.mxu1 }
  0xcc   :  { %v412_v42 = vpop.f32.mrf.mxu0 }
  0xcd   :  { %v413_v43 = vadd.f32 %v4176_v37, %v412_v42  ;;  %v667_v45 = vmax.f32 %v421_v40, 0.0  ;;  %v4200_v8 = vpop.f32.mrf.mxu1 }
  0xce   :  { %v3603_v46 = vpop.f32.mrf.mxu0 }
  0xcf   :  { %v665_v49 = vmax.f32 %v413_v43, 0.0  ;;  %v729_v53 = vpack.c.bf16 %v667_v45, %v666_v50  ;;  %v434_v57 = vadd.f32 %v3603_v46, %v4176_v37  ;;  %v4207_v13 = vpop.f32.mrf.mxu1 }
  0xd0   :  { %v425_v51 = vpop.f32.mrf.mxu0 }
  0xd1   :  { %v728_v52 = vpack.c.bf16 %v665_v49, %v664_v48  ;;  %v426_v55 = vadd.f32 %v4176_v37, %v425_v51  ;;  %v670_v2 = vmax.f32 %v434_v57, 0.0  ;;  %v4210_v17 = vpop.f32.mrf.mxu1 }
  0xd2   :  { %v3604_v54 = vpop.f32.mrf.mxu0 }
  0xd3   :  { %v437_v56 = vadd.f32 %v3604_v54, %v4176_v37  ;;  %3665 = vmatprep.mubr.msk.bf16.mxu1 %vm783_vm1, %v728_v52  ;;  %v668_v0 = vmax.f32 %v426_v55, 0.0  ;;  %v4212_v22 = vpop.f32.mrf.mxu1 }
  0xd4   :  { %v428_v58 = vpop.f32.mrf.mxu0  ;;  %3666 = vmatmul.mubr.msk.bf16.vlgmr.msra.gmra.mxu1 %vm783_vm1, %v729_v53 }
  0xd5   :  { %v429_v60 = vadd.f32 %v4176_v37, %v428_v58  ;;  %v671_v61 = vmax.f32 %v437_v56, 0.0  ;;  %v4214_v26 = vpop.f32.mrf.mxu1 }
  0xd6   :  { %v3607_v62 = vpop.f32.mrf.mxu0 }
  0xd7   :  { %v669_v1 = vmax.f32 %v429_v60, 0.0  ;;  %v731_v6 = vpack.c.bf16 %v671_v61, %v670_v2  ;;  %v450_v11 = vadd.f32 %v3607_v62, %v4176_v37  ;;  %v4221_v31 = vpop.f32.mrf.mxu1 }
  0xd8   :  { %v441_v3 = vpop.f32.mrf.mxu0 }
  0xd9   :  { %v730_v5 = vpack.c.bf16 %v669_v1, %v668_v0  ;;  %v442_v9 = vadd.f32 %v4176_v37, %v441_v3  ;;  %v674_v20 = vmax.f32 %v450_v11, 0.0  ;;  %v4224_v35 = vpop.f32.mrf.mxu1 }
  0xda   :  { %v3608_v7 = vpop.f32.mrf.mxu0 }
  0xdb   :  { %v453_v10 = vadd.f32 %v3608_v7, %v4176_v37  ;;  %3669 = vmatprep.mubr.msk.bf16.mxu1 %vm783_vm1, %v730_v5  ;;  %v672_v18 = vmax.f32 %v442_v9, 0.0  ;;  %v4226_v41 = vpop.f32.mrf.mxu1 }
  0xdc   :  { %v444_v12 = vpop.f32.mrf.mxu0  ;;  %3670 = vmatmul.mubr.msk.bf16.gmra.mxu1 %vm783_vm1, %v731_v6 }
  0xdd   :  { %v445_v14 = vadd.f32 %v4176_v37, %v444_v12  ;;  %v675_v15 = vmax.f32 %v453_v10, 0.0  ;;  %v4228_v45 = vpop.f32.mrf.mxu1 }
  0xde   :  { %v3611_v16 = vpop.f32.mrf.mxu0 }
  0xdf   :  { %v673_v19 = vmax.f32 %v445_v14, 0.0  ;;  %v733_v24 = vpack.c.bf16 %v675_v15, %v674_v20  ;;  %v466_v29 = vadd.f32 %v3611_v16, %v4176_v37  ;;  %v4235_v50 = vpop.f32.mrf.mxu1 }
  0xe0   :  { %v457_v21 = vpop.f32.mrf.mxu0 }
  0xe1   :  { %v732_v23 = vpack.c.bf16 %v673_v19, %v672_v18  ;;  %v458_v27 = vadd.f32 %v4176_v37, %v457_v21  ;;  %v678_v39 = vmax.f32 %v466_v29, 0.0  ;;  %v4238_v54 = vpop.f32.mrf.mxu1 }
  0xe2   :  { %v3612_v25 = vpop.f32.mrf.mxu0 }
  0xe3   :  { %v469_v28 = vadd.f32 %v3612_v25, %v4176_v37  ;;  %3673 = vmatprep.mubr.msk.bf16.mxu1 %vm783_vm1, %v732_v23  ;;  %v676_v36 = vmax.f32 %v458_v27, 0.0  ;;  %v4240_v0 = vpop.f32.mrf.mxu1 }
  0xe4   :  { %v460_v30 = vpop.f32.mrf.mxu0  ;;  %3674 = vmatmul.mubr.msk.bf16.gmra.mxu1 %vm783_vm1, %v733_v24 }
  0xe5   :  { %v461_v32 = vadd.f32 %v4176_v37, %v460_v30  ;;  %v679_v33 = vmax.f32 %v469_v28, 0.0  ;;  %v4248_v10 = vpop.f32.mrf.mxu1 }
  0xe6   :  { %v3615_v34 = vpop.f32.mrf.mxu0 }
  0xe7   :  { %v677_v38 = vmax.f32 %v461_v32, 0.0  ;;  %v735_v43 = vpack.c.bf16 %v679_v33, %v678_v39  ;;  %v482_v48 = vadd.f32 %v3615_v34, %v4176_v37  ;;  %v4250_v20 = vpop.f32.mrf.mxu1  ;;  %v538_v39 = vadd.f32 %v4176_v37, %v4196_v63 }
  0xe8   :  { %v473_v40 = vpop.f32.mrf.mxu0 }
  0xe9   :  { %v734_v42 = vpack.c.bf16 %v677_v38, %v676_v36  ;;  %v474_v46 = vadd.f32 %v4176_v37, %v473_v40  ;;  %v682_v57 = vmax.f32 %v482_v48, 0.0  ;;  %v4258_v30 = vpop.f32.mrf.mxu1  ;;  %v541_v40 = vadd.f32 %v4176_v37, %v4200_v8 }
  0xea   :  { %v3616_v44 = vpop.f32.mrf.mxu0 }
  0xeb   :  { %v485_v47 = vadd.f32 %v3616_v44, %v4176_v37  ;;  %3677 = vmatprep.mubr.msk.bf16.mxu1 %vm783_vm1, %v734_v42  ;;  %v680_v55 = vmax.f32 %v474_v46, 0.0  ;;  %v4264_v44 = vpop.f32.mrf.mxu1 }
  0xec   :  { %v476_v49 = vpop.f32.mrf.mxu0  ;;  %3678 = vmatmul.mubr.msk.bf16.gmra.mxu1 %vm783_vm1, %v735_v43 }
  0xed   :  { %v477_v51 = vadd.f32 %v4176_v37, %v476_v49  ;;  %v683_v52 = vmax.f32 %v485_v47, 0.0 }
  0xee   :  { %v3619_v53 = vpop.f32.mrf.mxu0 }
  0xef   :  { %v681_v56 = vmax.f32 %v477_v51, 0.0  ;;  %v737_v61 = vpack.c.bf16 %v683_v52, %v682_v57  ;;  %v498_v3 = vadd.f32 %v3619_v53, %v4176_v37  ;;  %v696_v51 = vmax.f32 %v538_v39, 0.0  ;;  %v604_v53 = vpop.f32.mrf.mxu1 }
  0xf0   :  { %v489_v58 = vpop.f32.mrf.mxu0  ;;  %v697_v52 = vmax.f32 %v541_v40, 0.0  ;;  %v597_v39 = vadd.f32 %v4240_v0, %v4176_v37  ;;  %v613_v0 = vadd.f32 %v4264_v44, %v4176_v37 }
  0xf1   :  { %v736_v60 = vpack.c.bf16 %v681_v56, %v680_v55  ;;  %v490_v1 = vadd.f32 %v4176_v37, %v489_v58  ;;  %v686_v14 = vmax.f32 %v498_v3, 0.0  ;;  %v549_v3 = vadd.f32 %v4198_v4, %v4176_v37 }
  0xf2   :  { %v3620_v62 = vpop.f32.mrf.mxu0  ;;  %v573_v4 = vadd.f32 %v4176_v37, %v4228_v45  ;;  %v586_v45 = vadd.f32 %v4176_v37, %v4238_v54 }
  0xf3   :  { %v501_v2 = vadd.f32 %v3620_v62, %v4176_v37  ;;  %3681 = vmatprep.mubr.msk.bf16.mxu1 %vm783_vm1, %v736_v60  ;;  %v684_v11 = vmax.f32 %v490_v1, 0.0  ;;  %v744_v60 = vpack.c.bf16 %v697_v52, %v696_v51  ;;  %v557_v62 = vadd.f32 %v4176_v37, %v4214_v26 }
  0xf4   :  { %v492_v5 = vpop.f32.mrf.mxu0  ;;  %3682 = vmatmul.mubr.msk.bf16.gmra.mxu1 %vm783_vm1, %v737_v61  ;;  %v554_v61 = vadd.f32 %v4176_v37, %v4210_v17  ;;  %v546_v1 = vadd.f32 %v4193_v59, %v4176_v37  ;;  %v570_v59 = vadd.f32 %v4176_v37, %v4224_v35 }
  0xf5   :  { %v493_v6 = vadd.f32 %v4176_v37, %v492_v5  ;;  %v687_v7 = vmax.f32 %v501_v2, 0.0  ;;  %v4280_v5 = vpop.f32.mrf.mxu1  ;;  %v701_v17 = vmax.f32 %v557_v62, 0.0 }
  0xf6   :  { %v3623_v9 = vpop.f32.mrf.mxu0 }
  0xf7   :  { %v685_v12 = vmax.f32 %v493_v6, 0.0  ;;  %v739_v18 = vpack.c.bf16 %v687_v7, %v686_v14  ;;  %v514_v24 = vadd.f32 %v3623_v9, %v4176_v37  ;;  %v700_v6 = vmax.f32 %v554_v61, 0.0  ;;  %v617_v26 = vpop.f32.mrf.mxu1 }
  0xf8   :  { %v505_v15 = vpop.f32.mrf.mxu0  ;;  %v698_v7 = vmax.f32 %v546_v1, 0.0  ;;  %v699_v9 = vmax.f32 %v549_v3, 0.0  ;;  %v562_v14 = vadd.f32 %v4207_v13, %v4176_v37  ;;  %v589_v13 = vadd.f32 %v4176_v37, %v4248_v10 }
  0xf9   :  { %v738_v16 = vpack.c.bf16 %v685_v12, %v684_v11  ;;  %v506_v21 = vadd.f32 %v4176_v37, %v505_v15  ;;  %v690_v34 = vmax.f32 %v514_v24, 0.0  ;;  %v746_v11 = vpack.c.bf16 %v701_v17, %v700_v6 }
  0xfa   :  { %v3624_v19 = vpop.f32.mrf.mxu0  ;;  %v745_v12 = vpack.c.bf16 %v699_v9, %v698_v7  ;;  %v565_v15 = vadd.f32 %v4212_v22, %v4176_v37  ;;  %v578_v22 = vadd.f32 %v4221_v31, %v4176_v37  ;;  %v602_v10 = vadd.f32 %v4176_v37, %v4258_v30 }
  0xfb   :  { %v517_v23 = vadd.f32 %v3624_v19, %v4176_v37  ;;  %3685 = vmatprep.mubr.msk.bf16.mxu1 %vm783_vm1, %v738_v16  ;;  %v688_v32 = vmax.f32 %v506_v21, 0.0  ;;  %v3652_v16 = vpop.f32.mrf.mxu1  ;;  %v705_v19 = vmax.f32 %v573_v4, 0.0  ;;  %v702_v21 = vmax.f32 %v562_v14, 0.0 }
  0xfc   :  { %v508_v25 = vpop.f32.mrf.mxu0  ;;  %3686 = vmatmul.mubr.msk.bf16.gmra.mxu1 %vm783_vm1, %v739_v18  ;;  %v704_v18 = vmax.f32 %v570_v59, 0.0  ;;  %v629_v44 = vadd.f32 %v3652_v16, %v4176_v37 }
  0xfd   :  { %v509_v27 = vadd.f32 %v4176_v37, %v508_v25  ;;  %v691_v28 = vmax.f32 %v517_v23, 0.0  ;;  %v703_v23 = vmax.f32 %v565_v15, 0.0  ;;  %v620_v35 = vpop.f32.mrf.mxu1 }
  0xfe   :  { %v3627_v29 = vpop.f32.mrf.mxu0  ;;  %v748_v24 = vpack.c.bf16 %v705_v19, %v704_v18  ;;  %v621_v51 = vadd.f32 %v4176_v37, %v620_v35  ;;  %v719_v17 = vmax.f32 %v629_v44, 0.0 }
  0xff   :  { %v689_v33 = vmax.f32 %v509_v27, 0.0  ;;  %v741_v42 = vpack.c.bf16 %v691_v28, %v690_v34  ;;  %v530_v48 = vadd.f32 %v3627_v29, %v4176_v37  ;;  %v747_v25 = vpack.c.bf16 %v703_v23, %v702_v21  ;;  %v3655_v28 = vpop.f32.mrf.mxu1 }
 0x100   :  { %v521_v36 = vpop.f32.mrf.mxu0  ;;  %v581_v27 = vadd.f32 %v4226_v41, %v4176_v37  ;;  %v708_v29 = vmax.f32 %v586_v45, 0.0  ;;  %v594_v41 = vadd.f32 %v4235_v50, %v4176_v37  ;;  %v610_v50 = vadd.f32 %v4250_v20, %v4176_v37 }
 0x101   :  { %v740_v38 = vpack.c.bf16 %v689_v33, %v688_v32  ;;  %v522_v46 = vadd.f32 %v4176_v37, %v521_v36  ;;  %v694_v57 = vmax.f32 %v530_v48, 0.0  ;;  %v709_v32 = vmax.f32 %v589_v13, 0.0  ;;  %v633_v54 = vpop.f32.mrf.mxu1  ;;  %v3972_v13 = vld [vmem:[%s4731_s7 + $0x8] sm:$0xff]  }
 0x102   :  { %v3628_v43 = vpop.f32.mrf.mxu0  ;;  %v706_v33 = vmax.f32 %v578_v22, 0.0  ;;  %v707_v34 = vmax.f32 %v581_v27, 0.0  ;;  %v626_v20 = vadd.f32 %v4280_v5, %v4176_v37  ;;  %v642_v5 = vadd.f32 %v3655_v28, %v4176_v37  ;;  %3797 = vmatprep.subr.bf16.mxu1 %v3972_v13 }
 0x103   :  { %v533_v47 = vadd.f32 %v3628_v43, %v4176_v37  ;;  %3689 = vmatprep.mubr.msk.bf16.mxu1 %vm783_vm1, %v740_v38  ;;  %v692_v55 = vmax.f32 %v522_v46, 0.0  ;;  %v750_v36 = vpack.c.bf16 %v709_v32, %v708_v29  ;;  %v605_v38 = vadd.f32 %v4176_v37, %v604_v53  ;;  %v3656_v40 = vpop.f32.mrf.mxu1  ;;  %3798 = vmatpush3.bf16.msra.mxu1 %v3972_v13 }
 0x104   :  { %v524_v49 = vpop.f32.mrf.mxu0  ;;  %3690 = vmatmul.mubr.msk.bf16.gmra.mxu1 %vm783_vm1, %v741_v42  ;;  %v749_v31 = vpack.c.bf16 %v707_v34, %v706_v33  ;;  %v712_v42 = vmax.f32 %v602_v10, 0.0  ;;  %v710_v46 = vmax.f32 %v594_v41, 0.0  ;;  %v717_v53 = vmax.f32 %v621_v51, 0.0  ;;  %v3973_v34 = vld [vmem:[%s4731_s7] sm:$0xff]  }
 0x105   :  { %v525_v63 = vadd.f32 %v4176_v37, %v524_v49  ;;  %v695_v8 = vmax.f32 %v533_v47, 0.0  ;;  %v713_v43 = vmax.f32 %v605_v38, 0.0  ;;  %v711_v47 = vmax.f32 %v597_v39, 0.0  ;;  %v636_v48 = vpop.f32.mrf.mxu1  ;;  %3799 = vmatprep.subr.bf16.mxu1 %v3973_v34 }
 0x106   :  { %v618_v49 = vadd.f32 %v4176_v37, %v617_v26  ;;  %v637_v61 = vadd.f32 %v4176_v37, %v636_v48  ;;  %v718_v6 = vmax.f32 %v626_v20, 0.0  ;;  %v645_v4 = vadd.f32 %v3656_v40, %v4176_v37 }
 0x107   :  { %v693_v56 = vmax.f32 %v525_v63, 0.0  ;;  %v743_v2 = vpack.c.bf16 %v695_v8, %v694_v57  ;;  %v752_v30 = vpack.c.bf16 %v713_v43, %v712_v42  ;;  %v751_v63 = vpack.c.bf16 %v711_v47, %v710_v46  ;;  %v3659_v52 = vpop.f32.mrf.mxu1  ;;  %3800 = vmatpush3.bf16.msra.mxu1 %v3973_v34 }
 0x108   :  { %v716_v8 = vmax.f32 %v618_v49, 0.0  ;;  %v721_v3 = vmax.f32 %v637_v61, 0.0  ;;  %v755_v59 = vpack.c.bf16 %v719_v17, %v718_v6  ;;  %v722_v15 = vmax.f32 %v642_v5, 0.0 }
 0x109   :  { %v742_v58 = vpack.c.bf16 %v693_v56, %v692_v55  ;;  %v714_v55 = vmax.f32 %v610_v50, 0.0  ;;  %v715_v56 = vmax.f32 %v613_v0, 0.0  ;;  %v649_v57 = vpop.f32.mrf.mxu1  ;;  %v723_v16 = vmax.f32 %v645_v4, 0.0 }
 0x10a   :  { %v650_v26 = vadd.f32 %v4176_v37, %v649_v57  ;;  %v658_v21 = vadd.f32 %v3659_v52, %v4176_v37 }
 0x10b   :  { %3693 = vmatprep.mubr.msk.bf16.mxu1 %vm783_vm1, %v742_v58  ;;  %v754_v58 = vpack.c.bf16 %v717_v53, %v716_v8  ;;  %v753_v62 = vpack.c.bf16 %v715_v56, %v714_v55  ;;  %v3660_v1 = vpop.f32.mrf.mxu1  ;;  %v757_v19 = vpack.c.bf16 %v723_v16, %v722_v15 }
 0x10c   :  { %3694 = vmatmul.mubr.msk.bf16.gmra.mxu1 %vm783_vm1, %v743_v2  ;;  %v661_v23 = vadd.f32 %v3660_v1, %v4176_v37  ;;  %v726_v35 = vmax.f32 %v658_v21, 0.0 }
 0x10d   :  { %3697 = vmatprep.mubr.msk.bf16.mxu1 %vm783_vm1, %v744_v60  ;;  %v634_v60 = vadd.f32 %v4176_v37, %v633_v54  ;;  %v652_v7 = vpop.f32.mrf.mxu1 }
 0x10f   :  { %v720_v2 = vmax.f32 %v634_v60, 0.0 }
 0x111   :  { %v756_v9 = vpack.c.bf16 %v721_v3, %v720_v2 }
 0x114   :  { %3698 = vmatmul.mubr.msk.bf16.gmra.mxu1 %vm783_vm1, %v745_v12  ;;  %v724_v12 = vmax.f32 %v650_v26, 0.0 }
 0x115   :  { %3701 = vmatprep.mubr.msk.bf16.mxu1 %vm783_vm1, %v746_v11  ;;  %v653_v11 = vadd.f32 %v4176_v37, %v652_v7  ;;  %v4346_v37 = vld [vmem:[%s4732_s4] ss:$0 sm:$0xff] }
 0x117   :  { %v725_v14 = vmax.f32 %v653_v11, 0.0 }
 0x119   :  { %v758_v18 = vpack.c.bf16 %v725_v14, %v724_v12 }
 0x11c   :  { %3702 = vmatmul.mubr.msk.bf16.gmra.mxu1 %vm783_vm1, %v747_v25 }
 0x11d   :  { %3705 = vmatprep.mubr.msk.bf16.mxu1 %vm783_vm1, %v748_v24  ;;  %v727_v24 = vmax.f32 %v661_v23, 0.0 }
 0x11f   :  { %v759_v45 = vpack.c.bf16 %v727_v24, %v726_v35 }
 0x124   :  { %3706 = vmatmul.mubr.msk.bf16.gmra.mxu1 %vm783_vm1, %v749_v31 }
 0x125   :  { %3709 = vmatprep.mubr.msk.bf16.mxu1 %vm783_vm1, %v750_v36 }
 0x12c   :  { %3710 = vmatmul.mubr.msk.bf16.gmra.mxu1 %vm783_vm1, %v751_v63 }
 0x12d   :  { %3713 = vmatprep.mubr.msk.bf16.mxu1 %vm783_vm1, %v752_v30 }
 0x134   :  { %3714 = vmatmul.mubr.msk.bf16.gmra.mxu1 %vm783_vm1, %v753_v62 }
 0x135   :  { %3717 = vmatprep.mubr.msk.bf16.mxu1 %vm783_vm1, %v754_v58 }
 0x13c   :  { %3718 = vmatmul.mubr.msk.bf16.gmra.mxu1 %vm783_vm1, %v755_v59 }
 0x13d   :  { %3721 = vmatprep.mubr.msk.bf16.mxu1 %vm783_vm1, %v756_v9 }
 0x144   :  { %3722 = vmatmul.mubr.msk.bf16.gmra.mxu1 %vm783_vm1, %v757_v19 }
 0x145   :  { %3725 = vmatprep.mubr.msk.bf16.mxu1 %vm783_vm1, %v758_v18 }
 0x14c   :  { %3726 = vmatmul.mubr.msk.bf16.gmra.mxu1 %vm783_vm1, %v759_v45 }
 0x194   :  { %v3667_v25 = vpop.f32.mrf.mxu1 }
 0x195   :  { %v923_v32 = vadd.f32 %v3667_v25, %v4346_v37 }
 0x196   :  { %v914_v22 = vpop.f32.mrf.mxu1 }
 0x197   :  { %v915_v28 = vadd.f32 %v4346_v37, %v914_v22  ;;  %v1171_v41 = vmax.f32 %v923_v32, 0.0 }
 0x198   :  { %v3668_v27 = vpop.f32.mrf.mxu1 }
 0x199   :  { %v926_v29 = vadd.f32 %v3668_v27, %v4346_v37  ;;  %v1169_v38 = vmax.f32 %v915_v28, 0.0 }
 0x19a   :  { %v917_v33 = vpop.f32.mrf.mxu1 }
 0x19b   :  { %v918_v54 = vadd.f32 %v4346_v37, %v917_v33  ;;  %v1172_v36 = vmax.f32 %v926_v29, 0.0 }
 0x19c   :  { %v3671_v10 = vpop.f32.mrf.mxu1 }
 0x19d   :  { %v1170_v31 = vmax.f32 %v918_v54, 0.0  ;;  %v1234_v42 = vpack.c.bf16 %v1172_v36, %v1171_v41  ;;  %v939_v48 = vadd.f32 %v3671_v10, %v4346_v37 }
 0x19e   :  { %v930_v39 = vpop.f32.mrf.mxu1 }
 0x19f   :  { %v1233_v40 = vpack.c.bf16 %v1170_v31, %v1169_v38  ;;  %v931_v46 = vadd.f32 %v4346_v37, %v930_v39  ;;  %v1175_v52 = vmax.f32 %v939_v48, 0.0 }
 0x1a0   :  { %v3672_v43 = vpop.f32.mrf.mxu1 }
 0x1a1   :  { %v942_v47 = vadd.f32 %v3672_v43, %v4346_v37  ;;  %3733 = vmatprep.mubr.msk.bf16.mxu0 %vm783_vm1, %v1233_v40  ;;  %v1173_v50 = vmax.f32 %v931_v46, 0.0 }
 0x1a2   :  { %v933_v30 = vpop.f32.mrf.mxu1  ;;  %3734 = vmatmul.mubr.msk.bf16.vlgmr.msra.gmra.mxu0 %vm783_vm1, %v1234_v42 }
 0x1a3   :  { %v934_v49 = vadd.f32 %v4346_v37, %v933_v30  ;;  %v1176_v51 = vmax.f32 %v942_v47, 0.0 }
 0x1a4   :  { %v3675_v63 = vpop.f32.mrf.mxu1 }
 0x1a5   :  { %v1174_v0 = vmax.f32 %v934_v49, 0.0  ;;  %v1236_v55 = vpack.c.bf16 %v1176_v51, %v1175_v52  ;;  %v955_v60 = vadd.f32 %v3675_v63, %v4346_v37 }
 0x1a6   :  { %v946_v8 = vpop.f32.mrf.mxu1 }
 0x1a7   :  { %v1235_v53 = vpack.c.bf16 %v1174_v0, %v1173_v50  ;;  %v947_v57 = vadd.f32 %v4346_v37, %v946_v8  ;;  %v1179_v3 = vmax.f32 %v955_v60, 0.0 }
 0x1a8   :  { %v3676_v56 = vpop.f32.mrf.mxu1 }
 0x1a9   :  { %v958_v58 = vadd.f32 %v3676_v56, %v4346_v37  ;;  %3737 = vmatprep.mubr.msk.bf16.mxu0 %vm783_vm1, %v1235_v53  ;;  %v1177_v1 = vmax.f32 %v947_v57, 0.0 }
 0x1aa   :  { %v949_v61 = vpop.f32.mrf.mxu1  ;;  %3738 = vmatmul.mubr.msk.bf16.gmra.mxu0 %vm783_vm1, %v1236_v55 }
 0x1ab   :  { %v950_v62 = vadd.f32 %v4346_v37, %v949_v61  ;;  %v1180_v20 = vmax.f32 %v958_v58, 0.0 }
 0x1ac   :  { %v3679_v44 = vpop.f32.mrf.mxu1 }
 0x1ad   :  { %v1178_v2 = vmax.f32 %v950_v62, 0.0  ;;  %v1238_v7 = vpack.c.bf16 %v1180_v20, %v1179_v3  ;;  %v971_v59 = vadd.f32 %v3679_v44, %v4346_v37 }
 0x1ae   :  { %v962_v6 = vpop.f32.mrf.mxu1 }
 0x1af   :  { %v1237_v17 = vpack.c.bf16 %v1178_v2, %v1177_v1  ;;  %v963_v26 = vadd.f32 %v4346_v37, %v962_v6  ;;  %v1183_v18 = vmax.f32 %v971_v59, 0.0 }
 0x1b0   :  { %v3680_v9 = vpop.f32.mrf.mxu1 }
 0x1b1   :  { %v974_v11 = vadd.f32 %v3680_v9, %v4346_v37  ;;  %3741 = vmatprep.mubr.msk.bf16.mxu0 %vm783_vm1, %v1237_v17  ;;  %v1181_v15 = vmax.f32 %v963_v26, 0.0 }
 0x1b2   :  { %v965_v5 = vpop.f32.mrf.mxu1  ;;  %3742 = vmatmul.mubr.msk.bf16.gmra.mxu0 %vm783_vm1, %v1238_v7 }
 0x1b3   :  { %v966_v4 = vadd.f32 %v4346_v37, %v965_v5  ;;  %v1184_v12 = vmax.f32 %v974_v11, 0.0 }
 0x1b4   :  { %v3683_v14 = vpop.f32.mrf.mxu1 }
 0x1b5   :  { %v1182_v16 = vmax.f32 %v966_v4, 0.0  ;;  %v1240_v23 = vpack.c.bf16 %v1184_v12, %v1183_v18  ;;  %v987_v13 = vadd.f32 %v3683_v14, %v4346_v37 }
 0x1b6   :  { %v978_v19 = vpop.f32.mrf.mxu1 }
 0x1b7   :  { %v1239_v21 = vpack.c.bf16 %v1182_v16, %v1181_v15  ;;  %v979_v24 = vadd.f32 %v4346_v37, %v978_v19  ;;  %v1187_v33 = vmax.f32 %v987_v13, 0.0 }
 0x1b8   :  { %v3684_v35 = vpop.f32.mrf.mxu1 }
 0x1b9   :  { %v990_v45 = vadd.f32 %v3684_v35, %v4346_v37  ;;  %3745 = vmatprep.mubr.msk.bf16.mxu0 %vm783_vm1, %v1239_v21  ;;  %v1185_v29 = vmax.f32 %v979_v24, 0.0 }
 0x1ba   :  { %v981_v25 = vpop.f32.mrf.mxu1  ;;  %3746 = vmatmul.mubr.msk.bf16.gmra.mxu0 %vm783_vm1, %v1240_v23 }
 0x1bb   :  { %v982_v22 = vadd.f32 %v4346_v37, %v981_v25  ;;  %v1188_v27 = vmax.f32 %v990_v45, 0.0 }
 0x1bc   :  { %v3687_v28 = vpop.f32.mrf.mxu1 }
 0x1bd   :  { %v1186_v32 = vmax.f32 %v982_v22, 0.0  ;;  %v1242_v36 = vpack.c.bf16 %v1188_v27, %v1187_v33  ;;  %v1003_v41 = vadd.f32 %v3687_v28, %v4346_v37 }
 0x1be   :  { %v994_v34 = vpop.f32.mrf.mxu1 }
 0x1bf   :  { %v1241_v54 = vpack.c.bf16 %v1186_v32, %v1185_v29  ;;  %v995_v38 = vadd.f32 %v4346_v37, %v994_v34  ;;  %v1191_v48 = vmax.f32 %v1003_v41, 0.0 }
 0x1c0   :  { %v3688_v10 = vpop.f32.mrf.mxu1 }
 0x1c1   :  { %v1006_v31 = vadd.f32 %v3688_v10, %v4346_v37  ;;  %3749 = vmatprep.mubr.msk.bf16.mxu0 %vm783_vm1, %v1241_v54  ;;  %v1189_v46 = vmax.f32 %v995_v38, 0.0 }
 0x1c2   :  { %v997_v39 = vpop.f32.mrf.mxu1  ;;  %3750 = vmatmul.mubr.msk.bf16.gmra.mxu0 %vm783_vm1, %v1242_v36 }
 0x1c3   :  { %v998_v40 = vadd.f32 %v4346_v37, %v997_v39  ;;  %v1192_v42 = vmax.f32 %v1006_v31, 0.0 }
 0x1c4   :  { %v3691_v43 = vpop.f32.mrf.mxu1 }
 0x1c5   :  { %v1190_v47 = vmax.f32 %v998_v40, 0.0  ;;  %v1244_v51 = vpack.c.bf16 %v1192_v42, %v1191_v48  ;;  %v1019_v52 = vadd.f32 %v3691_v43, %v4346_v37 }
 0x1c6   :  { %v1010_v30 = vpop.f32.mrf.mxu1 }
 0x1c7   :  { %v1243_v49 = vpack.c.bf16 %v1190_v47, %v1189_v46  ;;  %v1011_v50 = vadd.f32 %v4346_v37, %v1010_v30  ;;  %v1195_v60 = vmax.f32 %v1019_v52, 0.0 }
 0x1c8   :  { %v3692_v63 = vpop.f32.mrf.mxu1 }
 0x1c9   :  { %v1022_v0 = vadd.f32 %v3692_v63, %v4346_v37  ;;  %3753 = vmatprep.mubr.msk.bf16.mxu0 %vm783_vm1, %v1243_v49  ;;  %v1193_v57 = vmax.f32 %v1011_v50, 0.0 }
 0x1ca   :  { %v1013_v8 = vpop.f32.mrf.mxu1  ;;  %3754 = vmatmul.mubr.msk.bf16.gmra.mxu0 %vm783_vm1, %v1244_v51 }
 0x1cb   :  { %v1014_v53 = vadd.f32 %v4346_v37, %v1013_v8  ;;  %v1196_v55 = vmax.f32 %v1022_v0, 0.0 }
 0x1cc   :  { %v3695_v56 = vpop.f32.mrf.mxu1 }
 0x1cd   :  { %v1194_v58 = vmax.f32 %v1014_v53, 0.0  ;;  %v1246_v20 = vpack.c.bf16 %v1196_v55, %v1195_v60  ;;  %v1035_v3 = vadd.f32 %v3695_v56, %v4346_v37 }
 0x1ce   :  { %v1026_v61 = vpop.f32.mrf.mxu1 }
 0x1cf   :  { %v1245_v62 = vpack.c.bf16 %v1194_v58, %v1193_v57  ;;  %v1027_v1 = vadd.f32 %v4346_v37, %v1026_v61  ;;  %v1199_v59 = vmax.f32 %v1035_v3, 0.0 }
 0x1d0   :  { %v3696_v44 = vpop.f32.mrf.mxu1 }
 0x1d1   :  { %v1038_v2 = vadd.f32 %v3696_v44, %v4346_v37  ;;  %3757 = vmatprep.mubr.msk.bf16.mxu0 %vm783_vm1, %v1245_v62  ;;  %v1197_v26 = vmax.f32 %v1027_v1, 0.0 }
 0x1d2   :  { %v1029_v6 = vpop.f32.mrf.mxu1  ;;  %3758 = vmatmul.mubr.msk.bf16.gmra.mxu0 %vm783_vm1, %v1246_v20 }
 0x1d3   :  { %v1030_v17 = vadd.f32 %v4346_v37, %v1029_v6  ;;  %v1200_v7 = vmax.f32 %v1038_v2, 0.0 }
 0x1d4   :  { %v3699_v9 = vpop.f32.mrf.mxu1 }
 0x1d5   :  { %v1198_v11 = vmax.f32 %v1030_v17, 0.0  ;;  %v1248_v12 = vpack.c.bf16 %v1200_v7, %v1199_v59  ;;  %v1051_v18 = vadd.f32 %v3699_v9, %v4346_v37 }
 0x1d6   :  { %v1042_v5 = vpop.f32.mrf.mxu1 }
 0x1d7   :  { %v1247_v4 = vpack.c.bf16 %v1198_v11, %v1197_v26  ;;  %v1043_v15 = vadd.f32 %v4346_v37, %v1042_v5  ;;  %v1203_v13 = vmax.f32 %v1051_v18, 0.0 }
 0x1d8   :  { %v3700_v14 = vpop.f32.mrf.mxu1 }
 0x1d9   :  { %v1054_v16 = vadd.f32 %v3700_v14, %v4346_v37  ;;  %3761 = vmatprep.mubr.msk.bf16.mxu0 %vm783_vm1, %v1247_v4  ;;  %v1201_v24 = vmax.f32 %v1043_v15, 0.0 }
 0x1da   :  { %v1045_v19 = vpop.f32.mrf.mxu1  ;;  %3762 = vmatmul.mubr.msk.bf16.gmra.mxu0 %vm783_vm1, %v1248_v12 }
 0x1db   :  { %v1046_v21 = vadd.f32 %v4346_v37, %v1045_v19  ;;  %v1204_v23 = vmax.f32 %v1054_v16, 0.0 }
 0x1dc   :  { %v3703_v35 = vpop.f32.mrf.mxu1 }
 0x1dd   :  { %v1202_v45 = vmax.f32 %v1046_v21, 0.0  ;;  %v1250_v27 = vpack.c.bf16 %v1204_v23, %v1203_v13  ;;  %v1067_v33 = vadd.f32 %v3703_v35, %v4346_v37 }
 0x1de   :  { %v1058_v25 = vpop.f32.mrf.mxu1 }
 0x1df   :  { %v1249_v22 = vpack.c.bf16 %v1202_v45, %v1201_v24  ;;  %v1059_v29 = vadd.f32 %v4346_v37, %v1058_v25  ;;  %v1207_v41 = vmax.f32 %v1067_v33, 0.0 }
 0x1e0   :  { %v3704_v28 = vpop.f32.mrf.mxu1 }
 0x1e1   :  { %v1070_v32 = vadd.f32 %v3704_v28, %v4346_v37  ;;  %3765 = vmatprep.mubr.msk.bf16.mxu0 %vm783_vm1, %v1249_v22  ;;  %v1205_v38 = vmax.f32 %v1059_v29, 0.0 }
 0x1e2   :  { %v1061_v34 = vpop.f32.mrf.mxu1  ;;  %3766 = vmatmul.mubr.msk.bf16.gmra.mxu0 %vm783_vm1, %v1250_v27 }
 0x1e3   :  { %v1062_v54 = vadd.f32 %v4346_v37, %v1061_v34  ;;  %v1208_v36 = vmax.f32 %v1070_v32, 0.0 }
 0x1e4   :  { %v3707_v10 = vpop.f32.mrf.mxu1 }
 0x1e5   :  { %v1206_v31 = vmax.f32 %v1062_v54, 0.0  ;;  %v1252_v42 = vpack.c.bf16 %v1208_v36, %v1207_v41  ;;  %v1083_v48 = vadd.f32 %v3707_v10, %v4346_v37 }
 0x1e6   :  { %v1074_v39 = vpop.f32.mrf.mxu1 }
 0x1e7   :  { %v1251_v40 = vpack.c.bf16 %v1206_v31, %v1205_v38  ;;  %v1075_v46 = vadd.f32 %v4346_v37, %v1074_v39  ;;  %v1211_v52 = vmax.f32 %v1083_v48, 0.0 }
 0x1e8   :  { %v3708_v43 = vpop.f32.mrf.mxu1 }
 0x1e9   :  { %v1086_v47 = vadd.f32 %v3708_v43, %v4346_v37  ;;  %3769 = vmatprep.mubr.msk.bf16.mxu0 %vm783_vm1, %v1251_v40  ;;  %v1209_v50 = vmax.f32 %v1075_v46, 0.0 }
 0x1ea   :  { %v1077_v30 = vpop.f32.mrf.mxu1  ;;  %3770 = vmatmul.mubr.msk.bf16.gmra.mxu0 %vm783_vm1, %v1252_v42 }
 0x1eb   :  { %v1078_v49 = vadd.f32 %v4346_v37, %v1077_v30  ;;  %v1212_v51 = vmax.f32 %v1086_v47, 0.0 }
 0x1ec   :  { %v3711_v63 = vpop.f32.mrf.mxu1 }
 0x1ed   :  { %v1210_v0 = vmax.f32 %v1078_v49, 0.0  ;;  %v1254_v55 = vpack.c.bf16 %v1212_v51, %v1211_v52  ;;  %v1099_v60 = vadd.f32 %v3711_v63, %v4346_v37 }
 0x1ee   :  { %v1090_v8 = vpop.f32.mrf.mxu1 }
 0x1ef   :  { %v1253_v53 = vpack.c.bf16 %v1210_v0, %v1209_v50  ;;  %v1091_v57 = vadd.f32 %v4346_v37, %v1090_v8  ;;  %v1215_v3 = vmax.f32 %v1099_v60, 0.0 }
 0x1f0   :  { %v3712_v56 = vpop.f32.mrf.mxu1 }
 0x1f1   :  { %v1102_v58 = vadd.f32 %v3712_v56, %v4346_v37  ;;  %3773 = vmatprep.mubr.msk.bf16.mxu0 %vm783_vm1, %v1253_v53  ;;  %v1213_v1 = vmax.f32 %v1091_v57, 0.0 }
 0x1f2   :  { %v1093_v61 = vpop.f32.mrf.mxu1  ;;  %3774 = vmatmul.mubr.msk.bf16.gmra.mxu0 %vm783_vm1, %v1254_v55 }
 0x1f3   :  { %v1094_v62 = vadd.f32 %v4346_v37, %v1093_v61  ;;  %v1216_v20 = vmax.f32 %v1102_v58, 0.0 }
 0x1f4   :  { %v3715_v44 = vpop.f32.mrf.mxu1 }
 0x1f5   :  { %v1214_v2 = vmax.f32 %v1094_v62, 0.0  ;;  %v1256_v7 = vpack.c.bf16 %v1216_v20, %v1215_v3  ;;  %v1115_v59 = vadd.f32 %v3715_v44, %v4346_v37  ;;  %v3974_v62 = vld [vmem:[%s4733_s9 + $0x8] sm:$0xff]  }
 0x1f6   :  { %v1106_v6 = vpop.f32.mrf.mxu1  ;;  %3865 = vmatprep.subr.bf16.mxu0 %v3974_v62 }
 0x1f7   :  { %v1255_v17 = vpack.c.bf16 %v1214_v2, %v1213_v1  ;;  %v1107_v26 = vadd.f32 %v4346_v37, %v1106_v6  ;;  %v1219_v18 = vmax.f32 %v1115_v59, 0.0  ;;  %3866 = vmatpush3.bf16.msra.mxu0 %v3974_v62 }
 0x1f8   :  { %v3716_v9 = vpop.f32.mrf.mxu1 }
 0x1f9   :  { %v1118_v11 = vadd.f32 %v3716_v9, %v4346_v37  ;;  %3777 = vmatprep.mubr.msk.bf16.mxu0 %vm783_vm1, %v1255_v17  ;;  %v1217_v15 = vmax.f32 %v1107_v26, 0.0 }
 0x1fa   :  { %v1109_v5 = vpop.f32.mrf.mxu1  ;;  %3778 = vmatmul.mubr.msk.bf16.gmra.mxu0 %vm783_vm1, %v1256_v7  ;;  %v3975_v7 = vld [vmem:[%s4733_s9] sm:$0xff]  }
 0x1fb   :  { %v1110_v4 = vadd.f32 %v4346_v37, %v1109_v5  ;;  %v1220_v12 = vmax.f32 %v1118_v11, 0.0  ;;  %3867 = vmatprep.subr.bf16.mxu0 %v3975_v7 }
 0x1fc   :  { %v3719_v14 = vpop.f32.mrf.mxu1  ;;  %3868 = vmatpush3.bf16.msra.mxu0 %v3975_v7 }
 0x1fd   :  { %v1218_v16 = vmax.f32 %v1110_v4, 0.0  ;;  %v1258_v23 = vpack.c.bf16 %v1220_v12, %v1219_v18  ;;  %v1131_v13 = vadd.f32 %v3719_v14, %v4346_v37 }
 0x1fe   :  { %v1122_v19 = vpop.f32.mrf.mxu1 }
 0x1ff   :  { %v1257_v21 = vpack.c.bf16 %v1218_v16, %v1217_v15  ;;  %v1123_v24 = vadd.f32 %v4346_v37, %v1122_v19  ;;  %v1223_v33 = vmax.f32 %v1131_v13, 0.0 }
 0x200   :  { %v3720_v35 = vpop.f32.mrf.mxu1 }
 0x201   :  { %v1134_v45 = vadd.f32 %v3720_v35, %v4346_v37  ;;  %3781 = vmatprep.mubr.msk.bf16.mxu0 %vm783_vm1, %v1257_v21  ;;  %v1221_v29 = vmax.f32 %v1123_v24, 0.0 }
 0x202   :  { %v1125_v25 = vpop.f32.mrf.mxu1  ;;  %3782 = vmatmul.mubr.msk.bf16.gmra.mxu0 %vm783_vm1, %v1258_v23 }
 0x203   :  { %v1126_v22 = vadd.f32 %v4346_v37, %v1125_v25  ;;  %v1224_v27 = vmax.f32 %v1134_v45, 0.0 }
 0x204   :  { %v3723_v28 = vpop.f32.mrf.mxu1 }
 0x205   :  { %v1222_v32 = vmax.f32 %v1126_v22, 0.0  ;;  %v1260_v36 = vpack.c.bf16 %v1224_v27, %v1223_v33  ;;  %v1147_v41 = vadd.f32 %v3723_v28, %v4346_v37 }
 0x206   :  { %v1138_v34 = vpop.f32.mrf.mxu1 }
 0x207   :  { %v1259_v54 = vpack.c.bf16 %v1222_v32, %v1221_v29  ;;  %v1139_v38 = vadd.f32 %v4346_v37, %v1138_v34  ;;  %v1227_v48 = vmax.f32 %v1147_v41, 0.0 }
 0x208   :  { %v3724_v10 = vpop.f32.mrf.mxu1 }
 0x209   :  { %v1150_v31 = vadd.f32 %v3724_v10, %v4346_v37  ;;  %3785 = vmatprep.mubr.msk.bf16.mxu0 %vm783_vm1, %v1259_v54  ;;  %v1225_v46 = vmax.f32 %v1139_v38, 0.0 }
 0x20a   :  { %v1141_v39 = vpop.f32.mrf.mxu1  ;;  %3786 = vmatmul.mubr.msk.bf16.gmra.mxu0 %vm783_vm1, %v1260_v36 }
 0x20b   :  { %v1142_v40 = vadd.f32 %v4346_v37, %v1141_v39  ;;  %v1228_v42 = vmax.f32 %v1150_v31, 0.0 }
 0x20c   :  { %v3727_v43 = vpop.f32.mrf.mxu1 }
 0x20d   :  { %v1226_v47 = vmax.f32 %v1142_v40, 0.0  ;;  %v1262_v51 = vpack.c.bf16 %v1228_v42, %v1227_v48  ;;  %v1163_v52 = vadd.f32 %v3727_v43, %v4346_v37 }
 0x20e   :  { %v1154_v30 = vpop.f32.mrf.mxu1 }
 0x20f   :  { %v1261_v49 = vpack.c.bf16 %v1226_v47, %v1225_v46  ;;  %v1155_v50 = vadd.f32 %v4346_v37, %v1154_v30  ;;  %v1231_v58 = vmax.f32 %v1163_v52, 0.0 }
 0x210   :  { %v3728_v63 = vpop.f32.mrf.mxu1 }
 0x211   :  { %v1166_v0 = vadd.f32 %v3728_v63, %v4346_v37  ;;  %3789 = vmatprep.mubr.msk.bf16.mxu0 %vm783_vm1, %v1261_v49  ;;  %v1229_v56 = vmax.f32 %v1155_v50, 0.0 }
 0x212   :  { %v1157_v8 = vpop.f32.mrf.mxu1  ;;  %3790 = vmatmul.mubr.msk.bf16.gmra.mxu0 %vm783_vm1, %v1262_v51 }
 0x213   :  { %v1158_v53 = vadd.f32 %v4346_v37, %v1157_v8  ;;  %v1232_v55 = vmax.f32 %v1166_v0, 0.0  ;;  %v4453_v37 = vld [vmem:[%s4734_s6] ss:$0 sm:$0xff] }
 0x215   :  { %v1230_v57 = vmax.f32 %v1158_v53, 0.0  ;;  %v1264_v61 = vpack.c.bf16 %v1232_v55, %v1231_v58 }
 0x217   :  { %v1263_v60 = vpack.c.bf16 %v1230_v57, %v1229_v56 }
 0x219   :  { %3793 = vmatprep.mubr.msk.bf16.mxu0 %vm783_vm1, %v1263_v60 }
 0x21a   :  { %3794 = vmatmul.mubr.msk.bf16.gmra.mxu0 %vm783_vm1, %v1264_v61 }
 0x262   :  { %v3735_v20 = vpop.f32.mrf.mxu0 }
 0x263   :  { %v1427_v6 = vadd.f32 %v3735_v20, %v4453_v37 }
 0x264   :  { %v1418_v44 = vpop.f32.mrf.mxu0 }
 0x265   :  { %v1419_v2 = vadd.f32 %v4453_v37, %v1418_v44  ;;  %v1675_v4 = vmax.f32 %v1427_v6, 0.0 }
 0x266   :  { %v3736_v1 = vpop.f32.mrf.mxu0 }
 0x267   :  { %v1430_v3 = vadd.f32 %v3736_v1, %v4453_v37  ;;  %v1673_v59 = vmax.f32 %v1419_v2, 0.0 }
 0x268   :  { %v1421_v17 = vpop.f32.mrf.mxu0 }
 0x269   :  { %v1422_v9 = vadd.f32 %v4453_v37, %v1421_v17  ;;  %v1676_v26 = vmax.f32 %v1430_v3, 0.0 }
 0x26a   :  { %v3739_v11 = vpop.f32.mrf.mxu0 }
 0x26b   :  { %v1674_v5 = vmax.f32 %v1422_v9, 0.0  ;;  %v1738_v15 = vpack.c.bf16 %v1676_v26, %v1675_v4  ;;  %v1443_v21 = vadd.f32 %v3739_v11, %v4453_v37 }
 0x26c   :  { %v1434_v12 = vpop.f32.mrf.mxu0 }
 0x26d   :  { %v1737_v14 = vpack.c.bf16 %v1674_v5, %v1673_v59  ;;  %v1435_v18 = vadd.f32 %v4453_v37, %v1434_v12  ;;  %v1679_v22 = vmax.f32 %v1443_v21, 0.0 }
 0x26e   :  { %v3740_v16 = vpop.f32.mrf.mxu0 }
 0x26f   :  { %v1446_v19 = vadd.f32 %v3740_v16, %v4453_v37  ;;  %3801 = vmatprep.mubr.msk.bf16.mxu1 %vm783_vm1, %v1737_v14  ;;  %v1677_v13 = vmax.f32 %v1435_v18, 0.0 }
 0x270   :  { %v1437_v23 = vpop.f32.mrf.mxu0  ;;  %3802 = vmatmul.mubr.msk.bf16.vlgmr.msra.gmra.mxu1 %vm783_vm1, %v1738_v15 }
 0x271   :  { %v1438_v35 = vadd.f32 %v4453_v37, %v1437_v23  ;;  %v1680_v24 = vmax.f32 %v1446_v19, 0.0 }
 0x272   :  { %v3743_v45 = vpop.f32.mrf.mxu0 }
 0x273   :  { %v1678_v25 = vmax.f32 %v1438_v35, 0.0  ;;  %v1740_v29 = vpack.c.bf16 %v1680_v24, %v1679_v22  ;;  %v1459_v54 = vadd.f32 %v3743_v45, %v4453_v37 }
 0x274   :  { %v1450_v27 = vpop.f32.mrf.mxu0 }
 0x275   :  { %v1739_v28 = vpack.c.bf16 %v1678_v25, %v1677_v13  ;;  %v1451_v33 = vadd.f32 %v4453_v37, %v1450_v27  ;;  %v1683_v40 = vmax.f32 %v1459_v54, 0.0 }
 0x276   :  { %v3744_v32 = vpop.f32.mrf.mxu0 }
 0x277   :  { %v1462_v34 = vadd.f32 %v3744_v32, %v4453_v37  ;;  %3805 = vmatprep.mubr.msk.bf16.mxu1 %vm783_vm1, %v1739_v28  ;;  %v1681_v41 = vmax.f32 %v1451_v33, 0.0 }
 0x278   :  { %v1453_v36 = vpop.f32.mrf.mxu0  ;;  %3806 = vmatmul.mubr.msk.bf16.gmra.mxu1 %vm783_vm1, %v1740_v29 }
 0x279   :  { %v1454_v10 = vadd.f32 %v4453_v37, %v1453_v36  ;;  %v1684_v38 = vmax.f32 %v1462_v34, 0.0 }
 0x27a   :  { %v3747_v31 = vpop.f32.mrf.mxu0 }
 0x27b   :  { %v1682_v39 = vmax.f32 %v1454_v10, 0.0  ;;  %v1742_v46 = vpack.c.bf16 %v1684_v38, %v1683_v40  ;;  %v1475_v49 = vadd.f32 %v3747_v31, %v4453_v37 }
 0x27c   :  { %v1466_v42 = vpop.f32.mrf.mxu0 }
 0x27d   :  { %v1741_v43 = vpack.c.bf16 %v1682_v39, %v1681_v41  ;;  %v1467_v48 = vadd.f32 %v4453_v37, %v1466_v42  ;;  %v1687_v53 = vmax.f32 %v1475_v49, 0.0 }
 0x27e   :  { %v3748_v47 = vpop.f32.mrf.mxu0 }
 0x27f   :  { %v1478_v30 = vadd.f32 %v3748_v47, %v4453_v37  ;;  %3809 = vmatprep.mubr.msk.bf16.mxu1 %vm783_vm1, %v1741_v43  ;;  %v1685_v52 = vmax.f32 %v1467_v48, 0.0 }
 0x280   :  { %v1469_v51 = vpop.f32.mrf.mxu0  ;;  %3810 = vmatmul.mubr.msk.bf16.gmra.mxu1 %vm783_vm1, %v1742_v46 }
 0x281   :  { %v1470_v63 = vadd.f32 %v4453_v37, %v1469_v51  ;;  %v1688_v50 = vmax.f32 %v1478_v30, 0.0 }
 0x282   :  { %v3751_v0 = vpop.f32.mrf.mxu0 }
 0x283   :  { %v1686_v8 = vmax.f32 %v1470_v63, 0.0  ;;  %v1744_v57 = vpack.c.bf16 %v1688_v50, %v1687_v53  ;;  %v1491_v62 = vadd.f32 %v3751_v0, %v4453_v37 }
 0x284   :  { %v1482_v55 = vpop.f32.mrf.mxu0 }
 0x285   :  { %v1743_v56 = vpack.c.bf16 %v1686_v8, %v1685_v52  ;;  %v1483_v60 = vadd.f32 %v4453_v37, %v1482_v55  ;;  %v1691_v17 = vmax.f32 %v1491_v62, 0.0 }
 0x286   :  { %v3752_v58 = vpop.f32.mrf.mxu0 }
 0x287   :  { %v1494_v61 = vadd.f32 %v3752_v58, %v4453_v37  ;;  %3813 = vmatprep.mubr.msk.bf16.mxu1 %vm783_vm1, %v1743_v56  ;;  %v1689_v3 = vmax.f32 %v1483_v60, 0.0 }
 0x288   :  { %v1485_v20 = vpop.f32.mrf.mxu0  ;;  %3814 = vmatmul.mubr.msk.bf16.gmra.mxu1 %vm783_vm1, %v1744_v57 }
 0x289   :  { %v1486_v44 = vadd.f32 %v4453_v37, %v1485_v20  ;;  %v1692_v1 = vmax.f32 %v1494_v61, 0.0 }
 0x28a   :  { %v3755_v2 = vpop.f32.mrf.mxu0 }
 0x28b   :  { %v1690_v6 = vmax.f32 %v1486_v44, 0.0  ;;  %v1746_v26 = vpack.c.bf16 %v1692_v1, %v1691_v17  ;;  %v1507_v4 = vadd.f32 %v3755_v2, %v4453_v37 }
 0x28c   :  { %v1498_v7 = vpop.f32.mrf.mxu0 }
 0x28d   :  { %v1745_v9 = vpack.c.bf16 %v1690_v6, %v1689_v3  ;;  %v1499_v59 = vadd.f32 %v4453_v37, %v1498_v7  ;;  %v1695_v21 = vmax.f32 %v1507_v4, 0.0 }
 0x28e   :  { %v3756_v11 = vpop.f32.mrf.mxu0 }
 0x28f   :  { %v1510_v5 = vadd.f32 %v3756_v11, %v4453_v37  ;;  %3817 = vmatprep.mubr.msk.bf16.mxu1 %vm783_vm1, %v1745_v9  ;;  %v1693_v18 = vmax.f32 %v1499_v59, 0.0 }
 0x290   :  { %v1501_v12 = vpop.f32.mrf.mxu0  ;;  %3818 = vmatmul.mubr.msk.bf16.gmra.mxu1 %vm783_vm1, %v1746_v26 }
 0x291   :  { %v1502_v14 = vadd.f32 %v4453_v37, %v1501_v12  ;;  %v1696_v15 = vmax.f32 %v1510_v5, 0.0 }
 0x292   :  { %v3759_v16 = vpop.f32.mrf.mxu0 }
 0x293   :  { %v1694_v19 = vmax.f32 %v1502_v14, 0.0  ;;  %v1748_v24 = vpack.c.bf16 %v1696_v15, %v1695_v21  ;;  %v1523_v22 = vadd.f32 %v3759_v16, %v4453_v37 }
 0x294   :  { %v1514_v23 = vpop.f32.mrf.mxu0 }
 0x295   :  { %v1747_v35 = vpack.c.bf16 %v1694_v19, %v1693_v18  ;;  %v1515_v13 = vadd.f32 %v4453_v37, %v1514_v23  ;;  %v1699_v54 = vmax.f32 %v1523_v22, 0.0 }
 0x296   :  { %v3760_v45 = vpop.f32.mrf.mxu0 }
 0x297   :  { %v1526_v25 = vadd.f32 %v3760_v45, %v4453_v37  ;;  %3821 = vmatprep.mubr.msk.bf16.mxu1 %vm783_vm1, %v1747_v35  ;;  %v1697_v33 = vmax.f32 %v1515_v13, 0.0 }
 0x298   :  { %v1517_v27 = vpop.f32.mrf.mxu0  ;;  %3822 = vmatmul.mubr.msk.bf16.gmra.mxu1 %vm783_vm1, %v1748_v24 }
 0x299   :  { %v1518_v28 = vadd.f32 %v4453_v37, %v1517_v27  ;;  %v1700_v29 = vmax.f32 %v1526_v25, 0.0 }
 0x29a   :  { %v3763_v32 = vpop.f32.mrf.mxu0 }
 0x29b   :  { %v1698_v34 = vmax.f32 %v1518_v28, 0.0  ;;  %v1750_v38 = vpack.c.bf16 %v1700_v29, %v1699_v54  ;;  %v1539_v40 = vadd.f32 %v3763_v32, %v4453_v37 }
 0x29c   :  { %v1530_v36 = vpop.f32.mrf.mxu0 }
 0x29d   :  { %v1749_v10 = vpack.c.bf16 %v1698_v34, %v1697_v33  ;;  %v1531_v41 = vadd.f32 %v4453_v37, %v1530_v36  ;;  %v1703_v49 = vmax.f32 %v1539_v40, 0.0 }
 0x29e   :  { %v3764_v31 = vpop.f32.mrf.mxu0 }
 0x29f   :  { %v1542_v39 = vadd.f32 %v3764_v31, %v4453_v37  ;;  %3825 = vmatprep.mubr.msk.bf16.mxu1 %vm783_vm1, %v1749_v10  ;;  %v1701_v48 = vmax.f32 %v1531_v41, 0.0 }
 0x2a0   :  { %v1533_v42 = vpop.f32.mrf.mxu0  ;;  %3826 = vmatmul.mubr.msk.bf16.gmra.mxu1 %vm783_vm1, %v1750_v38 }
 0x2a1   :  { %v1534_v43 = vadd.f32 %v4453_v37, %v1533_v42  ;;  %v1704_v46 = vmax.f32 %v1542_v39, 0.0 }
 0x2a2   :  { %v3767_v47 = vpop.f32.mrf.mxu0 }
 0x2a3   :  { %v1702_v30 = vmax.f32 %v1534_v43, 0.0  ;;  %v1752_v50 = vpack.c.bf16 %v1704_v46, %v1703_v49  ;;  %v1555_v53 = vadd.f32 %v3767_v47, %v4453_v37 }
 0x2a4   :  { %v1546_v51 = vpop.f32.mrf.mxu0 }
 0x2a5   :  { %v1751_v63 = vpack.c.bf16 %v1702_v30, %v1701_v48  ;;  %v1547_v52 = vadd.f32 %v4453_v37, %v1546_v51  ;;  %v1707_v62 = vmax.f32 %v1555_v53, 0.0 }
 0x2a6   :  { %v3768_v0 = vpop.f32.mrf.mxu0 }
 0x2a7   :  { %v1558_v8 = vadd.f32 %v3768_v0, %v4453_v37  ;;  %3829 = vmatprep.mubr.msk.bf16.mxu1 %vm783_vm1, %v1751_v63  ;;  %v1705_v60 = vmax.f32 %v1547_v52, 0.0 }
 0x2a8   :  { %v1549_v55 = vpop.f32.mrf.mxu0  ;;  %3830 = vmatmul.mubr.msk.bf16.gmra.mxu1 %vm783_vm1, %v1752_v50 }
 0x2a9   :  { %v1550_v56 = vadd.f32 %v4453_v37, %v1549_v55  ;;  %v1708_v57 = vmax.f32 %v1558_v8, 0.0 }
 0x2aa   :  { %v3771_v58 = vpop.f32.mrf.mxu0 }
 0x2ab   :  { %v1706_v61 = vmax.f32 %v1550_v56, 0.0  ;;  %v1754_v1 = vpack.c.bf16 %v1708_v57, %v1707_v62  ;;  %v1571_v17 = vadd.f32 %v3771_v58, %v4453_v37 }
 0x2ac   :  { %v1562_v20 = vpop.f32.mrf.mxu0 }
 0x2ad   :  { %v1753_v44 = vpack.c.bf16 %v1706_v61, %v1705_v60  ;;  %v1563_v3 = vadd.f32 %v4453_v37, %v1562_v20  ;;  %v1711_v4 = vmax.f32 %v1571_v17, 0.0 }
 0x2ae   :  { %v3772_v2 = vpop.f32.mrf.mxu0 }
 0x2af   :  { %v1574_v6 = vadd.f32 %v3772_v2, %v4453_v37  ;;  %3833 = vmatprep.mubr.msk.bf16.mxu1 %vm783_vm1, %v1753_v44  ;;  %v1709_v59 = vmax.f32 %v1563_v3, 0.0 }
 0x2b0   :  { %v1565_v7 = vpop.f32.mrf.mxu0  ;;  %3834 = vmatmul.mubr.msk.bf16.gmra.mxu1 %vm783_vm1, %v1754_v1 }
 0x2b1   :  { %v1566_v9 = vadd.f32 %v4453_v37, %v1565_v7  ;;  %v1712_v26 = vmax.f32 %v1574_v6, 0.0 }
 0x2b2   :  { %v3775_v11 = vpop.f32.mrf.mxu0 }
 0x2b3   :  { %v1710_v5 = vmax.f32 %v1566_v9, 0.0  ;;  %v1756_v15 = vpack.c.bf16 %v1712_v26, %v1711_v4  ;;  %v1587_v21 = vadd.f32 %v3775_v11, %v4453_v37 }
 0x2b4   :  { %v1578_v12 = vpop.f32.mrf.mxu0 }
 0x2b5   :  { %v1755_v14 = vpack.c.bf16 %v1710_v5, %v1709_v59  ;;  %v1579_v18 = vadd.f32 %v4453_v37, %v1578_v12  ;;  %v1715_v22 = vmax.f32 %v1587_v21, 0.0 }
 0x2b6   :  { %v3776_v16 = vpop.f32.mrf.mxu0 }
 0x2b7   :  { %v1590_v19 = vadd.f32 %v3776_v16, %v4453_v37  ;;  %3837 = vmatprep.mubr.msk.bf16.mxu1 %vm783_vm1, %v1755_v14  ;;  %v1713_v13 = vmax.f32 %v1579_v18, 0.0 }
 0x2b8   :  { %v1581_v23 = vpop.f32.mrf.mxu0  ;;  %3838 = vmatmul.mubr.msk.bf16.gmra.mxu1 %vm783_vm1, %v1756_v15 }
 0x2b9   :  { %v1582_v35 = vadd.f32 %v4453_v37, %v1581_v23  ;;  %v1716_v24 = vmax.f32 %v1590_v19, 0.0 }
 0x2ba   :  { %v3779_v45 = vpop.f32.mrf.mxu0 }
 0x2bb   :  { %v1714_v25 = vmax.f32 %v1582_v35, 0.0  ;;  %v1758_v29 = vpack.c.bf16 %v1716_v24, %v1715_v22  ;;  %v1603_v54 = vadd.f32 %v3779_v45, %v4453_v37 }
 0x2bc   :  { %v1594_v27 = vpop.f32.mrf.mxu0 }
 0x2bd   :  { %v1757_v28 = vpack.c.bf16 %v1714_v25, %v1713_v13  ;;  %v1595_v33 = vadd.f32 %v4453_v37, %v1594_v27  ;;  %v1719_v40 = vmax.f32 %v1603_v54, 0.0 }
 0x2be   :  { %v3780_v32 = vpop.f32.mrf.mxu0 }
 0x2bf   :  { %v1606_v34 = vadd.f32 %v3780_v32, %v4453_v37  ;;  %3841 = vmatprep.mubr.msk.bf16.mxu1 %vm783_vm1, %v1757_v28  ;;  %v1717_v41 = vmax.f32 %v1595_v33, 0.0 }
 0x2c0   :  { %v1597_v36 = vpop.f32.mrf.mxu0  ;;  %3842 = vmatmul.mubr.msk.bf16.gmra.mxu1 %vm783_vm1, %v1758_v29 }
 0x2c1   :  { %v1598_v10 = vadd.f32 %v4453_v37, %v1597_v36  ;;  %v1720_v38 = vmax.f32 %v1606_v34, 0.0 }
 0x2c2   :  { %v3783_v31 = vpop.f32.mrf.mxu0 }
 0x2c3   :  { %v1718_v39 = vmax.f32 %v1598_v10, 0.0  ;;  %v1760_v46 = vpack.c.bf16 %v1720_v38, %v1719_v40  ;;  %v1619_v49 = vadd.f32 %v3783_v31, %v4453_v37  ;;  %v4557_v31 = vld [vmem:[%s4735_s8] ss:$0 sm:$0xff] }
 0x2c4   :  { %v1610_v42 = vpop.f32.mrf.mxu0 }
 0x2c5   :  { %v1759_v43 = vpack.c.bf16 %v1718_v39, %v1717_v41  ;;  %v1611_v48 = vadd.f32 %v4453_v37, %v1610_v42  ;;  %v1723_v53 = vmax.f32 %v1619_v49, 0.0 }
 0x2c6   :  { %v3784_v47 = vpop.f32.mrf.mxu0 }
 0x2c7   :  { %v1622_v30 = vadd.f32 %v3784_v47, %v4453_v37  ;;  %3845 = vmatprep.mubr.msk.bf16.mxu1 %vm783_vm1, %v1759_v43  ;;  %v1721_v52 = vmax.f32 %v1611_v48, 0.0 }
 0x2c8   :  { %v1613_v51 = vpop.f32.mrf.mxu0  ;;  %3846 = vmatmul.mubr.msk.bf16.gmra.mxu1 %vm783_vm1, %v1760_v46 }
 0x2c9   :  { %v1614_v63 = vadd.f32 %v4453_v37, %v1613_v51  ;;  %v1724_v50 = vmax.f32 %v1622_v30, 0.0 }
 0x2ca   :  { %v3787_v0 = vpop.f32.mrf.mxu0 }
 0x2cb   :  { %v1722_v8 = vmax.f32 %v1614_v63, 0.0  ;;  %v1762_v57 = vpack.c.bf16 %v1724_v50, %v1723_v53  ;;  %v1635_v62 = vadd.f32 %v3787_v0, %v4453_v37 }
 0x2cc   :  { %v1626_v55 = vpop.f32.mrf.mxu0 }
 0x2cd   :  { %v1761_v56 = vpack.c.bf16 %v1722_v8, %v1721_v52  ;;  %v1627_v60 = vadd.f32 %v4453_v37, %v1626_v55  ;;  %v1727_v17 = vmax.f32 %v1635_v62, 0.0 }
 0x2ce   :  { %v3788_v58 = vpop.f32.mrf.mxu0 }
 0x2cf   :  { %v1638_v61 = vadd.f32 %v3788_v58, %v4453_v37  ;;  %3849 = vmatprep.mubr.msk.bf16.mxu1 %vm783_vm1, %v1761_v56  ;;  %v1725_v3 = vmax.f32 %v1627_v60, 0.0 }
 0x2d0   :  { %v1629_v20 = vpop.f32.mrf.mxu0  ;;  %3850 = vmatmul.mubr.msk.bf16.gmra.mxu1 %vm783_vm1, %v1762_v57 }
 0x2d1   :  { %v1630_v44 = vadd.f32 %v4453_v37, %v1629_v20  ;;  %v1728_v1 = vmax.f32 %v1638_v61, 0.0 }
 0x2d2   :  { %v3791_v2 = vpop.f32.mrf.mxu0 }
 0x2d3   :  { %v1726_v6 = vmax.f32 %v1630_v44, 0.0  ;;  %v1764_v26 = vpack.c.bf16 %v1728_v1, %v1727_v17  ;;  %v1651_v4 = vadd.f32 %v3791_v2, %v4453_v37 }
 0x2d4   :  { %v1642_v7 = vpop.f32.mrf.mxu0 }
 0x2d5   :  { %v1763_v9 = vpack.c.bf16 %v1726_v6, %v1725_v3  ;;  %v1643_v59 = vadd.f32 %v4453_v37, %v1642_v7  ;;  %v1731_v21 = vmax.f32 %v1651_v4, 0.0 }
 0x2d6   :  { %v3792_v11 = vpop.f32.mrf.mxu0 }
 0x2d7   :  { %v1654_v5 = vadd.f32 %v3792_v11, %v4453_v37  ;;  %3853 = vmatprep.mubr.msk.bf16.mxu1 %vm783_vm1, %v1763_v9  ;;  %v1729_v18 = vmax.f32 %v1643_v59, 0.0 }
 0x2d8   :  { %v1645_v12 = vpop.f32.mrf.mxu0  ;;  %3854 = vmatmul.mubr.msk.bf16.gmra.mxu1 %vm783_vm1, %v1764_v26 }
 0x2d9   :  { %v1646_v14 = vadd.f32 %v4453_v37, %v1645_v12  ;;  %v1732_v15 = vmax.f32 %v1654_v5, 0.0 }
 0x2da   :  { %v3795_v16 = vpop.f32.mrf.mxu0 }
 0x2db   :  { %v1730_v19 = vmax.f32 %v1646_v14, 0.0  ;;  %v1766_v24 = vpack.c.bf16 %v1732_v15, %v1731_v21  ;;  %v1667_v22 = vadd.f32 %v3795_v16, %v4453_v37 }
 0x2dc   :  { %v1658_v23 = vpop.f32.mrf.mxu0 }
 0x2dd   :  { %v1765_v35 = vpack.c.bf16 %v1730_v19, %v1729_v18  ;;  %v1659_v13 = vadd.f32 %v4453_v37, %v1658_v23  ;;  %v1735_v34 = vmax.f32 %v1667_v22, 0.0 }
 0x2de   :  { %v3796_v45 = vpop.f32.mrf.mxu0 }
 0x2df   :  { %v1670_v25 = vadd.f32 %v3796_v45, %v4453_v37  ;;  %3857 = vmatprep.mubr.msk.bf16.mxu1 %vm783_vm1, %v1765_v35  ;;  %v1733_v32 = vmax.f32 %v1659_v13, 0.0 }
 0x2e0   :  { %v1661_v27 = vpop.f32.mrf.mxu0  ;;  %3858 = vmatmul.mubr.msk.bf16.gmra.mxu1 %vm783_vm1, %v1766_v24 }
 0x2e1   :  { %v1662_v28 = vadd.f32 %v4453_v37, %v1661_v27  ;;  %v1736_v29 = vmax.f32 %v1670_v25, 0.0 }
 0x2e3   :  { %v1734_v33 = vmax.f32 %v1662_v28, 0.0  ;;  %v1768_v36 = vpack.c.bf16 %v1736_v29, %v1735_v34 }
 0x2e5   :  { %v1767_v54 = vpack.c.bf16 %v1734_v33, %v1733_v32 }
 0x2e7   :  { %3861 = vmatprep.mubr.msk.bf16.mxu1 %vm783_vm1, %v1767_v54 }
 0x2e8   :  { %3862 = vmatmul.mubr.msk.bf16.gmra.mxu1 %vm783_vm1, %v1768_v36 }
 0x330   :  { %v3803_v10 = vpop.f32.mrf.mxu1 }
 0x331   :  { %v1931_v40 = vadd.f32 %v3803_v10, %v4557_v31 }
 0x332   :  { %v1922_v38 = vpop.f32.mrf.mxu1 }
 0x333   :  { %v1923_v37 = vadd.f32 %v4557_v31, %v1922_v38  ;;  %v2179_v49 = vmax.f32 %v1931_v40, 0.0 }
 0x334   :  { %v3804_v41 = vpop.f32.mrf.mxu1 }
 0x335   :  { %v1934_v39 = vadd.f32 %v3804_v41, %v4557_v31  ;;  %v2177_v48 = vmax.f32 %v1923_v37, 0.0 }
 0x336   :  { %v1925_v42 = vpop.f32.mrf.mxu1 }
 0x337   :  { %v1926_v43 = vadd.f32 %v4557_v31, %v1925_v42  ;;  %v2180_v46 = vmax.f32 %v1934_v39, 0.0 }
 0x338   :  { %v3807_v47 = vpop.f32.mrf.mxu1 }
 0x339   :  { %v2178_v30 = vmax.f32 %v1926_v43, 0.0  ;;  %v2242_v50 = vpack.c.bf16 %v2180_v46, %v2179_v49  ;;  %v1947_v53 = vadd.f32 %v3807_v47, %v4557_v31 }
 0x33a   :  { %v1938_v51 = vpop.f32.mrf.mxu1 }
 0x33b   :  { %v2241_v63 = vpack.c.bf16 %v2178_v30, %v2177_v48  ;;  %v1939_v52 = vadd.f32 %v4557_v31, %v1938_v51  ;;  %v2183_v62 = vmax.f32 %v1947_v53, 0.0 }
 0x33c   :  { %v3808_v0 = vpop.f32.mrf.mxu1 }
 0x33d   :  { %v1950_v8 = vadd.f32 %v3808_v0, %v4557_v31  ;;  %3869 = vmatprep.mubr.msk.bf16.mxu0 %vm783_vm1, %v2241_v63  ;;  %v2181_v60 = vmax.f32 %v1939_v52, 0.0 }
 0x33e   :  { %v1941_v55 = vpop.f32.mrf.mxu1  ;;  %3870 = vmatmul.mubr.msk.bf16.vlgmr.msra.gmra.mxu0 %vm783_vm1, %v2242_v50 }
 0x33f   :  { %v1942_v56 = vadd.f32 %v4557_v31, %v1941_v55  ;;  %v2184_v57 = vmax.f32 %v1950_v8, 0.0 }
 0x340   :  { %v3811_v58 = vpop.f32.mrf.mxu1 }
 0x341   :  { %v2182_v61 = vmax.f32 %v1942_v56, 0.0  ;;  %v2244_v1 = vpack.c.bf16 %v2184_v57, %v2183_v62  ;;  %v1963_v17 = vadd.f32 %v3811_v58, %v4557_v31 }
 0x342   :  { %v1954_v20 = vpop.f32.mrf.mxu1 }
 0x343   :  { %v2243_v44 = vpack.c.bf16 %v2182_v61, %v2181_v60  ;;  %v1955_v3 = vadd.f32 %v4557_v31, %v1954_v20  ;;  %v2187_v4 = vmax.f32 %v1963_v17, 0.0 }
 0x344   :  { %v3812_v2 = vpop.f32.mrf.mxu1 }
 0x345   :  { %v1966_v6 = vadd.f32 %v3812_v2, %v4557_v31  ;;  %3873 = vmatprep.mubr.msk.bf16.mxu0 %vm783_vm1, %v2243_v44  ;;  %v2185_v59 = vmax.f32 %v1955_v3, 0.0 }
 0x346   :  { %v1957_v7 = vpop.f32.mrf.mxu1  ;;  %3874 = vmatmul.mubr.msk.bf16.gmra.mxu0 %vm783_vm1, %v2244_v1 }
 0x347   :  { %v1958_v9 = vadd.f32 %v4557_v31, %v1957_v7  ;;  %v2188_v26 = vmax.f32 %v1966_v6, 0.0 }
 0x348   :  { %v3815_v11 = vpop.f32.mrf.mxu1 }
 0x349   :  { %v2186_v5 = vmax.f32 %v1958_v9, 0.0  ;;  %v2246_v15 = vpack.c.bf16 %v2188_v26, %v2187_v4  ;;  %v1979_v21 = vadd.f32 %v3815_v11, %v4557_v31 }
 0x34a   :  { %v1970_v12 = vpop.f32.mrf.mxu1 }
 0x34b   :  { %v2245_v14 = vpack.c.bf16 %v2186_v5, %v2185_v59  ;;  %v1971_v18 = vadd.f32 %v4557_v31, %v1970_v12  ;;  %v2191_v22 = vmax.f32 %v1979_v21, 0.0 }
 0x34c   :  { %v3816_v16 = vpop.f32.mrf.mxu1 }
 0x34d   :  { %v1982_v19 = vadd.f32 %v3816_v16, %v4557_v31  ;;  %3877 = vmatprep.mubr.msk.bf16.mxu0 %vm783_vm1, %v2245_v14  ;;  %v2189_v13 = vmax.f32 %v1971_v18, 0.0 }
 0x34e   :  { %v1973_v23 = vpop.f32.mrf.mxu1  ;;  %3878 = vmatmul.mubr.msk.bf16.gmra.mxu0 %vm783_vm1, %v2246_v15 }
 0x34f   :  { %v1974_v35 = vadd.f32 %v4557_v31, %v1973_v23  ;;  %v2192_v24 = vmax.f32 %v1982_v19, 0.0 }
 0x350   :  { %v3819_v45 = vpop.f32.mrf.mxu1 }
 0x351   :  { %v2190_v25 = vmax.f32 %v1974_v35, 0.0  ;;  %v2248_v29 = vpack.c.bf16 %v2192_v24, %v2191_v22  ;;  %v1995_v54 = vadd.f32 %v3819_v45, %v4557_v31 }
 0x352   :  { %v1986_v27 = vpop.f32.mrf.mxu1 }
 0x353   :  { %v2247_v28 = vpack.c.bf16 %v2190_v25, %v2189_v13  ;;  %v1987_v33 = vadd.f32 %v4557_v31, %v1986_v27  ;;  %v2195_v40 = vmax.f32 %v1995_v54, 0.0 }
 0x354   :  { %v3820_v32 = vpop.f32.mrf.mxu1 }
 0x355   :  { %v1998_v34 = vadd.f32 %v3820_v32, %v4557_v31  ;;  %3881 = vmatprep.mubr.msk.bf16.mxu0 %vm783_vm1, %v2247_v28  ;;  %v2193_v37 = vmax.f32 %v1987_v33, 0.0 }
 0x356   :  { %v1989_v36 = vpop.f32.mrf.mxu1  ;;  %3882 = vmatmul.mubr.msk.bf16.gmra.mxu0 %vm783_vm1, %v2248_v29 }
 0x357   :  { %v1990_v10 = vadd.f32 %v4557_v31, %v1989_v36  ;;  %v2196_v38 = vmax.f32 %v1998_v34, 0.0 }
 0x358   :  { %v3823_v41 = vpop.f32.mrf.mxu1 }
 0x359   :  { %v2194_v39 = vmax.f32 %v1990_v10, 0.0  ;;  %v2250_v46 = vpack.c.bf16 %v2196_v38, %v2195_v40  ;;  %v2011_v49 = vadd.f32 %v3823_v41, %v4557_v31 }
 0x35a   :  { %v2002_v42 = vpop.f32.mrf.mxu1 }
 0x35b   :  { %v2249_v43 = vpack.c.bf16 %v2194_v39, %v2193_v37  ;;  %v2003_v48 = vadd.f32 %v4557_v31, %v2002_v42  ;;  %v2199_v53 = vmax.f32 %v2011_v49, 0.0 }
 0x35c   :  { %v3824_v47 = vpop.f32.mrf.mxu1 }
 0x35d   :  { %v2014_v30 = vadd.f32 %v3824_v47, %v4557_v31  ;;  %3885 = vmatprep.mubr.msk.bf16.mxu0 %vm783_vm1, %v2249_v43  ;;  %v2197_v52 = vmax.f32 %v2003_v48, 0.0 }
 0x35e   :  { %v2005_v51 = vpop.f32.mrf.mxu1  ;;  %3886 = vmatmul.mubr.msk.bf16.gmra.mxu0 %vm783_vm1, %v2250_v46 }
 0x35f   :  { %v2006_v63 = vadd.f32 %v4557_v31, %v2005_v51  ;;  %v2200_v50 = vmax.f32 %v2014_v30, 0.0 }
 0x360   :  { %v3827_v0 = vpop.f32.mrf.mxu1 }
 0x361   :  { %v2198_v8 = vmax.f32 %v2006_v63, 0.0  ;;  %v2252_v57 = vpack.c.bf16 %v2200_v50, %v2199_v53  ;;  %v2027_v62 = vadd.f32 %v3827_v0, %v4557_v31 }
 0x362   :  { %v2018_v55 = vpop.f32.mrf.mxu1 }
 0x363   :  { %v2251_v56 = vpack.c.bf16 %v2198_v8, %v2197_v52  ;;  %v2019_v60 = vadd.f32 %v4557_v31, %v2018_v55  ;;  %v2203_v17 = vmax.f32 %v2027_v62, 0.0 }
 0x364   :  { %v3828_v58 = vpop.f32.mrf.mxu1 }
 0x365   :  { %v2030_v61 = vadd.f32 %v3828_v58, %v4557_v31  ;;  %3889 = vmatprep.mubr.msk.bf16.mxu0 %vm783_vm1, %v2251_v56  ;;  %v2201_v3 = vmax.f32 %v2019_v60, 0.0 }
 0x366   :  { %v2021_v20 = vpop.f32.mrf.mxu1  ;;  %3890 = vmatmul.mubr.msk.bf16.gmra.mxu0 %vm783_vm1, %v2252_v57 }
 0x367   :  { %v2022_v44 = vadd.f32 %v4557_v31, %v2021_v20  ;;  %v2204_v1 = vmax.f32 %v2030_v61, 0.0 }
 0x368   :  { %v3831_v2 = vpop.f32.mrf.mxu1 }
 0x369   :  { %v2202_v6 = vmax.f32 %v2022_v44, 0.0  ;;  %v2254_v26 = vpack.c.bf16 %v2204_v1, %v2203_v17  ;;  %v2043_v4 = vadd.f32 %v3831_v2, %v4557_v31 }
 0x36a   :  { %v2034_v7 = vpop.f32.mrf.mxu1 }
 0x36b   :  { %v2253_v9 = vpack.c.bf16 %v2202_v6, %v2201_v3  ;;  %v2035_v59 = vadd.f32 %v4557_v31, %v2034_v7  ;;  %v2207_v21 = vmax.f32 %v2043_v4, 0.0 }
 0x36c   :  { %v3832_v11 = vpop.f32.mrf.mxu1 }
 0x36d   :  { %v2046_v5 = vadd.f32 %v3832_v11, %v4557_v31  ;;  %3893 = vmatprep.mubr.msk.bf16.mxu0 %vm783_vm1, %v2253_v9  ;;  %v2205_v18 = vmax.f32 %v2035_v59, 0.0 }
 0x36e   :  { %v2037_v12 = vpop.f32.mrf.mxu1  ;;  %3894 = vmatmul.mubr.msk.bf16.gmra.mxu0 %vm783_vm1, %v2254_v26 }
 0x36f   :  { %v2038_v14 = vadd.f32 %v4557_v31, %v2037_v12  ;;  %v2208_v15 = vmax.f32 %v2046_v5, 0.0 }
 0x370   :  { %v3835_v16 = vpop.f32.mrf.mxu1 }
 0x371   :  { %v2206_v19 = vmax.f32 %v2038_v14, 0.0  ;;  %v2256_v24 = vpack.c.bf16 %v2208_v15, %v2207_v21  ;;  %v2059_v22 = vadd.f32 %v3835_v16, %v4557_v31 }
 0x372   :  { %v2050_v23 = vpop.f32.mrf.mxu1 }
 0x373   :  { %v2255_v35 = vpack.c.bf16 %v2206_v19, %v2205_v18  ;;  %v2051_v13 = vadd.f32 %v4557_v31, %v2050_v23  ;;  %v2211_v54 = vmax.f32 %v2059_v22, 0.0 }
 0x374   :  { %v3836_v45 = vpop.f32.mrf.mxu1 }
 0x375   :  { %v2062_v25 = vadd.f32 %v3836_v45, %v4557_v31  ;;  %3897 = vmatprep.mubr.msk.bf16.mxu0 %vm783_vm1, %v2255_v35  ;;  %v2209_v33 = vmax.f32 %v2051_v13, 0.0 }
 0x376   :  { %v2053_v27 = vpop.f32.mrf.mxu1  ;;  %3898 = vmatmul.mubr.msk.bf16.gmra.mxu0 %vm783_vm1, %v2256_v24 }
 0x377   :  { %v2054_v28 = vadd.f32 %v4557_v31, %v2053_v27  ;;  %v2212_v29 = vmax.f32 %v2062_v25, 0.0 }
 0x378   :  { %v3839_v32 = vpop.f32.mrf.mxu1 }
 0x379   :  { %v2210_v34 = vmax.f32 %v2054_v28, 0.0  ;;  %v2258_v38 = vpack.c.bf16 %v2212_v29, %v2211_v54  ;;  %v2075_v40 = vadd.f32 %v3839_v32, %v4557_v31 }
 0x37a   :  { %v2066_v36 = vpop.f32.mrf.mxu1 }
 0x37b   :  { %v2257_v10 = vpack.c.bf16 %v2210_v34, %v2209_v33  ;;  %v2067_v37 = vadd.f32 %v4557_v31, %v2066_v36  ;;  %v2215_v49 = vmax.f32 %v2075_v40, 0.0 }
 0x37c   :  { %v3840_v41 = vpop.f32.mrf.mxu1 }
 0x37d   :  { %v2078_v39 = vadd.f32 %v3840_v41, %v4557_v31  ;;  %3901 = vmatprep.mubr.msk.bf16.mxu0 %vm783_vm1, %v2257_v10  ;;  %v2213_v48 = vmax.f32 %v2067_v37, 0.0 }
 0x37e   :  { %v2069_v42 = vpop.f32.mrf.mxu1  ;;  %3902 = vmatmul.mubr.msk.bf16.gmra.mxu0 %vm783_vm1, %v2258_v38 }
 0x37f   :  { %v2070_v43 = vadd.f32 %v4557_v31, %v2069_v42  ;;  %v2216_v46 = vmax.f32 %v2078_v39, 0.0 }
 0x380   :  { %v3843_v47 = vpop.f32.mrf.mxu1 }
 0x381   :  { %v2214_v30 = vmax.f32 %v2070_v43, 0.0  ;;  %v2260_v50 = vpack.c.bf16 %v2216_v46, %v2215_v49  ;;  %v2091_v53 = vadd.f32 %v3843_v47, %v4557_v31 }
 0x382   :  { %v2082_v51 = vpop.f32.mrf.mxu1 }
 0x383   :  { %v2259_v63 = vpack.c.bf16 %v2214_v30, %v2213_v48  ;;  %v2083_v52 = vadd.f32 %v4557_v31, %v2082_v51  ;;  %v2219_v62 = vmax.f32 %v2091_v53, 0.0 }
 0x384   :  { %v3844_v0 = vpop.f32.mrf.mxu1 }
 0x385   :  { %v2094_v8 = vadd.f32 %v3844_v0, %v4557_v31  ;;  %3905 = vmatprep.mubr.msk.bf16.mxu0 %vm783_vm1, %v2259_v63  ;;  %v2217_v60 = vmax.f32 %v2083_v52, 0.0 }
 0x386   :  { %v2085_v55 = vpop.f32.mrf.mxu1  ;;  %3906 = vmatmul.mubr.msk.bf16.gmra.mxu0 %vm783_vm1, %v2260_v50 }
 0x387   :  { %v2086_v56 = vadd.f32 %v4557_v31, %v2085_v55  ;;  %v2220_v57 = vmax.f32 %v2094_v8, 0.0 }
 0x388   :  { %v3847_v58 = vpop.f32.mrf.mxu1 }
 0x389   :  { %v2218_v61 = vmax.f32 %v2086_v56, 0.0  ;;  %v2262_v1 = vpack.c.bf16 %v2220_v57, %v2219_v62  ;;  %v2107_v17 = vadd.f32 %v3847_v58, %v4557_v31 }
 0x38a   :  { %v2098_v20 = vpop.f32.mrf.mxu1 }
 0x38b   :  { %v2261_v44 = vpack.c.bf16 %v2218_v61, %v2217_v60  ;;  %v2099_v3 = vadd.f32 %v4557_v31, %v2098_v20  ;;  %v2223_v4 = vmax.f32 %v2107_v17, 0.0 }
 0x38c   :  { %v3848_v2 = vpop.f32.mrf.mxu1 }
 0x38d   :  { %v2110_v6 = vadd.f32 %v3848_v2, %v4557_v31  ;;  %3909 = vmatprep.mubr.msk.bf16.mxu0 %vm783_vm1, %v2261_v44  ;;  %v2221_v59 = vmax.f32 %v2099_v3, 0.0 }
 0x38e   :  { %v2101_v7 = vpop.f32.mrf.mxu1  ;;  %3910 = vmatmul.mubr.msk.bf16.gmra.mxu0 %vm783_vm1, %v2262_v1 }
 0x38f   :  { %v2102_v9 = vadd.f32 %v4557_v31, %v2101_v7  ;;  %v2224_v26 = vmax.f32 %v2110_v6, 0.0 }
 0x390   :  { %v3851_v11 = vpop.f32.mrf.mxu1 }
 0x391   :  { %v2222_v5 = vmax.f32 %v2102_v9, 0.0  ;;  %v2264_v15 = vpack.c.bf16 %v2224_v26, %v2223_v4  ;;  %v2123_v21 = vadd.f32 %v3851_v11, %v4557_v31  ;;  %v4658_v11 = vld [vmem:[%s4736_s10] ss:$0 sm:$0xff] }
 0x392   :  { %v2114_v12 = vpop.f32.mrf.mxu1 }
 0x393   :  { %v2263_v14 = vpack.c.bf16 %v2222_v5, %v2221_v59  ;;  %v2115_v18 = vadd.f32 %v4557_v31, %v2114_v12  ;;  %v2227_v22 = vmax.f32 %v2123_v21, 0.0 }
 0x394   :  { %v3852_v16 = vpop.f32.mrf.mxu1 }
 0x395   :  { %v2126_v19 = vadd.f32 %v3852_v16, %v4557_v31  ;;  %3913 = vmatprep.mubr.msk.bf16.mxu0 %vm783_vm1, %v2263_v14  ;;  %v2225_v13 = vmax.f32 %v2115_v18, 0.0 }
 0x396   :  { %v2117_v23 = vpop.f32.mrf.mxu1  ;;  %3914 = vmatmul.mubr.msk.bf16.gmra.mxu0 %vm783_vm1, %v2264_v15 }
 0x397   :  { %v2118_v35 = vadd.f32 %v4557_v31, %v2117_v23  ;;  %v2228_v24 = vmax.f32 %v2126_v19, 0.0 }
 0x398   :  { %v3855_v45 = vpop.f32.mrf.mxu1 }
 0x399   :  { %v2226_v25 = vmax.f32 %v2118_v35, 0.0  ;;  %v2266_v29 = vpack.c.bf16 %v2228_v24, %v2227_v22  ;;  %v2139_v54 = vadd.f32 %v3855_v45, %v4557_v31 }
 0x39a   :  { %v2130_v27 = vpop.f32.mrf.mxu1 }
 0x39b   :  { %v2265_v28 = vpack.c.bf16 %v2226_v25, %v2225_v13  ;;  %v2131_v33 = vadd.f32 %v4557_v31, %v2130_v27  ;;  %v2231_v40 = vmax.f32 %v2139_v54, 0.0 }
 0x39c   :  { %v3856_v32 = vpop.f32.mrf.mxu1 }
 0x39d   :  { %v2142_v34 = vadd.f32 %v3856_v32, %v4557_v31  ;;  %3917 = vmatprep.mubr.msk.bf16.mxu0 %vm783_vm1, %v2265_v28  ;;  %v2229_v37 = vmax.f32 %v2131_v33, 0.0 }
 0x39e   :  { %v2133_v36 = vpop.f32.mrf.mxu1  ;;  %3918 = vmatmul.mubr.msk.bf16.gmra.mxu0 %vm783_vm1, %v2266_v29 }
 0x39f   :  { %v2134_v10 = vadd.f32 %v4557_v31, %v2133_v36  ;;  %v2232_v38 = vmax.f32 %v2142_v34, 0.0 }
 0x3a0   :  { %v3859_v41 = vpop.f32.mrf.mxu1 }
 0x3a1   :  { %v2230_v39 = vmax.f32 %v2134_v10, 0.0  ;;  %v2268_v46 = vpack.c.bf16 %v2232_v38, %v2231_v40  ;;  %v2155_v49 = vadd.f32 %v3859_v41, %v4557_v31 }
 0x3a2   :  { %v2146_v42 = vpop.f32.mrf.mxu1 }
 0x3a3   :  { %v2267_v43 = vpack.c.bf16 %v2230_v39, %v2229_v37  ;;  %v2147_v48 = vadd.f32 %v4557_v31, %v2146_v42  ;;  %v2235_v53 = vmax.f32 %v2155_v49, 0.0 }
 0x3a4   :  { %v3860_v47 = vpop.f32.mrf.mxu1 }
 0x3a5   :  { %v2158_v30 = vadd.f32 %v3860_v47, %v4557_v31  ;;  %3921 = vmatprep.mubr.msk.bf16.mxu0 %vm783_vm1, %v2267_v43  ;;  %v2233_v52 = vmax.f32 %v2147_v48, 0.0 }
 0x3a6   :  { %v2149_v51 = vpop.f32.mrf.mxu1  ;;  %3922 = vmatmul.mubr.msk.bf16.gmra.mxu0 %vm783_vm1, %v2268_v46 }
 0x3a7   :  { %v2150_v63 = vadd.f32 %v4557_v31, %v2149_v51  ;;  %v2236_v50 = vmax.f32 %v2158_v30, 0.0 }
 0x3a8   :  { %v3863_v0 = vpop.f32.mrf.mxu1 }
 0x3a9   :  { %v2234_v8 = vmax.f32 %v2150_v63, 0.0  ;;  %v2270_v57 = vpack.c.bf16 %v2236_v50, %v2235_v53  ;;  %v2171_v62 = vadd.f32 %v3863_v0, %v4557_v31 }
 0x3aa   :  { %v2162_v55 = vpop.f32.mrf.mxu1 }
 0x3ab   :  { %v2269_v56 = vpack.c.bf16 %v2234_v8, %v2233_v52  ;;  %v2163_v60 = vadd.f32 %v4557_v31, %v2162_v55  ;;  %v2239_v6 = vmax.f32 %v2171_v62, 0.0 }
 0x3ac   :  { %v3864_v58 = vpop.f32.mrf.mxu1 }
 0x3ad   :  { %v2174_v61 = vadd.f32 %v3864_v58, %v4557_v31  ;;  %3925 = vmatprep.mubr.msk.bf16.mxu0 %vm783_vm1, %v2269_v56  ;;  %v2237_v2 = vmax.f32 %v2163_v60, 0.0 }
 0x3ae   :  { %v2165_v20 = vpop.f32.mrf.mxu1  ;;  %3926 = vmatmul.mubr.msk.bf16.gmra.mxu0 %vm783_vm1, %v2270_v57 }
 0x3af   :  { %v2166_v44 = vadd.f32 %v4557_v31, %v2165_v20  ;;  %v2240_v1 = vmax.f32 %v2174_v61, 0.0 }
 0x3b1   :  { %v2238_v3 = vmax.f32 %v2166_v44, 0.0  ;;  %v2272_v7 = vpack.c.bf16 %v2240_v1, %v2239_v6 }
 0x3b3   :  { %v2271_v17 = vpack.c.bf16 %v2238_v3, %v2237_v2 }
 0x3b5   :  { %3929 = vmatprep.mubr.msk.bf16.mxu0 %vm783_vm1, %v2271_v17 }
 0x3b6   :  { %3930 = vmatmul.mubr.msk.bf16.gmra.mxu0 %vm783_vm1, %v2272_v7 }
 0x3fe   :  { %v3871_v9 = vpop.f32.mrf.mxu0 }
 0x3ff   :  { %v2435_v4 = vadd.f32 %v3871_v9, %v4658_v11 }
 0x400   :  { %v2426_v26 = vpop.f32.mrf.mxu0 }
 0x401   :  { %v2427_v31 = vadd.f32 %v4658_v11, %v2426_v26  ;;  %v2946_v21 = vmul.f32 %v2435_v4, %v2435_v4 }
 0x402   :  { %v3872_v59 = vpop.f32.mrf.mxu0 }
 0x403   :  { %v2944_v15 = vmul.f32 %v2427_v31, %v2427_v31  ;;  %v2438_v16 = vadd.f32 %v3872_v59, %v4658_v11 }
 0x404   :  { %v2429_v5 = vpop.f32.mrf.mxu0 }
 0x405   :  { %v2430_v12 = vadd.f32 %v4658_v11, %v2429_v5  ;;  %v2947_v45 = vmul.f32 %v2438_v16, %v2438_v16 }
 0x406   :  { %v3875_v14 = vpop.f32.mrf.mxu0 }
 0x407   :  { %v2945_v18 = vmul.f32 %v2430_v12, %v2430_v12  ;;  %v2451_v22 = vadd.f32 %v3875_v14, %v4658_v11 }
 0x408   :  { %v2442_v19 = vpop.f32.mrf.mxu0 }
 0x409   :  { %v3008_v23 = vadd.f32 %v2945_v18, %v2944_v15  ;;  %v2443_v35 = vadd.f32 %v4658_v11, %v2442_v19  ;;  %v2950_v10 = vmul.f32 %v2451_v22, %v2451_v22 }
 0x40a   :  { %v3876_v24 = vpop.f32.mrf.mxu0 }
 0x40b   :  { %v3009_v13 = vadd.f32 %v3008_v23, %v2946_v21  ;;  %v2948_v27 = vmul.f32 %v2443_v35, %v2443_v35  ;;  %v2454_v34 = vadd.f32 %v3876_v24, %v4658_v11 }
 0x40c   :  { %v2445_v25 = vpop.f32.mrf.mxu0 }
 0x40d   :  { %v3010_v28 = vadd.f32 %v3009_v13, %v2947_v45  ;;  %v2446_v29 = vadd.f32 %v4658_v11, %v2445_v25  ;;  %v2951_v39 = vmul.f32 %v2454_v34, %v2454_v34 }
 0x40e   :  { %v3879_v32 = vpop.f32.mrf.mxu0 }
 0x40f   :  { %v3011_v33 = vadd.f32 %v3010_v28, %v2948_v27  ;;  %v2949_v54 = vmul.f32 %v2446_v29, %v2446_v29  ;;  %v2467_v43 = vadd.f32 %v3879_v32, %v4658_v11 }
 0x410   :  { %v2458_v36 = vpop.f32.mrf.mxu0 }
 0x411   :  { %v3012_v38 = vadd.f32 %v3011_v33, %v2949_v54  ;;  %v2459_v41 = vadd.f32 %v4658_v11, %v2458_v36  ;;  %v2954_v0 = vmul.f32 %v2467_v43, %v2467_v43 }
 0x412   :  { %v3880_v37 = vpop.f32.mrf.mxu0 }
 0x413   :  { %v3013_v40 = vadd.f32 %v3012_v38, %v2950_v10  ;;  %v2952_v46 = vmul.f32 %v2459_v41, %v2459_v41  ;;  %v2470_v51 = vadd.f32 %v3880_v37, %v4658_v11 }
 0x414   :  { %v2461_v42 = vpop.f32.mrf.mxu0 }
 0x415   :  { %v3014_v47 = vadd.f32 %v3013_v40, %v2951_v39  ;;  %v2462_v48 = vadd.f32 %v4658_v11, %v2461_v42  ;;  %v2955_v55 = vmul.f32 %v2470_v51, %v2470_v51 }
 0x416   :  { %v3883_v30 = vpop.f32.mrf.mxu0 }
 0x417   :  { %v3015_v49 = vadd.f32 %v3014_v47, %v2952_v46  ;;  %v2953_v63 = vmul.f32 %v2462_v48, %v2462_v48  ;;  %v2483_v58 = vadd.f32 %v3883_v30, %v4658_v11 }
 0x418   :  { %v2474_v50 = vpop.f32.mrf.mxu0 }
 0x419   :  { %v3016_v52 = vadd.f32 %v3015_v49, %v2953_v63  ;;  %v2475_v8 = vadd.f32 %v4658_v11, %v2474_v50  ;;  %v2958_v6 = vmul.f32 %v2483_v58, %v2483_v58 }
 0x41a   :  { %v3884_v53 = vpop.f32.mrf.mxu0 }
 0x41b   :  { %v3017_v56 = vadd.f32 %v3016_v52, %v2954_v0  ;;  %v2956_v60 = vmul.f32 %v2475_v8, %v2475_v8  ;;  %v2486_v1 = vadd.f32 %v3884_v53, %v4658_v11 }
 0x41c   :  { %v2477_v57 = vpop.f32.mrf.mxu0 }
 0x41d   :  { %v3018_v61 = vadd.f32 %v3017_v56, %v2955_v55  ;;  %v2478_v62 = vadd.f32 %v4658_v11, %v2477_v57  ;;  %v2959_v26 = vmul.f32 %v2486_v1, %v2486_v1 }
 0x41e   :  { %v3887_v20 = vpop.f32.mrf.mxu0 }
 0x41f   :  { %v3019_v44 = vadd.f32 %v3018_v61, %v2956_v60  ;;  %v2957_v2 = vmul.f32 %v2478_v62, %v2478_v62  ;;  %v2499_v5 = vadd.f32 %v3887_v20, %v4658_v11 }
 0x420   :  { %v2490_v3 = vpop.f32.mrf.mxu0 }
 0x421   :  { %v3020_v17 = vadd.f32 %v3019_v44, %v2957_v2  ;;  %v2491_v7 = vadd.f32 %v4658_v11, %v2490_v3  ;;  %v2962_v23 = vmul.f32 %v2499_v5, %v2499_v5 }
 0x422   :  { %v3888_v9 = vpop.f32.mrf.mxu0 }
 0x423   :  { %v3021_v59 = vadd.f32 %v3020_v17, %v2958_v6  ;;  %v2960_v4 = vmul.f32 %v2491_v7, %v2491_v7  ;;  %v2502_v18 = vadd.f32 %v3888_v9, %v4658_v11 }
 0x424   :  { %v2493_v31 = vpop.f32.mrf.mxu0 }
 0x425   :  { %v3022_v12 = vadd.f32 %v3021_v59, %v2959_v26  ;;  %v2494_v14 = vadd.f32 %v4658_v11, %v2493_v31  ;;  %v2963_v13 = vmul.f32 %v2502_v18, %v2502_v18 }
 0x426   :  { %v3891_v15 = vpop.f32.mrf.mxu0 }
 0x427   :  { %v3023_v16 = vadd.f32 %v3022_v12, %v2960_v4  ;;  %v2961_v19 = vmul.f32 %v2494_v14, %v2494_v14  ;;  %v2515_v27 = vadd.f32 %v3891_v15, %v4658_v11 }
 0x428   :  { %v2506_v21 = vpop.f32.mrf.mxu0 }
 0x429   :  { %v3024_v35 = vadd.f32 %v3023_v16, %v2961_v19  ;;  %v2507_v24 = vadd.f32 %v4658_v11, %v2506_v21  ;;  %v2966_v38 = vmul.f32 %v2515_v27, %v2515_v27 }
 0x42a   :  { %v3892_v45 = vpop.f32.mrf.mxu0 }
 0x42b   :  { %v3025_v25 = vadd.f32 %v3024_v35, %v2962_v23  ;;  %v2964_v28 = vmul.f32 %v2507_v24, %v2507_v24  ;;  %v2518_v54 = vadd.f32 %v3892_v45, %v4658_v11 }
 0x42c   :  { %v2509_v22 = vpop.f32.mrf.mxu0 }
 0x42d   :  { %v3026_v29 = vadd.f32 %v3025_v25, %v2963_v13  ;;  %v2510_v32 = vadd.f32 %v4658_v11, %v2509_v22  ;;  %v2967_v40 = vmul.f32 %v2518_v54, %v2518_v54 }
 0x42e   :  { %v3895_v33 = vpop.f32.mrf.mxu0 }
 0x42f   :  { %v3027_v34 = vadd.f32 %v3026_v29, %v2964_v28  ;;  %v2965_v36 = vmul.f32 %v2510_v32, %v2510_v32  ;;  %v2531_v46 = vadd.f32 %v3895_v33, %v4658_v11 }
 0x430   :  { %v2522_v10 = vpop.f32.mrf.mxu0 }
 0x431   :  { %v3028_v41 = vadd.f32 %v3027_v34, %v2965_v36  ;;  %v2523_v37 = vadd.f32 %v4658_v11, %v2522_v10  ;;  %v2970_v52 = vmul.f32 %v2531_v46, %v2531_v46 }
 0x432   :  { %v3896_v39 = vpop.f32.mrf.mxu0 }
 0x433   :  { %v3029_v42 = vadd.f32 %v3028_v41, %v2966_v38  ;;  %v2968_v47 = vmul.f32 %v2523_v37, %v2523_v37  ;;  %v2534_v63 = vadd.f32 %v3896_v39, %v4658_v11 }
 0x434   :  { %v2525_v43 = vpop.f32.mrf.mxu0 }
 0x435   :  { %v3030_v48 = vadd.f32 %v3029_v42, %v2967_v40  ;;  %v2526_v30 = vadd.f32 %v4658_v11, %v2525_v43  ;;  %v2971_v56 = vmul.f32 %v2534_v63, %v2534_v63 }
 0x436   :  { %v3899_v49 = vpop.f32.mrf.mxu0 }
 0x437   :  { %v3031_v51 = vadd.f32 %v3030_v48, %v2968_v47  ;;  %v2969_v50 = vmul.f32 %v2526_v30, %v2526_v30  ;;  %v2547_v60 = vadd.f32 %v3899_v49, %v4658_v11 }
 0x438   :  { %v2538_v0 = vpop.f32.mrf.mxu0 }
 0x439   :  { %v3032_v8 = vadd.f32 %v3031_v51, %v2969_v50  ;;  %v2539_v53 = vadd.f32 %v4658_v11, %v2538_v0  ;;  %v2974_v17 = vmul.f32 %v2547_v60, %v2547_v60 }
 0x43a   :  { %v3900_v55 = vpop.f32.mrf.mxu0 }
 0x43b   :  { %v3033_v57 = vadd.f32 %v3032_v8, %v2970_v52  ;;  %v2972_v61 = vmul.f32 %v2539_v53, %v2539_v53  ;;  %v2550_v2 = vadd.f32 %v3900_v55, %v4658_v11 }
 0x43c   :  { %v2541_v58 = vpop.f32.mrf.mxu0 }
 0x43d   :  { %v3034_v62 = vadd.f32 %v3033_v57, %v2971_v56  ;;  %v2542_v20 = vadd.f32 %v4658_v11, %v2541_v58  ;;  %v2975_v59 = vmul.f32 %v2550_v2, %v2550_v2 }
 0x43e   :  { %v3903_v44 = vpop.f32.mrf.mxu0 }
 0x43f   :  { %v3035_v1 = vadd.f32 %v3034_v62, %v2972_v61  ;;  %v2973_v3 = vmul.f32 %v2542_v20, %v2542_v20  ;;  %v2563_v4 = vadd.f32 %v3903_v44, %v4658_v11 }
 0x440   :  { %v2554_v6 = vpop.f32.mrf.mxu0 }
 0x441   :  { %v3036_v7 = vadd.f32 %v3035_v1, %v2973_v3  ;;  %v2555_v9 = vadd.f32 %v4658_v11, %v2554_v6  ;;  %v2978_v35 = vmul.f32 %v2563_v4, %v2563_v4 }
 0x442   :  { %v3904_v26 = vpop.f32.mrf.mxu0 }
 0x443   :  { %v3037_v31 = vadd.f32 %v3036_v7, %v2974_v17  ;;  %v2976_v12 = vmul.f32 %v2555_v9, %v2555_v9  ;;  %v2566_v19 = vadd.f32 %v3904_v26, %v4658_v11 }
 0x444   :  { %v2557_v5 = vpop.f32.mrf.mxu0 }
 0x445   :  { %v3038_v14 = vadd.f32 %v3037_v31, %v2975_v59  ;;  %v2558_v15 = vadd.f32 %v4658_v11, %v2557_v5  ;;  %v2979_v25 = vmul.f32 %v2566_v19, %v2566_v19 }
 0x446   :  { %v3907_v16 = vpop.f32.mrf.mxu0 }
 0x447   :  { %v3039_v18 = vadd.f32 %v3038_v14, %v2976_v12  ;;  %v2977_v21 = vmul.f32 %v2558_v15, %v2558_v15  ;;  %v2579_v28 = vadd.f32 %v3907_v16, %v4658_v11 }
 0x448   :  { %v2570_v23 = vpop.f32.mrf.mxu0 }
 0x449   :  { %v3040_v24 = vadd.f32 %v3039_v18, %v2977_v21  ;;  %v2571_v45 = vadd.f32 %v4658_v11, %v2570_v23  ;;  %v2982_v41 = vmul.f32 %v2579_v28, %v2579_v28 }
 0x44a   :  { %v3908_v13 = vpop.f32.mrf.mxu0 }
 0x44b   :  { %v3041_v22 = vadd.f32 %v3040_v24, %v2978_v35  ;;  %v2980_v29 = vmul.f32 %v2571_v45, %v2571_v45  ;;  %v2582_v36 = vadd.f32 %v3908_v13, %v4658_v11 }
 0x44c   :  { %v2573_v27 = vpop.f32.mrf.mxu0 }
 0x44d   :  { %v3042_v32 = vadd.f32 %v3041_v22, %v2979_v25  ;;  %v2574_v33 = vadd.f32 %v4658_v11, %v2573_v27  ;;  %v2983_v42 = vmul.f32 %v2582_v36, %v2582_v36 }
 0x44e   :  { %v3911_v34 = vpop.f32.mrf.mxu0 }
 0x44f   :  { %v3043_v54 = vadd.f32 %v3042_v32, %v2980_v29  ;;  %v2981_v10 = vmul.f32 %v2574_v33, %v2574_v33  ;;  %v2595_v47 = vadd.f32 %v3911_v34, %v4658_v11 }
 0x450   :  { %v2586_v38 = vpop.f32.mrf.mxu0 }
 0x451   :  { %v3044_v37 = vadd.f32 %v3043_v54, %v2981_v10  ;;  %v2587_v39 = vadd.f32 %v4658_v11, %v2586_v38  ;;  %v2986_v8 = vmul.f32 %v2595_v47, %v2595_v47 }
 0x452   :  { %v3912_v40 = vpop.f32.mrf.mxu0 }
 0x453   :  { %v3045_v43 = vadd.f32 %v3044_v37, %v2982_v41  ;;  %v2984_v48 = vmul.f32 %v2587_v39, %v2587_v39  ;;  %v2598_v50 = vadd.f32 %v3912_v40, %v4658_v11  ;;  %v2685_v41 = vlaneseq }
 0x454   :  { %v2589_v46 = vpop.f32.mrf.mxu0 }
 0x455   :  { %v3046_v30 = vadd.f32 %v3045_v43, %v2983_v42  ;;  %v2590_v49 = vadd.f32 %v4658_v11, %v2589_v46  ;;  %v2987_v57 = vmul.f32 %v2598_v50, %v2598_v50 }
 0x456   :  { %v3915_v51 = vpop.f32.mrf.mxu0 }
 0x457   :  { %v3047_v63 = vadd.f32 %v3046_v30, %v2984_v48  ;;  %v2985_v0 = vmul.f32 %v2590_v49, %v2590_v49  ;;  %v2611_v61 = vadd.f32 %v3915_v51, %v4658_v11  ;;  %v2686_v48 = vshrl.u32 %v2685_v41, 7 }
 0x458   :  { %v2602_v52 = vpop.f32.mrf.mxu0 }
 0x459   :  { %v3048_v53 = vadd.f32 %v3047_v63, %v2985_v0  ;;  %v2603_v55 = vadd.f32 %v4658_v11, %v2602_v52  ;;  %v2990_v7 = vmul.f32 %v2611_v61, %v2611_v61 }
 0x45a   :  { %v3916_v56 = vpop.f32.mrf.mxu0 }
 0x45b   :  { %v3049_v58 = vadd.f32 %v3048_v53, %v2986_v8  ;;  %v2988_v62 = vmul.f32 %v2603_v55, %v2603_v55  ;;  %v2614_v3 = vadd.f32 %v3916_v56, %v4658_v11  ;;  %v2748_v55 = vadd.s32 496, %v2686_v48 }
 0x45c   :  { %v2605_v60 = vpop.f32.mrf.mxu0 }
 0x45d   :  { %v3050_v20 = vadd.f32 %v3049_v58, %v2987_v57  ;;  %v2606_v44 = vadd.f32 %v4658_v11, %v2605_v60  ;;  %v2991_v31 = vmul.f32 %v2614_v3, %v2614_v3  ;;  %vm2878_vm2 = vcmp.lt.s32.totalorder %v2748_v55, 500 }
 0x45e   :  { %v3919_v1 = vpop.f32.mrf.mxu0 }
 0x45f   :  { %v3051_v2 = vadd.f32 %v3050_v20, %v2988_v62  ;;  %v2989_v6 = vmul.f32 %v2606_v44, %v2606_v44  ;;  %v2627_v12 = vadd.f32 %v3919_v1, %v4658_v11 }
 0x460   :  { %v2618_v17 = vpop.f32.mrf.mxu0 }
 0x461   :  { %v3052_v9 = vadd.f32 %v3051_v2, %v2989_v6  ;;  %v2619_v26 = vadd.f32 %v4658_v11, %v2618_v17  ;;  %v2994_v24 = vmul.f32 %v2627_v12, %v2627_v12 }
 0x462   :  { %v3920_v59 = vpop.f32.mrf.mxu0 }
 0x463   :  { %v3053_v5 = vadd.f32 %v3052_v9, %v2990_v7  ;;  %v2992_v14 = vmul.f32 %v2619_v26, %v2619_v26  ;;  %v2630_v21 = vadd.f32 %v3920_v59, %v4658_v11 }
 0x464   :  { %v2621_v4 = vpop.f32.mrf.mxu0 }
 0x465   :  { %v3054_v15 = vadd.f32 %v3053_v5, %v2991_v31  ;;  %v2622_v16 = vadd.f32 %v4658_v11, %v2621_v4  ;;  %v2995_v22 = vmul.f32 %v2630_v21, %v2630_v21 }
 0x466   :  { %v3923_v18 = vpop.f32.mrf.mxu0 }
 0x467   :  { %v3055_v19 = vadd.f32 %v3054_v15, %v2992_v14  ;;  %v2993_v23 = vmul.f32 %v2622_v16, %v2622_v16  ;;  %v2643_v29 = vadd.f32 %v3923_v18, %v4658_v11 }
 0x468   :  { %v2634_v35 = vpop.f32.mrf.mxu0 }
 0x469   :  { %v3056_v45 = vadd.f32 %v3055_v19, %v2993_v23  ;;  %v2635_v13 = vadd.f32 %v4658_v11, %v2634_v35  ;;  %v2998_v39 = vmul.f32 %v2643_v29, %v2643_v29 }
 0x46a   :  { %v3924_v25 = vpop.f32.mrf.mxu0 }
 0x46b   :  { %v3057_v27 = vadd.f32 %v3056_v45, %v2994_v24  ;;  %v2996_v32 = vmul.f32 %v2635_v13, %v2635_v13  ;;  %v2646_v10 = vadd.f32 %v3924_v25, %v4658_v11 }
 0x46c   :  { %v2637_v28 = vpop.f32.mrf.mxu0 }
 0x46d   :  { %v3058_v33 = vadd.f32 %v3057_v27, %v2995_v22  ;;  %v2638_v34 = vadd.f32 %v4658_v11, %v2637_v28  ;;  %v2999_v46 = vmul.f32 %v2646_v10, %v2646_v10 }
 0x46e   :  { %v3927_v54 = vpop.f32.mrf.mxu0 }
 0x46f   :  { %v3059_v36 = vadd.f32 %v3058_v33, %v2996_v32  ;;  %v2997_v38 = vmul.f32 %v2638_v34, %v2638_v34  ;;  %v2659_v49 = vadd.f32 %v3927_v54, %v4658_v11 }
 0x470   :  { %v2650_v37 = vpop.f32.mrf.mxu0 }
 0x471   :  { %v3060_v40 = vadd.f32 %v3059_v36, %v2997_v38  ;;  %v2651_v42 = vadd.f32 %v4658_v11, %v2650_v37  ;;  %v3002_v57 = vmul.f32 %v2659_v49, %v2659_v49 }
 0x472   :  { %v3928_v43 = vpop.f32.mrf.mxu0 }
 0x473   :  { %v3061_v47 = vadd.f32 %v3060_v40, %v2998_v39  ;;  %v3000_v51 = vmul.f32 %v2651_v42, %v2651_v42  ;;  %v2662_v8 = vadd.f32 %v3928_v43, %v4658_v11 }
 0x474   :  { %v2653_v30 = vpop.f32.mrf.mxu0 }
 0x475   :  { %v3062_v63 = vadd.f32 %v3061_v47, %v2999_v46  ;;  %v2654_v50 = vadd.f32 %v4658_v11, %v2653_v30  ;;  %v3003_v20 = vmul.f32 %v2662_v8, %v2662_v8 }
 0x476   :  { %v3931_v0 = vpop.f32.mrf.mxu0 }
 0x477   :  { %v3063_v52 = vadd.f32 %v3062_v63, %v3000_v51  ;;  %v3001_v53 = vmul.f32 %v2654_v50, %v2654_v50  ;;  %v2675_v61 = vadd.f32 %v3931_v0, %v4658_v11 }
 0x478   :  { %v2666_v56 = vpop.f32.mrf.mxu0 }
 0x479   :  { %v3064_v58 = vadd.f32 %v3063_v52, %v3001_v53  ;;  %v2667_v60 = vadd.f32 %v4658_v11, %v2666_v56  ;;  %v2942_v17 = vsel %vm2878_vm2, %v2675_v61, 0.0 }
 0x47a   :  { %v3932_v62 = vpop.f32.mrf.mxu0  ;;  %v3006_v26 = vmul.f32 %v2942_v17, %v2942_v17 }
 0x47b   :  { %v3065_v44 = vadd.f32 %v3064_v58, %v3002_v57  ;;  %v3004_v2 = vmul.f32 %v2667_v60, %v2667_v60 }
 0x47c   :  { %v2669_v1 = vpop.f32.mrf.mxu0 }
 0x47d   :  { %v3066_v3 = vadd.f32 %v3065_v44, %v3003_v20  ;;  %v2670_v6 = vadd.f32 %v4658_v11, %v2669_v1 }
 0x47f   :  { %v3067_v7 = vadd.f32 %v3066_v3, %v3004_v2  ;;  %v3005_v9 = vmul.f32 %v2670_v6, %v2670_v6 }
 0x481   :  { %v3068_v59 = vadd.f32 %v3067_v7, %v3005_v9 }
 0x483   :  { %v3069_v31 = vadd.f32 %v3068_v59, %v3006_v26 }
 0x485   :  { %v3071_v5 = vrot.slane %v3069_v31, 4 }
 0x487   :  { %v3072_v4 = vadd.f32 %v3071_v5, %v3069_v31 }
 0x489   :  { %v3073_v12 = vrot.slane %v3072_v4, 2 }
 0x48b   :  { %v3074_v14 = vadd.f32 %v3073_v12, %v3072_v4 }
 0x48d   :  { %v3075_v15 = vrot.slane %v3074_v14, 1 }
 0x48f   :  { %v3076_v16 = vadd.f32 %v3075_v15, %v3074_v14 }
 0x491   :  { %3077 = vst [vmem:[%s4737_s11] sm:$0x1] %v3076_v16 }

</bundles_post_ra>
